<compile_context>
chip_gen: v5e
topology: v5e:2x2
jax: 0.10.0
libtpu: 0.0.40
codegen_flags: <defaults>
</compile_context>

<pallas_src>
import jax
import jax.numpy as jnp
from jax.experimental import pallas as pl
from jax.experimental.pallas import tpu as pltpu

# ----------------------------- configuration -----------------------------
B = 2             # batch
S = 256           # seq_len  (n_tok = 512 -> two 256-token tiles)
C_IN = 32         # in_channels
C_OUT = 16        # out_channels
NUM_BLOCKS = 3
NUM_HEADS = 1     # module only runs with num_heads == 1 (see note above)
HEAD_DIM = C_OUT // NUM_HEADS
LN_EPS = 1e-5
MAX_TILE_T = 512  # largest token tile; the handful of (T, 3*C_OUT) f32 temps stay tiny in VMEM


def _choose_tile(n_tok):
    """Largest token tile <= MAX_TILE_T that divides n_tok (multiple of 8),
    preferring >= 2 grid steps so both v7x TensorCores get work."""
    best = 8
    for t in range(8, min(MAX_TILE_T, n_tok) + 1, 8):
        if n_tok % t == 0 and (n_tok // t >= 2 or n_tok <= 8):
            best = t
    return best


# ------------------------------- the kernel ------------------------------
def rdba_kernel(x_ref, wvqk_ref, bvqk_ref, wo_ref, cvec_ref, o_ref):
    """Fused ResidualDenseBlockAttention over one tile of tokens.

    x_ref:     (TILE_T, C_IN)                       f32
    wvqk_ref:  (NUM_BLOCKS, C_IN, 3*C_OUT)          bf16   packed [V|Q|K]
    bvqk_ref:  (NUM_BLOCKS, 3*C_OUT)                f32    packed [bV|bQ|bK]
    wo_ref:    (NUM_BLOCKS, C_OUT*NUM_HEADS, C_IN)  bf16
    cvec_ref:  (NUM_BLOCKS, 3, C_IN)                f32    packed [bo, gamma, beta]
    o_ref:     (TILE_T, C_IN)
    """
    x = x_ref[...].astype(jnp.float32)                          # (T, C_IN) activations in f32

    for blk in range(NUM_BLOCKS):                               # static unroll over blocks
        # ---- fused [V|Q|K] projection: one MXU push per block (bf16 operands, f32 acc) ----
        xw = x.astype(jnp.bfloat16)
        vqk = jnp.dot(xw, wvqk_ref[blk],
                      preferred_element_type=jnp.float32)       # (T, 3*C_OUT)
        b_row = bvqk_ref[blk:blk + 1, :]                        # (1, 3*C_OUT)

        if NUM_HEADS == 1:
            # Softmax over a single head is identically 1 => attended == value.
            # Q/K are mathematically dead; the fused push costs the same as a
            # V-only push, so just take the V slice (packed at lane offset 0).
            att = vqk[:, :C_OUT] + b_row[:, :C_OUT]             # (T, C_OUT)
        else:
            # TODO(synk): untestable path -- the PyTorch module's out_transform expects
            # out_channels*num_heads features but receives out_channels, so the original
            # forward only type-checks for num_heads == 1.
            v = vqk[:, :C_OUT] + b_row[:, :C_OUT]
            q = vqk[:, C_OUT:2 * C_OUT] + b_row[:, C_OUT:2 * C_OUT]
            k = vqk[:, 2 * C_OUT:] + b_row[:, 2 * C_OUT:]
            t = q.shape[0]
            qh = q.reshape(t, NUM_HEADS, HEAD_DIM)
            kh = k.reshape(t, NUM_HEADS, HEAD_DIM)
            vh = v.reshape(t, NUM_HEADS, HEAD_DIM)
            s = jnp.einsum('thd,tgd->thg', qh, kh,
                           preferred_element_type=jnp.float32) / (HEAD_DIM ** 0.5)
            w = jax.nn.softmax(s, axis=-1)
            att = jnp.einsum('thg,tgd->thd', w, vh,
                             preferred_element_type=jnp.float32
                             ).reshape(t, NUM_HEADS * HEAD_DIM)

        # ---- output projection + residual + LayerNorm (all f32 except MXU operands) ----
        cv = cvec_ref[blk]                                      # (3, C_IN): [bo, gamma, beta]
        out = jnp.dot(att.astype(jnp.bfloat16), wo_ref[blk],
                      preferred_element_type=jnp.float32) + cv[0:1, :]
        y = x + out
        mu = jnp.mean(y, axis=-1, keepdims=True)
        var = jnp.mean((y - mu) ** 2, axis=-1, keepdims=True)
        x = (y - mu) * jax.lax.rsqrt(var + LN_EPS) * cv[1:2, :] + cv[2:3, :]

    o_ref[...] = x.astype(o_ref.dtype)


# ------------------------------- the wrapper ------------------------------
@jax.jit
def residual_dense_block_attention(x, packed):
    wvqk, bvqk, wo, cvec = packed
    Bx, Sx, Cx = x.shape
    assert Cx == C_IN
    n_tok = Bx * Sx
    assert n_tok % 8 == 0
    tile_t = _choose_tile(n_tok)
    x2 = x.reshape(n_tok, Cx)

    def full_spec(arr):
        nd = arr.ndim
        return pl.BlockSpec(arr.shape, lambda i, _nd=nd: (0,) * _nd)

    out = pl.pallas_call(
        rdba_kernel,
        out_shape=jax.ShapeDtypeStruct((n_tok, Cx), x.dtype),
        grid=(n_tok // tile_t,),
        in_specs=[pl.BlockSpec((tile_t, Cx), lambda i: (i, 0)),
                  full_spec(wvqk), full_spec(bvqk),
                  full_spec(wo), full_spec(cvec)],
        out_specs=pl.BlockSpec((tile_t, Cx), lambda i: (i, 0)),
        compiler_params=pltpu.CompilerParams(
            dimension_semantics=("parallel",)),
    )(x2, wvqk, bvqk, wo, cvec)
    return out.reshape(Bx, Sx, Cx)


# --------------------------- pure-JAX reference ---------------------------
def ref_forward(x, params):
    """f32 reference of the PyTorch forward (weights upcast from their bf16 storage)."""
    wq, bq, wk, bk, wv, bv, wo, bo, gamma, beta = params
    for blk in range(NUM_BLOCKS):
        q = x @ wq[blk].astype(jnp.float32) + bq[blk]
        k = x @ wk[blk].astype(jnp.float32) + bk[blk]
        v = x @ wv[blk].astype(jnp.float32) + bv[blk]
        Bx, Sx, _ = x.shape
        q4 = q.reshape(Bx, Sx, NUM_HEADS, HEAD_DIM)
        k4 = k.reshape(Bx, Sx, NUM_HEADS, HEAD_DIM)
        v4 = v.reshape(Bx, Sx, NUM_HEADS, HEAD_DIM)
        scores = jnp.einsum('bshd,bsgd->bshg', q4, k4) / (HEAD_DIM ** 0.5)
        w = jax.nn.softmax(scores, axis=-1)
        att = jnp.einsum('bshg,bsgd->bshd', w, v4).reshape(
            Bx, Sx, NUM_HEADS * HEAD_DIM)
        out = att @ wo[blk].astype(jnp.float32) + bo[blk]
        y = x + out
        mu = y.mean(-1, keepdims=True)
        var = ((y - mu) ** 2).mean(-1, keepdims=True)
        x = (y - mu) / jnp.sqrt(var + LN_EPS) * gamma[blk] + beta[blk]
    return x


# ----------------------------- parameter init -----------------------------
def init_params(key):
    """PyTorch-style per-block params; matmul weights stored in bf16 (MXU operands),
    biases/LayerNorm params in f32.  Weights are (in_features, out_features)."""
    ks = jax.random.split(key, 8)
    wq = (jax.random.normal(ks[0], (NUM_BLOCKS, C_IN, C_OUT), jnp.float32) * 0.1
          ).astype(jnp.bfloat16)
    wk = (jax.random.normal(ks[1], (NUM_BLOCKS, C_IN, C_OUT), jnp.float32) * 0.1
          ).astype(jnp.bfloat16)
    wv = (jax.random.normal(ks[2], (NUM_BLOCKS, C_IN, C_OUT), jnp.float32) * 0.1
          ).astype(jnp.bfloat16)
    bq = jax.random.normal(ks[3], (NUM_BLOCKS, C_OUT), jnp.float32) * 0.05
    bk = jax.random.normal(ks[4], (NUM_BLOCKS, C_OUT), jnp.float32) * 0.05
    bv = jax.random.normal(ks[5], (NUM_BLOCKS, C_OUT), jnp.float32) * 0.05
    wo = (jax.random.normal(
        ks[6], (NUM_BLOCKS, C_OUT * NUM_HEADS, C_IN), jnp.float32) * 0.1
          ).astype(jnp.bfloat16)
    bo = jax.random.normal(ks[7], (NUM_BLOCKS, C_IN), jnp.float32) * 0.05
    gamma = jnp.ones((NUM_BLOCKS, C_IN), jnp.float32)
    beta = jnp.zeros((NUM_BLOCKS, C_IN), jnp.float32)
    return (wq, bq, wk, bk, wv, bv, wo, bo, gamma, beta)


def pack_params(params):
    """Kernel-side packing: fused [V|Q|K] weight/bias and stacked [bo, gamma, beta]."""
    wq, bq, wk, bk, wv, bv, wo, bo, gamma, beta = params
    wvqk = jnp.concatenate([wv, wq, wk], axis=-1)      # (NB, C_IN, 3*C_OUT) bf16
    bvqk = jnp.concatenate([bv, bq, bk], axis=-1)      # (NB, 3*C_OUT)       f32
    cvec = jnp.stack([bo, gamma, beta], axis=1)        # (NB, 3, C_IN)       f32
    return (wvqk, bvqk, wo, cvec)


if __name__ == "__main__":
    key = jax.random.PRNGKey(0)
    k_x, k_p = jax.random.split(key)
    x = jax.random.normal(k_x, (B, S, C_IN), jnp.float32)
    params = init_params(k_p)
    packed = pack_params(params)

    y = residual_dense_block_attention(x, packed)
    y = jax.block_until_ready(y)

    y_ref = ref_forward(x, params)
    assert y.shape == (B, S, C_IN)
    # Tolerance accounts for bf16 MXU operands (activations cast to bf16 at the two
    # dots per block) vs the pure-f32 reference math; LN/residual stay f32.
    max_err = float(jnp.max(jnp.abs(y - y_ref)))
    assert jnp.allclose(y, y_ref, atol=3e-2, rtol=3e-2), \
        f"mismatch vs reference (max |err|={max_err})"

    print("KERNEL_OK")
</pallas_src>

<mosaic_0001>
module attributes {stable_mosaic.version = 11 : i64} {
  func.func @rdba_kernel(%arg0: i32, %arg1: memref<256x32xf32, #tpu.memory_space<vmem>>, %arg2: memref<3x32x48xbf16, #tpu.memory_space<vmem>>, %arg3: memref<3x48xf32, #tpu.memory_space<vmem>>, %arg4: memref<3x16x32xbf16, #tpu.memory_space<vmem>>, %arg5: memref<3x3x32xf32, #tpu.memory_space<vmem>>, %arg6: memref<256x32xf32, #tpu.memory_space<vmem>>) attributes {dimension_semantics = [#tpu.dimension_semantics<parallel>], iteration_bounds = array<i64: 2>, scalar_prefetch = 0 : i64, scratch_operands = 0 : i64, tpu.core_type = #tpu.core_type<tc>, window_params = [{transform_indices = @transform_0, window_bounds = array<i64: 256, 32>}, {pipeline_mode = #tpu.pipeline_mode<synchronous>, transform_indices = @transform_1, window_bounds = array<i64: 3, 32, 48>}, {pipeline_mode = #tpu.pipeline_mode<synchronous>, transform_indices = @transform_2, window_bounds = array<i64: 3, 48>}, {pipeline_mode = #tpu.pipeline_mode<synchronous>, transform_indices = @transform_3, window_bounds = array<i64: 3, 16, 32>}, {pipeline_mode = #tpu.pipeline_mode<synchronous>, transform_indices = @transform_4, window_bounds = array<i64: 3, 3, 32>}, {transform_indices = @transform_5, window_bounds = array<i64: 256, 32>}]} {
    %c0 = arith.constant 0 : index
    %c0_0 = arith.constant 0 : index
    %0 = vector.load %arg1[%c0, %c0_0] : memref<256x32xf32, #tpu.memory_space<vmem>>, vector<256x32xf32>
    %1 = arith.truncf %0 : vector<256x32xf32> to vector<256x32xbf16>
    %c0_1 = arith.constant 0 : index
    %c0_2 = arith.constant 0 : index
    %c0_3 = arith.constant 0 : index
    %2 = vector.load %arg2[%c0_1, %c0_2, %c0_3] : memref<3x32x48xbf16, #tpu.memory_space<vmem>>, vector<1x32x48xbf16>
    %3 = vector.shape_cast %2 : vector<1x32x48xbf16> to vector<32x48xbf16>
    %cst = arith.constant dense<0.000000e+00> : vector<256x48xf32>
    %4 = tpu.matmul %1, %3, %cst {dimension_numbers = #tpu.dot_dimension_numbers<[1], [0], [0], [1], [0, 0, 1, 1], [], []>} : vector<256x32xbf16>, vector<32x48xbf16>, vector<256x48xf32> -> vector<256x48xf32>
    %c0_4 = arith.constant 0 : index
    %c0_5 = arith.constant 0 : index
    %5 = vector.load %arg3[%c0_4, %c0_5] : memref<3x48xf32, #tpu.memory_space<vmem>>, vector<1x48xf32>
    %6 = vector.extract_strided_slice %4 {offsets = [0, 0], sizes = [256, 16], strides = [1, 1]} : vector<256x48xf32> to vector<256x16xf32>
    %7 = vector.extract_strided_slice %5 {offsets = [0, 0], sizes = [1, 16], strides = [1, 1]} : vector<1x48xf32> to vector<1x16xf32>
    %8 = vector.broadcast %7 : vector<1x16xf32> to vector<256x16xf32>
    %9 = arith.addf %6, %8 : vector<256x16xf32>
    %c0_6 = arith.constant 0 : index
    %c0_7 = arith.constant 0 : index
    %c0_8 = arith.constant 0 : index
    %10 = vector.load %arg5[%c0_6, %c0_7, %c0_8] : memref<3x3x32xf32, #tpu.memory_space<vmem>>, vector<1x3x32xf32>
    %11 = vector.shape_cast %10 : vector<1x3x32xf32> to vector<3x32xf32>
    %12 = arith.truncf %9 : vector<256x16xf32> to vector<256x16xbf16>
    %c0_9 = arith.constant 0 : index
    %c0_10 = arith.constant 0 : index
    %c0_11 = arith.constant 0 : index
    %13 = vector.load %arg4[%c0_9, %c0_10, %c0_11] : memref<3x16x32xbf16, #tpu.memory_space<vmem>>, vector<1x16x32xbf16>
    %14 = vector.shape_cast %13 : vector<1x16x32xbf16> to vector<16x32xbf16>
    %cst_12 = arith.constant dense<0.000000e+00> : vector<256x32xf32>
    %15 = tpu.matmul %12, %14, %cst_12 {dimension_numbers = #tpu.dot_dimension_numbers<[1], [0], [0], [1], [0, 0, 1, 1], [], []>} : vector<256x16xbf16>, vector<16x32xbf16>, vector<256x32xf32> -> vector<256x32xf32>
    %16 = vector.extract_strided_slice %11 {offsets = [0, 0], sizes = [1, 32], strides = [1, 1]} : vector<3x32xf32> to vector<1x32xf32>
    %17 = vector.broadcast %16 : vector<1x32xf32> to vector<256x32xf32>
    %18 = arith.addf %15, %17 : vector<256x32xf32>
    %19 = arith.addf %0, %18 : vector<256x32xf32>
    %cst_13 = arith.constant dense<0.000000e+00> : vector<256xf32>
    %20 = vector.multi_reduction <add>, %19, %cst_13 [1] : vector<256x32xf32> to vector<256xf32>
    %21 = vector.shape_cast %20 : vector<256xf32> to vector<256x1xf32>
    %cst_14 = arith.constant 3.200000e+01 : f32
    %22 = vector.broadcast %cst_14 : f32 to vector<256x1xf32>
    %23 = arith.divf %21, %22 : vector<256x1xf32>
    %24 = vector.broadcast %23 : vector<256x1xf32> to vector<256x32xf32>
    %25 = arith.subf %19, %24 : vector<256x32xf32>
    %26 = arith.mulf %25, %25 : vector<256x32xf32>
    %cst_15 = arith.constant dense<0.000000e+00> : vector<256xf32>
    %27 = vector.multi_reduction <add>, %26, %cst_15 [1] : vector<256x32xf32> to vector<256xf32>
    %28 = vector.shape_cast %27 : vector<256xf32> to vector<256x1xf32>
    %cst_16 = arith.constant 3.200000e+01 : f32
    %29 = vector.broadcast %cst_16 : f32 to vector<256x1xf32>
    %30 = arith.divf %28, %29 : vector<256x1xf32>
    %31 = vector.broadcast %23 : vector<256x1xf32> to vector<256x32xf32>
    %32 = arith.subf %19, %31 : vector<256x32xf32>
    %cst_17 = arith.constant 9.99999974E-6 : f32
    %33 = vector.broadcast %cst_17 : f32 to vector<256x1xf32>
    %34 = arith.addf %30, %33 : vector<256x1xf32>
    %35 = math.rsqrt %34 : vector<256x1xf32>
    %36 = vector.broadcast %35 : vector<256x1xf32> to vector<256x32xf32>
    %37 = arith.mulf %32, %36 : vector<256x32xf32>
    %38 = vector.extract_strided_slice %11 {offsets = [1, 0], sizes = [1, 32], strides = [1, 1]} : vector<3x32xf32> to vector<1x32xf32>
    %39 = vector.broadcast %38 : vector<1x32xf32> to vector<256x32xf32>
    %40 = arith.mulf %37, %39 : vector<256x32xf32>
    %41 = vector.extract_strided_slice %11 {offsets = [2, 0], sizes = [1, 32], strides = [1, 1]} : vector<3x32xf32> to vector<1x32xf32>
    %42 = vector.broadcast %41 : vector<1x32xf32> to vector<256x32xf32>
    %43 = arith.addf %40, %42 : vector<256x32xf32>
    %44 = arith.truncf %43 : vector<256x32xf32> to vector<256x32xbf16>
    %c1 = arith.constant 1 : index
    %c0_18 = arith.constant 0 : index
    %c0_19 = arith.constant 0 : index
    %45 = vector.load %arg2[%c1, %c0_18, %c0_19] : memref<3x32x48xbf16, #tpu.memory_space<vmem>>, vector<1x32x48xbf16>
    %46 = vector.shape_cast %45 : vector<1x32x48xbf16> to vector<32x48xbf16>
    %cst_20 = arith.constant dense<0.000000e+00> : vector<256x48xf32>
    %47 = tpu.matmul %44, %46, %cst_20 {dimension_numbers = #tpu.dot_dimension_numbers<[1], [0], [0], [1], [0, 0, 1, 1], [], []>} : vector<256x32xbf16>, vector<32x48xbf16>, vector<256x48xf32> -> vector<256x48xf32>
    %c1_21 = arith.constant 1 : index
    %c0_22 = arith.constant 0 : index
    %48 = vector.load %arg3[%c1_21, %c0_22] : memref<3x48xf32, #tpu.memory_space<vmem>>, vector<1x48xf32>
    %49 = vector.extract_strided_slice %47 {offsets = [0, 0], sizes = [256, 16], strides = [1, 1]} : vector<256x48xf32> to vector<256x16xf32>
    %50 = vector.extract_strided_slice %48 {offsets = [0, 0], sizes = [1, 16], strides = [1, 1]} : vector<1x48xf32> to vector<1x16xf32>
    %51 = vector.broadcast %50 : vector<1x16xf32> to vector<256x16xf32>
    %52 = arith.addf %49, %51 : vector<256x16xf32>
    %c1_23 = arith.constant 1 : index
    %c0_24 = arith.constant 0 : index
    %c0_25 = arith.constant 0 : index
    %53 = vector.load %arg5[%c1_23, %c0_24, %c0_25] : memref<3x3x32xf32, #tpu.memory_space<vmem>>, vector<1x3x32xf32>
    %54 = vector.shape_cast %53 : vector<1x3x32xf32> to vector<3x32xf32>
    %55 = arith.truncf %52 : vector<256x16xf32> to vector<256x16xbf16>
    %c1_26 = arith.constant 1 : index
    %c0_27 = arith.constant 0 : index
    %c0_28 = arith.constant 0 : index
    %56 = vector.load %arg4[%c1_26, %c0_27, %c0_28] : memref<3x16x32xbf16, #tpu.memory_space<vmem>>, vector<1x16x32xbf16>
    %57 = vector.shape_cast %56 : vector<1x16x32xbf16> to vector<16x32xbf16>
    %cst_29 = arith.constant dense<0.000000e+00> : vector<256x32xf32>
    %58 = tpu.matmul %55, %57, %cst_29 {dimension_numbers = #tpu.dot_dimension_numbers<[1], [0], [0], [1], [0, 0, 1, 1], [], []>} : vector<256x16xbf16>, vector<16x32xbf16>, vector<256x32xf32> -> vector<256x32xf32>
    %59 = vector.extract_strided_slice %54 {offsets = [0, 0], sizes = [1, 32], strides = [1, 1]} : vector<3x32xf32> to vector<1x32xf32>
    %60 = vector.broadcast %59 : vector<1x32xf32> to vector<256x32xf32>
    %61 = arith.addf %58, %60 : vector<256x32xf32>
    %62 = arith.addf %43, %61 : vector<256x32xf32>
    %cst_30 = arith.constant dense<0.000000e+00> : vector<256xf32>
    %63 = vector.multi_reduction <add>, %62, %cst_30 [1] : vector<256x32xf32> to vector<256xf32>
    %64 = vector.shape_cast %63 : vector<256xf32> to vector<256x1xf32>
    %cst_31 = arith.constant 3.200000e+01 : f32
    %65 = vector.broadcast %cst_31 : f32 to vector<256x1xf32>
    %66 = arith.divf %64, %65 : vector<256x1xf32>
    %67 = vector.broadcast %66 : vector<256x1xf32> to vector<256x32xf32>
    %68 = arith.subf %62, %67 : vector<256x32xf32>
    %69 = arith.mulf %68, %68 : vector<256x32xf32>
    %cst_32 = arith.constant dense<0.000000e+00> : vector<256xf32>
    %70 = vector.multi_reduction <add>, %69, %cst_32 [1] : vector<256x32xf32> to vector<256xf32>
    %71 = vector.shape_cast %70 : vector<256xf32> to vector<256x1xf32>
    %cst_33 = arith.constant 3.200000e+01 : f32
    %72 = vector.broadcast %cst_33 : f32 to vector<256x1xf32>
    %73 = arith.divf %71, %72 : vector<256x1xf32>
    %74 = vector.broadcast %66 : vector<256x1xf32> to vector<256x32xf32>
    %75 = arith.subf %62, %74 : vector<256x32xf32>
    %cst_34 = arith.constant 9.99999974E-6 : f32
    %76 = vector.broadcast %cst_34 : f32 to vector<256x1xf32>
    %77 = arith.addf %73, %76 : vector<256x1xf32>
    %78 = math.rsqrt %77 : vector<256x1xf32>
    %79 = vector.broadcast %78 : vector<256x1xf32> to vector<256x32xf32>
    %80 = arith.mulf %75, %79 : vector<256x32xf32>
    %81 = vector.extract_strided_slice %54 {offsets = [1, 0], sizes = [1, 32], strides = [1, 1]} : vector<3x32xf32> to vector<1x32xf32>
    %82 = vector.broadcast %81 : vector<1x32xf32> to vector<256x32xf32>
    %83 = arith.mulf %80, %82 : vector<256x32xf32>
    %84 = vector.extract_strided_slice %54 {offsets = [2, 0], sizes = [1, 32], strides = [1, 1]} : vector<3x32xf32> to vector<1x32xf32>
    %85 = vector.broadcast %84 : vector<1x32xf32> to vector<256x32xf32>
    %86 = arith.addf %83, %85 : vector<256x32xf32>
    %87 = arith.truncf %86 : vector<256x32xf32> to vector<256x32xbf16>
    %c2 = arith.constant 2 : index
    %c0_35 = arith.constant 0 : index
    %c0_36 = arith.constant 0 : index
    %88 = vector.load %arg2[%c2, %c0_35, %c0_36] : memref<3x32x48xbf16, #tpu.memory_space<vmem>>, vector<1x32x48xbf16>
    %89 = vector.shape_cast %88 : vector<1x32x48xbf16> to vector<32x48xbf16>
    %cst_37 = arith.constant dense<0.000000e+00> : vector<256x48xf32>
    %90 = tpu.matmul %87, %89, %cst_37 {dimension_numbers = #tpu.dot_dimension_numbers<[1], [0], [0], [1], [0, 0, 1, 1], [], []>} : vector<256x32xbf16>, vector<32x48xbf16>, vector<256x48xf32> -> vector<256x48xf32>
    %c2_38 = arith.constant 2 : index
    %c0_39 = arith.constant 0 : index
    %91 = vector.load %arg3[%c2_38, %c0_39] : memref<3x48xf32, #tpu.memory_space<vmem>>, vector<1x48xf32>
    %92 = vector.extract_strided_slice %90 {offsets = [0, 0], sizes = [256, 16], strides = [1, 1]} : vector<256x48xf32> to vector<256x16xf32>
    %93 = vector.extract_strided_slice %91 {offsets = [0, 0], sizes = [1, 16], strides = [1, 1]} : vector<1x48xf32> to vector<1x16xf32>
    %94 = vector.broadcast %93 : vector<1x16xf32> to vector<256x16xf32>
    %95 = arith.addf %92, %94 : vector<256x16xf32>
    %c2_40 = arith.constant 2 : index
    %c0_41 = arith.constant 0 : index
    %c0_42 = arith.constant 0 : index
    %96 = vector.load %arg5[%c2_40, %c0_41, %c0_42] : memref<3x3x32xf32, #tpu.memory_space<vmem>>, vector<1x3x32xf32>
    %97 = vector.shape_cast %96 : vector<1x3x32xf32> to vector<3x32xf32>
    %98 = arith.truncf %95 : vector<256x16xf32> to vector<256x16xbf16>
    %c2_43 = arith.constant 2 : index
    %c0_44 = arith.constant 0 : index
    %c0_45 = arith.constant 0 : index
    %99 = vector.load %arg4[%c2_43, %c0_44, %c0_45] : memref<3x16x32xbf16, #tpu.memory_space<vmem>>, vector<1x16x32xbf16>
    %100 = vector.shape_cast %99 : vector<1x16x32xbf16> to vector<16x32xbf16>
    %cst_46 = arith.constant dense<0.000000e+00> : vector<256x32xf32>
    %101 = tpu.matmul %98, %100, %cst_46 {dimension_numbers = #tpu.dot_dimension_numbers<[1], [0], [0], [1], [0, 0, 1, 1], [], []>} : vector<256x16xbf16>, vector<16x32xbf16>, vector<256x32xf32> -> vector<256x32xf32>
    %102 = vector.extract_strided_slice %97 {offsets = [0, 0], sizes = [1, 32], strides = [1, 1]} : vector<3x32xf32> to vector<1x32xf32>
    %103 = vector.broadcast %102 : vector<1x32xf32> to vector<256x32xf32>
    %104 = arith.addf %101, %103 : vector<256x32xf32>
    %105 = arith.addf %86, %104 : vector<256x32xf32>
    %cst_47 = arith.constant dense<0.000000e+00> : vector<256xf32>
    %106 = vector.multi_reduction <add>, %105, %cst_47 [1] : vector<256x32xf32> to vector<256xf32>
    %107 = vector.shape_cast %106 : vector<256xf32> to vector<256x1xf32>
    %cst_48 = arith.constant 3.200000e+01 : f32
    %108 = vector.broadcast %cst_48 : f32 to vector<256x1xf32>
    %109 = arith.divf %107, %108 : vector<256x1xf32>
    %110 = vector.broadcast %109 : vector<256x1xf32> to vector<256x32xf32>
    %111 = arith.subf %105, %110 : vector<256x32xf32>
    %112 = arith.mulf %111, %111 : vector<256x32xf32>
    %cst_49 = arith.constant dense<0.000000e+00> : vector<256xf32>
    %113 = vector.multi_reduction <add>, %112, %cst_49 [1] : vector<256x32xf32> to vector<256xf32>
    %114 = vector.shape_cast %113 : vector<256xf32> to vector<256x1xf32>
    %cst_50 = arith.constant 3.200000e+01 : f32
    %115 = vector.broadcast %cst_50 : f32 to vector<256x1xf32>
    %116 = arith.divf %114, %115 : vector<256x1xf32>
    %117 = vector.broadcast %109 : vector<256x1xf32> to vector<256x32xf32>
    %118 = arith.subf %105, %117 : vector<256x32xf32>
    %cst_51 = arith.constant 9.99999974E-6 : f32
    %119 = vector.broadcast %cst_51 : f32 to vector<256x1xf32>
    %120 = arith.addf %116, %119 : vector<256x1xf32>
    %121 = math.rsqrt %120 : vector<256x1xf32>
    %122 = vector.broadcast %121 : vector<256x1xf32> to vector<256x32xf32>
    %123 = arith.mulf %118, %122 : vector<256x32xf32>
    %124 = vector.extract_strided_slice %97 {offsets = [1, 0], sizes = [1, 32], strides = [1, 1]} : vector<3x32xf32> to vector<1x32xf32>
    %125 = vector.broadcast %124 : vector<1x32xf32> to vector<256x32xf32>
    %126 = arith.mulf %123, %125 : vector<256x32xf32>
    %127 = vector.extract_strided_slice %97 {offsets = [2, 0], sizes = [1, 32], strides = [1, 1]} : vector<3x32xf32> to vector<1x32xf32>
    %128 = vector.broadcast %127 : vector<1x32xf32> to vector<256x32xf32>
    %129 = arith.addf %126, %128 : vector<256x32xf32>
    %c0_52 = arith.constant 0 : index
    %c0_53 = arith.constant 0 : index
    %130 = vector.load %arg6[%c0_52, %c0_53] : memref<256x32xf32, #tpu.memory_space<vmem>>, vector<256x32xf32>
    tpu.vector_store %arg6[%c0_52, %c0_53], %129 {strides = array<i32>} : memref<256x32xf32, #tpu.memory_space<vmem>>, vector<256x32xf32>,
    return
  }
  func.func @transform_0(%arg0: i32) -> (i32, i32) {
    %c0_i32 = arith.constant 0 : i32
    %c0_i32_0 = arith.constant 0 : i32
    return %arg0, %c0_i32 : i32, i32
  }
  func.func @transform_1(%arg0: i32) -> (i32, i32, i32) {
    %c0_i32 = arith.constant 0 : i32
    %c0_i32_0 = arith.constant 0 : i32
    %c0_i32_1 = arith.constant 0 : i32
    %c0_i32_2 = arith.constant 0 : i32
    return %c0_i32, %c0_i32_0, %c0_i32_1 : i32, i32, i32
  }
  func.func @transform_2(%arg0: i32) -> (i32, i32) {
    %c0_i32 = arith.constant 0 : i32
    %c0_i32_0 = arith.constant 0 : i32
    %c0_i32_1 = arith.constant 0 : i32
    return %c0_i32, %c0_i32_0 : i32, i32
  }
  func.func @transform_3(%arg0: i32) -> (i32, i32, i32) {
    %c0_i32 = arith.constant 0 : i32
    %c0_i32_0 = arith.constant 0 : i32
    %c0_i32_1 = arith.constant 0 : i32
    %c0_i32_2 = arith.constant 0 : i32
    return %c0_i32, %c0_i32_0, %c0_i32_1 : i32, i32, i32
  }
  func.func @transform_4(%arg0: i32) -> (i32, i32, i32) {
    %c0_i32 = arith.constant 0 : i32
    %c0_i32_0 = arith.constant 0 : i32
    %c0_i32_1 = arith.constant 0 : i32
    %c0_i32_2 = arith.constant 0 : i32
    return %c0_i32, %c0_i32_0, %c0_i32_1 : i32, i32, i32
  }
  func.func @transform_5(%arg0: i32) -> (i32, i32) {
    %c0_i32 = arith.constant 0 : i32
    %c0_i32_0 = arith.constant 0 : i32
    return %arg0, %c0_i32 : i32, i32
  }
}

</mosaic_0001>

<bundles_post_ra>
// kernel: residual_dense_block_attention.1
= control target key start
LH: loop header
LB: loop body
LE: loop exit
PB: predicated region body
PF: predicated region fallthrough
CT: control target
= control target key end

     0   :  { %s4291_s18 = smov 0   ;;  %s6985_s0 = inlined_call_operand.vmem [shape: f32[512,32], index: 0, kind: input, shape index: {}]   ;;  %s6986_s1 = inlined_call_operand.vmem [shape: bf16[3,32,48], index: 1, kind: input, shape index: {}]   ;;  %s6987_s2 = inlined_call_operand.vmem [shape: f32[3,48], index: 2, kind: input, shape index: {}]   ;;  %s6988_s3 = inlined_call_operand.vmem [shape: bf16[3,16,32], index: 3, kind: input, shape index: {}]   ;;  %s6989_s4 = inlined_call_operand.vmem [shape: f32[3,3,32], index: 4, kind: input, shape index: {}]   ;;  %s6990_s5 = inlined_call_operand.vmem [shape: f32[512,32], index: 5, kind: output, shape index: {}]  }
   0x1 LB: > { %s3868_s19 = sadd.s32 4294967295, %s4258_s18   ;;  %p3872_p0 = scmp.ge.s32.totalorder %s4258_s18, 1  ;;  %s4258_s18 = sphi %s4291_s18, %s15_s18  }
   0x2   : > { %p188_p1 = scmp.lt.s32.totalorder %s4258_s18, 3 }
   0x4   : > { %p189_p2 = pnand %p3872_p0, %p188_p1 }
   0x6   : > { %192 = sbr.rel (%p189_p2) target bundleno = 2746 (0xaba), region = 40 }
   0xb   : > { %v4026_v0 = vld [vmem:[%s6986_s1 + $0x8] sm:$0xff]  ;;  %s3873_s22 = sshll.u32 %s3868_s19, 5  ;;  %v4027_v1 = vld [vmem:[%s6988_s3] sm:$0xff]  ;;  %vm293_vm0 = vcmask 261120   ;;  %vm491_vm1 = vcmask 130048  }
   0xc   : > { %p217_p3 = scmp.lt.s32.totalorder %s3873_s22, 63  ;;  %348 = vmatpush.bf16.msra.mxu0 %v4026_v0  ;;  %v4025_v2 = vld [vmem:[%s6986_s1] sm:$0xff]  ;;  %4034 = vmatpush.bf16.msra.mxu1 %v4027_v1 }
   0xd   : > { %v4402_v31 = vld [vmem:[%s6987_s2] ss:$0 sm:$0xff] }
   0xe   : > { %s7034_s22 = smov (!%p217_p3, %s3873_s22), 63 }
   0xf   : > { %s3874_s27 = sshll.u32 %s7034_s22, 3 }
  0x10   : > { %349 = vmatpush.bf16.msra.mxu0 %v4025_v2  ;;  %s4316_s30 = scalar_lea.vmem %s6985_s0, %s3874_s27  ;;  %s6449_s12 = scalar_lea.vmem %s6990_s5, %s3874_s27 }
  0x11   : > { %v4319_v3 = vld [vmem:[%s4316_s30] sm:$0xff]  ;;  %v4322_v4 = vld [vmem:[%s4316_s30 + $0x8] sm:$0xff]  ;;  %v4328_v6 = vld [vmem:[%s4316_s30 + $0x10] sm:$0xff] }
  0x12   : > { %v261_v5 = vpack.c.bf16 %v4322_v4, %v4319_v3  ;;  %v4331_v7 = vld [vmem:[%s4316_s30 + $0x18] sm:$0xff]  ;;  %v4337_v9 = vld [vmem:[%s4316_s30 + $0x20] sm:$0xff]  ;;  %v4340_v10 = vld [vmem:[%s4316_s30 + $0x28] sm:$0xff] }
  0x13   : > { %v262_v8 = vpack.c.bf16 %v4331_v7, %v4328_v6  ;;  %v263_v11 = vpack.c.bf16 %v4340_v10, %v4337_v9  ;;  %v4346_v12 = vld [vmem:[%s4316_s30 + $0x30] sm:$0xff]  ;;  %v4349_v13 = vld [vmem:[%s4316_s30 + $0x38] sm:$0xff]  ;;  %v4355_v15 = vld [vmem:[%s4316_s30 + $0x40] sm:$0xff] }
  0x14   : > { %547 = vmatpush.bf16.msrb.mxu0 %v4027_v1  ;;  %v264_v14 = vpack.c.bf16 %v4349_v13, %v4346_v12  ;;  %v4358_v16 = vld [vmem:[%s4316_s30 + $0x48] sm:$0xff]  ;;  %v4364_v18 = vld [vmem:[%s4316_s30 + $0x50] sm:$0xff]  ;;  %v4367_v19 = vld [vmem:[%s4316_s30 + $0x58] sm:$0xff] }
  0x15   : > { %3885 = vmatmul.msk.bf16.vlgmr.msra.gmra.mxu0 %vm293_vm0, %v261_v5  ;;  %v265_v17 = vpack.c.bf16 %v4358_v16, %v4355_v15  ;;  %v266_v20 = vpack.c.bf16 %v4367_v19, %v4364_v18  ;;  %v4373_v21 = vld [vmem:[%s4316_s30 + $0x60] sm:$0xff]  ;;  %v4376_v22 = vld [vmem:[%s4316_s30 + $0x68] sm:$0xff]  ;;  %v4382_v24 = vld [vmem:[%s4316_s30 + $0x70] sm:$0xff] }
  0x16   : > { %v267_v23 = vpack.c.bf16 %v4376_v22, %v4373_v21  ;;  %v4385_v25 = vld [vmem:[%s4316_s30 + $0x78] sm:$0xff]  ;;  %v4391_v27 = vld [vmem:[%s4316_s30 + $0x80] sm:$0xff]  ;;  %v4394_v28 = vld [vmem:[%s4316_s30 + $0x88] sm:$0xff] }
  0x17   : > { %v268_v26 = vpack.c.bf16 %v4385_v25, %v4382_v24  ;;  %v269_v29 = vpack.c.bf16 %v4394_v28, %v4391_v27  ;;  %v4413_v36 = vld [vmem:[%s4316_s30 + $0x90] sm:$0xff]  ;;  %v4416_v37 = vld [vmem:[%s4316_s30 + $0x98] sm:$0xff]  ;;  %v4430_v44 = vld [vmem:[%s4316_s30 + $0xa0] sm:$0xff] }
  0x18   : > { %v270_v38 = vpack.c.bf16 %v4416_v37, %v4413_v36  ;;  %v4433_v45 = vld [vmem:[%s4316_s30 + $0xa8] sm:$0xff]  ;;  %v4447_v52 = vld [vmem:[%s4316_s30 + $0xb0] sm:$0xff]  ;;  %v252_v53 = vld [vmem:[%s4316_s30 + $0xb8] sm:$0xff] }
  0x19   : > { %v271_v46 = vpack.c.bf16 %v4433_v45, %v4430_v44  ;;  %v272_v54 = vpack.c.bf16 %v252_v53, %v4447_v52  ;;  %v253_v60 = vld [vmem:[%s4316_s30 + $0xc0] sm:$0xff]  ;;  %v254_v61 = vld [vmem:[%s4316_s30 + $0xc8] sm:$0xff]  ;;  %v259_v53 = vld [vmem:[%s4316_s30 + $0xf0] sm:$0xff] }
  0x1a   : > { %v273_v62 = vpack.c.bf16 %v254_v61, %v253_v60 }
  0x25   : > { %3886 = vmatmul.msk.bf16.gmra.mxu0 %vm293_vm0, %v262_v8  ;;  %v255_v8 = vld [vmem:[%s4316_s30 + $0xd0] sm:$0xff] }
  0x35   : > { %3887 = vmatmul.msk.bf16.gmra.mxu0 %vm293_vm0, %v263_v11  ;;  %v256_v11 = vld [vmem:[%s4316_s30 + $0xd8] sm:$0xff] }
  0x45   : > { %3888 = vmatmul.msk.bf16.gmra.mxu0 %vm293_vm0, %v264_v14  ;;  %v274_v14 = vpack.c.bf16 %v256_v11, %v255_v8 }
  0x55   : > { %3889 = vmatmul.msk.bf16.gmra.mxu0 %vm293_vm0, %v265_v17 }
  0x65   : > { %3890 = vmatmul.msk.bf16.gmra.mxu0 %vm293_vm0, %v266_v20 }
  0x75   : > { %3891 = vmatmul.msk.bf16.gmra.mxu0 %vm293_vm0, %v267_v23 }
  0x85   : > { %3892 = vmatmul.msk.bf16.gmra.mxu0 %vm293_vm0, %v268_v26 }
  0x92   : > { %v351_v30 = vpop.f32.mrf.mxu0 }
  0x93   : > { %v4405_v33 = vadd.f32 %v4402_v31, %v351_v30  ;;  %v257_v30 = vld [vmem:[%s4316_s30 + $0xe0] sm:$0xff] }
  0x95   : > { %3893 = vmatmul.msk.bf16.gmra.mxu0 %vm293_vm0, %v269_v29 }
  0x9a   : > { %v353_v32 = vpop.f32.mrf.mxu0 }
  0x9b   : > { %v4408_v34 = vadd.f32 %v4402_v31, %v353_v32  ;;  %v258_v32 = vld [vmem:[%s4316_s30 + $0xe8] sm:$0xff] }
  0x9d   : > { %v466_v35 = vpack.c.bf16 %v4408_v34, %v4405_v33 }
  0xa2   : > { %v356_v39 = vpop.f32.mrf.mxu0 }
  0xa3   : > { %v4422_v41 = vadd.f32 %v4402_v31, %v356_v39 }
  0xa5   : > { %3894 = vmatmul.msk.bf16.gmra.mxu0 %vm293_vm0, %v270_v38  ;;  %v275_v38 = vpack.c.bf16 %v258_v32, %v257_v30 }
  0xaa   : > { %v358_v40 = vpop.f32.mrf.mxu0 }
  0xab   : > { %v4425_v42 = vadd.f32 %v4402_v31, %v358_v40 }
  0xad   : > { %v467_v43 = vpack.c.bf16 %v4425_v42, %v4422_v41 }
  0xb2   : > { %v361_v47 = vpop.f32.mrf.mxu0 }
  0xb3   : > { %v4439_v49 = vadd.f32 %v4402_v31, %v361_v47 }
  0xb5   : > { %3895 = vmatmul.msk.bf16.gmra.mxu0 %vm293_vm0, %v271_v46 }
  0xba   : > { %v363_v48 = vpop.f32.mrf.mxu0 }
  0xbb   : > { %v4442_v50 = vadd.f32 %v4402_v31, %v363_v48 }
  0xbd   : > { %v468_v51 = vpack.c.bf16 %v4442_v50, %v4439_v49 }
  0xc2   : > { %v366_v55 = vpop.f32.mrf.mxu0 }
  0xc3   : > { %v4453_v57 = vadd.f32 %v4402_v31, %v366_v55 }
  0xc5   : > { %3896 = vmatmul.msk.bf16.gmra.mxu0 %vm293_vm0, %v272_v54  ;;  %v260_v54 = vld [vmem:[%s4316_s30 + $0xf8] sm:$0xff] }
  0xc6   : > { %v276_v55 = vpack.c.bf16 %v260_v54, %v259_v53 }
  0xca   : > { %v368_v56 = vpop.f32.mrf.mxu0 }
  0xcb   : > { %v4456_v58 = vadd.f32 %v4402_v31, %v368_v56 }
  0xcd   : > { %v469_v59 = vpack.c.bf16 %v4456_v58, %v4453_v57 }
  0xd2   : > { %v371_v63 = vpop.f32.mrf.mxu0 }
  0xd3   : > { %v441_v1 = vadd.f32 %v4402_v31, %v371_v63 }
  0xd5   : > { %3897 = vmatmul.msk.bf16.gmra.mxu0 %vm293_vm0, %v273_v62 }
  0xda   : > { %v373_v0 = vpop.f32.mrf.mxu0 }
  0xdb   : > { %v442_v2 = vadd.f32 %v4402_v31, %v373_v0 }
  0xdd   : > { %v470_v5 = vpack.c.bf16 %v442_v2, %v441_v1 }
  0xe2   : > { %v376_v17 = vpop.f32.mrf.mxu0 }
  0xe3   : > { %v443_v23 = vadd.f32 %v4402_v31, %v376_v17 }
  0xe5   : > { %3898 = vmatmul.msk.bf16.gmra.mxu0 %vm293_vm0, %v274_v14 }
  0xea   : > { %v378_v20 = vpop.f32.mrf.mxu0 }
  0xeb   : > { %v444_v26 = vadd.f32 %v4402_v31, %v378_v20 }
  0xed   : > { %v471_v29 = vpack.c.bf16 %v444_v26, %v443_v23 }
  0xf2   : > { %v381_v39 = vpop.f32.mrf.mxu0 }
  0xf3   : > { %v445_v46 = vadd.f32 %v4402_v31, %v381_v39 }
  0xf5   : > { %3899 = vmatmul.msk.bf16.gmra.mxu0 %vm293_vm0, %v275_v38 }
  0xfa   : > { %v383_v40 = vpop.f32.mrf.mxu0 }
  0xfb   : > { %v446_v47 = vadd.f32 %v4402_v31, %v383_v40 }
  0xfd   : > { %v472_v48 = vpack.c.bf16 %v446_v47, %v445_v46 }
 0x102   : > { %v386_v56 = vpop.f32.mrf.mxu0 }
 0x103   : > { %v447_v58 = vadd.f32 %v4402_v31, %v386_v56 }
 0x105   : > { %3900 = vmatmul.msk.bf16.gmra.mxu0 %vm293_vm0, %v276_v55 }
 0x10a   : > { %v388_v57 = vpop.f32.mrf.mxu0 }
 0x10b   : > { %v448_v60 = vadd.f32 %v4402_v31, %v388_v57 }
 0x10d   : > { %v473_v61 = vpack.c.bf16 %v448_v60, %v447_v58 }
 0x10f   : > { %3912 = vmatmul.msk.bf16.vlgmr.msra.gmra.mxu1 %vm491_vm1, %v473_v61 }
 0x112   : > { %v391_v62 = vpop.f32.mrf.mxu0 }
 0x113   : > { %v449_v0 = vadd.f32 %v4402_v31, %v391_v62 }
 0x115   : > { %3905 = vmatmul.msk.bf16.vlgmr.msrb.gmra.mxu0 %vm491_vm1, %v466_v35 }
 0x11a   : > { %v393_v63 = vpop.f32.mrf.mxu0 }
 0x11b   : > { %v450_v1 = vadd.f32 %v4402_v31, %v393_v63  ;;  %v4523_v63 = vld [vmem:[%s6989_s4] sm:$0x7] }
 0x11d   : > { %v474_v2 = vpack.c.bf16 %v450_v1, %v449_v0 }
 0x11f   : > { %3913 = vmatmul.msk.bf16.gmra.mxu1 %vm491_vm1, %v474_v2 }
 0x122   : > { %v396_v8 = vpop.f32.mrf.mxu0 }
 0x123   : > { %v451_v14 = vadd.f32 %v4402_v31, %v396_v8 }
 0x125   : > { %3906 = vmatmul.msk.bf16.gmra.mxu0 %vm491_vm1, %v467_v43 }
 0x12a   : > { %v398_v11 = vpop.f32.mrf.mxu0 }
 0x12b   : > { %v452_v33 = vadd.f32 %v4402_v31, %v398_v11 }
 0x12d   : > { %v475_v34 = vpack.c.bf16 %v452_v33, %v451_v14 }
 0x12f   : > { %3914 = vmatmul.msk.bf16.gmra.mxu1 %vm491_vm1, %v475_v34 }
 0x132   : > { %v401_v35 = vpop.f32.mrf.mxu0 }
 0x133   : > { %v453_v20 = vadd.f32 %v4402_v31, %v401_v35 }
 0x135   : > { %3907 = vmatmul.msk.bf16.gmra.mxu0 %vm491_vm1, %v468_v51 }
 0x13a   : > { %v403_v17 = vpop.f32.mrf.mxu0 }
 0x13b   : > { %v454_v41 = vadd.f32 %v4402_v31, %v403_v17 }
 0x13d   : > { %v476_v42 = vpack.c.bf16 %v454_v41, %v453_v20 }
 0x13f   : > { %3915 = vmatmul.msk.bf16.gmra.mxu1 %vm491_vm1, %v476_v42 }
 0x142   : > { %v406_v43 = vpop.f32.mrf.mxu0 }
 0x143   : > { %v455_v26 = vadd.f32 %v4402_v31, %v406_v43 }
 0x145   : > { %3908 = vmatmul.msk.bf16.gmra.mxu0 %vm491_vm1, %v469_v59 }
 0x14a   : > { %v408_v23 = vpop.f32.mrf.mxu0 }
 0x14b   : > { %v456_v30 = vadd.f32 %v4402_v31, %v408_v23 }
 0x14d   : > { %v477_v32 = vpack.c.bf16 %v456_v30, %v455_v26 }
 0x14f   : > { %3916 = vmatmul.msk.bf16.gmra.mxu1 %vm491_vm1, %v477_v32 }
 0x152   : > { %v411_v49 = vpop.f32.mrf.mxu0 }
 0x153   : > { %v457_v51 = vadd.f32 %v4402_v31, %v411_v49 }
 0x155   : > { %3909 = vmatmul.msk.bf16.gmra.mxu0 %vm491_vm1, %v470_v5 }
 0x15a   : > { %v413_v50 = vpop.f32.mrf.mxu0 }
 0x15b   : > { %v458_v38 = vadd.f32 %v4402_v31, %v413_v50 }
 0x15d   : > { %v478_v39 = vpack.c.bf16 %v458_v38, %v457_v51 }
 0x15f   : > { %3917 = vmatmul.msk.bf16.gmra.mxu1 %vm491_vm1, %v478_v39  ;;  %v4260_v39 = vmov 32.0  }
 0x160   : > { %4048 = vrcp.f32 %v4260_v39 }
 0x162   : > { %v416_v59 = vpop.f32.mrf.mxu0 }
 0x163   : > { %v459_v46 = vadd.f32 %v4402_v31, %v416_v59 }
 0x165   : > { %3910 = vmatmul.msk.bf16.gmra.mxu0 %vm491_vm1, %v471_v29 }
 0x166   : > { %v4049_v59 = vpop.eup %4048 }
 0x167   : > { %vm762_vm2 = vweird.f32 %v4049_v59 }
 0x16a   : > { %v418_v40 = vpop.f32.mrf.mxu0 }
 0x16b   : > { %v460_v47 = vadd.f32 %v4402_v31, %v418_v40  ;;  %v758_v40 = vmul.f32 32.0, %v4049_v59 }
 0x16d   : > { %v479_v53 = vpack.c.bf16 %v460_v47, %v459_v46 }
 0x16f   : > { %3918 = vmatmul.msk.bf16.gmra.mxu1 %vm491_vm1, %v479_v53 }
 0x172   : > { %v421_v5 = vpop.f32.mrf.mxu0 }
 0x173   : > { %v461_v55 = vadd.f32 %v4402_v31, %v421_v5 }
 0x175   : > { %3911 = vmatmul.msk.bf16.gmra.mxu0 %vm491_vm1, %v472_v48  ;;  %v4527_v48 = vperm.slane %v4523_v63, 0 }
 0x17a   : > { %v423_v54 = vpop.f32.mrf.mxu0 }
 0x17b   : > { %v462_v56 = vadd.f32 %v4402_v31, %v423_v54 }
 0x17d   : > { %v480_v57 = vpack.c.bf16 %v462_v56, %v461_v55 }
 0x17f   : > { %3919 = vmatmul.msk.bf16.gmra.mxu1 %vm491_vm1, %v480_v57 }
 0x182   : > { %v426_v29 = vpop.f32.mrf.mxu0 }
 0x183   : > { %v463_v60 = vadd.f32 %v4402_v31, %v426_v29 }
 0x18a   : > { %v428_v58 = vpop.f32.mrf.mxu0 }
 0x18b   : > { %v464_v61 = vadd.f32 %v4402_v31, %v428_v58 }
 0x18d   : > { %v481_v62 = vpack.c.bf16 %v464_v61, %v463_v60 }
 0x18f   : > { %3920 = vmatmul.msk.bf16.gmra.mxu1 %vm491_vm1, %v481_v62 }
 0x192   : > { %v549_v0 = vpop.f32.mrf.mxu0 }
 0x193   : > { %v550_v1 = vadd.f32 %v549_v0, %v4527_v48 }
 0x195   : > { %v629_v2 = vadd.f32 %v550_v1, %v4319_v3 }
 0x197   : > { %v661_v8 = vsel %vm293_vm0, %v629_v2, 0.0 }
 0x198   : > { %662 = vadd.xlane.f32.xlu0 %v661_v8 }
 0x19a   : > { %v551_v31 = vpop.f32.mrf.mxu0 }
 0x19b   : > { %v552_v11 = vadd.f32 %v551_v31, %v4527_v48 }
 0x19d   : > { %v630_v14 = vadd.f32 %v552_v11, %v4322_v4 }
 0x19f   : > { %v664_v33 = vsel %vm293_vm0, %v630_v14, 0.0 }
 0x1a0   : > { %665 = vadd.xlane.f32.xlu0 %v664_v33 }
 0x1a2   : > { %v554_v34 = vpop.f32.mrf.mxu0 }
 0x1a3   : > { %v555_v35 = vadd.f32 %v554_v34, %v4527_v48 }
 0x1a5   : > { %v631_v17 = vadd.f32 %v555_v35, %v4328_v6 }
 0x1a7   : > { %v667_v20 = vsel %vm293_vm0, %v631_v17, 0.0 }
 0x1a8   : > { %668 = vadd.xlane.f32.xlu1 %v667_v20 }
 0x1aa   : > { %v556_v3 = vpop.f32.mrf.mxu0 }
 0x1ab   : > { %v557_v41 = vadd.f32 %v556_v3, %v4527_v48 }
 0x1ad   : > { %v632_v42 = vadd.f32 %v557_v41, %v4331_v7 }
 0x1af   : > { %v670_v43 = vsel %vm293_vm0, %v632_v42, 0.0 }
 0x1b0   : > { %671 = vadd.xlane.f32.xlu1 %v670_v43 }
 0x1b2   : > { %v559_v4 = vpop.f32.mrf.mxu0 }
 0x1b3   : > { %v560_v23 = vadd.f32 %v559_v4, %v4527_v48 }
 0x1b5   : > { %v4543_v26 = vadd.f32 %v560_v23, %v4337_v9 }
 0x1b7   : > { %v673_v6 = vsel %vm293_vm0, %v4543_v26, 0.0 }
 0x1b8   : > { %674 = vadd.xlane.f32.xlu2 %v673_v6 }
 0x1ba   : > { %v561_v30 = vpop.f32.mrf.mxu0 }
 0x1bb   : > { %v562_v32 = vadd.f32 %v561_v30, %v4527_v48 }
 0x1bd   : > { %v4549_v49 = vadd.f32 %v562_v32, %v4340_v10  ;;  %v759_v10 = vsub.f32 1.0, %v758_v40 }
 0x1bf   : > { %v676_v7 = vsel %vm293_vm0, %v4549_v49, 0.0  ;;  %v760_v46 = vmul.f32 %v4049_v59, %v759_v10 }
 0x1c0   : > { %677 = vadd.xlane.f32.xlu2 %v676_v7 }
 0x1c1   : > { %v761_v53 = vadd.f32 %v4049_v59, %v760_v46 }
 0x1c2   : > { %v564_v50 = vpop.f32.mrf.mxu0 }
 0x1c3   : > { %v565_v51 = vadd.f32 %v564_v50, %v4527_v48  ;;  %v4559_v5 = vsel %vm762_vm2, %v4049_v59, %v761_v53 }
 0x1c5   : > { %v4555_v9 = vadd.f32 %v565_v51, %v4346_v12 }
 0x1c7   : > { %v679_v38 = vsel %vm293_vm0, %v4555_v9, 0.0 }
 0x1c8   : > { %680 = vadd.xlane.f32.xlu2 %v679_v38 }
 0x1ca   : > { %v566_v47 = vpop.f32.mrf.mxu0 }
 0x1cb   : > { %v567_v29 = vadd.f32 %v566_v47, %v4527_v48 }
 0x1cd   : > { %v4572_v0 = vadd.f32 %v567_v29, %v4349_v13 }
 0x1cf   : > { %v682_v31 = vsel %vm293_vm0, %v4572_v0, 0.0 }
 0x1d2   : > { %v569_v12 = vpop.f32.mrf.mxu0 }
 0x1d3   : > { %v570_v8 = vadd.f32 %v569_v12, %v4527_v48 }
 0x1d5   : > { %v4584_v13 = vadd.f32 %v570_v8, %v4355_v15 }
 0x1d7   : > { %v685_v41 = vsel %vm293_vm0, %v4584_v13, 0.0 }
 0x1da   : > { %v571_v1 = vpop.f32.mrf.mxu0 }
 0x1db   : > { %v572_v3 = vadd.f32 %v571_v1, %v4527_v48 }
 0x1dd   : > { %v4596_v15 = vadd.f32 %v572_v3, %v4358_v16  ;;  %v4028_v3 = vld [vmem:[%s6986_s1 + $0x10] sm:$0xff] }
 0x1df   : > { %v688_v7 = vsel %vm293_vm0, %v4596_v15, 0.0 }
 0x1e2   : > { %v574_v20 = vpop.f32.mrf.mxu0 }
 0x1e3   : > { %v575_v30 = vadd.f32 %v574_v20, %v4527_v48 }
 0x1e5   : > { %v4609_v16 = vadd.f32 %v575_v30, %v4364_v18 }
 0x1e7   : > { %v691_v10 = vsel %vm293_vm0, %v4609_v16, 0.0 }
 0x1ea   : > { %v576_v50 = vpop.f32.mrf.mxu0 }
 0x1eb   : > { %v577_v59 = vadd.f32 %v576_v50, %v4527_v48 }
 0x1ed   : > { %v4622_v18 = vadd.f32 %v577_v59, %v4367_v19 }
 0x1ef   : > { %v694_v12 = vsel %vm293_vm0, %v4622_v18, 0.0 }
 0x20b   : > { %v663_v54 = vpop.xlane.xlu0 %662 }
 0x20c   : > { %v764_v55 = vmul.f32 %v4559_v5, %v663_v54 }
 0x20e   : > { %v4562_v56 = vsub.f32 %v629_v2, %v764_v55 }
 0x210   : > { %v828_v57 = vmul.f32 %v4562_v56, %v4562_v56 }
 0x212   : > { %v860_v58 = vsel %vm293_vm0, %v828_v57, 0.0 }
 0x213   : > { %861 = vadd.xlane.f32.xlu0 %v860_v58  ;;  %v666_v60 = vpop.xlane.xlu0 %665 }
 0x214   : > { %v765_v61 = vmul.f32 %v4559_v5, %v666_v60 }
 0x216   : > { %v4569_v62 = vsub.f32 %v630_v14, %v765_v61 }
 0x218   : > { %v829_v2 = vmul.f32 %v4569_v62, %v4569_v62 }
 0x21a   : > { %v863_v11 = vsel %vm293_vm0, %v829_v2, 0.0 }
 0x21b   : > { %v669_v33 = vpop.xlane.xlu1 %668  ;;  %683 = vadd.xlane.f32.xlu0 %v682_v31  ;;  %864 = vadd.xlane.f32.xlu1 %v863_v11 }
 0x21c   : > { %v766_v14 = vmul.f32 %v4559_v5, %v669_v33 }
 0x21e   : > { %v4581_v34 = vsub.f32 %v631_v17, %v766_v14 }
 0x220   : > { %v830_v35 = vmul.f32 %v4581_v34, %v4581_v34 }
 0x222   : > { %v866_v43 = vsel %vm293_vm0, %v830_v35, 0.0  ;;  %v4029_v35 = vld [vmem:[%s6986_s1 + $0x18] sm:$0xff] }
 0x223   : > { %v672_v4 = vpop.xlane.xlu1 %671  ;;  %686 = vadd.xlane.f32.xlu0 %v685_v41  ;;  %867 = vadd.xlane.f32.xlu1 %v866_v43 }
 0x224   : > { %v767_v17 = vmul.f32 %v4559_v5, %v672_v4  ;;  %1525 = vmatpush.bf16.msra.mxu2 %v4029_v35 }
 0x226   : > { %v4593_v23 = vsub.f32 %v632_v42, %v767_v17 }
 0x228   : > { %v831_v6 = vmul.f32 %v4593_v23, %v4593_v23  ;;  %1526 = vmatpush.bf16.msra.mxu2 %v4028_v3 }
 0x22a   : > { %v869_v32 = vsel %vm293_vm0, %v831_v6, 0.0 }
 0x22b   : > { %v675_v51 = vpop.xlane.xlu2 %674  ;;  %870 = vadd.xlane.f32.xlu2 %v869_v32  ;;  %689 = vadd.xlane.f32.xlu1 %v688_v7 }
 0x22c   : > { %v768_v42 = vmul.f32 %v4559_v5, %v675_v51 }
 0x22e   : > { %v4606_v38 = vsub.f32 %v4543_v26, %v768_v42  ;;  %v579_v26 = vpop.f32.mrf.mxu0 }
 0x22f   : > { %v580_v55 = vadd.f32 %v579_v26, %v4527_v48 }
 0x230   : > { %v832_v39 = vmul.f32 %v4606_v38, %v4606_v38 }
 0x231   : > { %v4635_v19 = vadd.f32 %v580_v55, %v4373_v21 }
 0x232   : > { %v872_v40 = vsel %vm293_vm0, %v832_v39, 0.0 }
 0x233   : > { %v678_v46 = vpop.xlane.xlu2 %677  ;;  %873 = vadd.xlane.f32.xlu2 %v872_v40  ;;  %692 = vadd.xlane.f32.xlu1 %v691_v10  ;;  %v697_v2 = vsel %vm293_vm0, %v4635_v19, 0.0 }
 0x234   : > { %v769_v47 = vmul.f32 %v4559_v5, %v678_v46 }
 0x236   : > { %v4619_v53 = vsub.f32 %v4549_v49, %v769_v47  ;;  %v581_v60 = vpop.f32.mrf.mxu0 }
 0x237   : > { %v582_v1 = vadd.f32 %v581_v60, %v4527_v48 }
 0x238   : > { %v833_v54 = vmul.f32 %v4619_v53, %v4619_v53 }
 0x239   : > { %v4644_v31 = vadd.f32 %v582_v1, %v4376_v22 }
 0x23a   : > { %v875_v57 = vsel %vm293_vm0, %v833_v54, 0.0 }
 0x23b   : > { %v681_v29 = vpop.xlane.xlu2 %680  ;;  %695 = vadd.xlane.f32.xlu2 %v694_v12  ;;  %876 = vadd.xlane.f32.xlu0 %v875_v57  ;;  %v700_v11 = vsel %vm293_vm0, %v4644_v31, 0.0 }
 0x23c   : > { %v770_v58 = vmul.f32 %v4559_v5, %v681_v29 }
 0x23e   : > { %v4632_v49 = vsub.f32 %v4555_v9, %v770_v58  ;;  %v584_v9 = vpop.f32.mrf.mxu1 }
 0x23f   : > { %v585_v21 = vadd.f32 %v584_v9, %v4527_v48 }
 0x240   : > { %v834_v61 = vmul.f32 %v4632_v49, %v4632_v49 }
 0x241   : > { %v4650_v33 = vadd.f32 %v585_v21, %v4382_v24 }
 0x242   : > { %v878_v8 = vsel %vm293_vm0, %v834_v61, 0.0 }
 0x243   : > { %698 = vadd.xlane.f32.xlu2 %v697_v2  ;;  %879 = vadd.xlane.f32.xlu0 %v878_v8  ;;  %v703_v14 = vsel %vm293_vm0, %v4650_v33, 0.0 }
 0x246   : > { %v586_v24 = vpop.f32.mrf.mxu1 }
 0x247   : > { %v587_v60 = vadd.f32 %v586_v24, %v4527_v48 }
 0x24b   : > { %701 = vadd.xlane.f32.xlu0 %v700_v11 }
 0x24e   : > { %v589_v39 = vpop.f32.mrf.mxu1 }
 0x253   : > { %704 = vadd.xlane.f32.xlu0 %v703_v14 }
 0x256   : > { %v591_v35 = vpop.f32.mrf.mxu1 }
 0x286   : > { %v862_v22 = vpop.xlane.xlu0 %861 }
 0x287   : > { %v956_v20 = vmul.f32 %v862_v22, %v4559_v5 }
 0x289   : > { %v988_v41 = vadd.f32 1e-05, %v956_v20  ;;  %v4690_v20 = vadd.f32 %v587_v60, %v4385_v25  ;;  %v594_v60 = vpop.f32.mrf.mxu1 }
 0x28b   : > { %4050 = vrsqrt.f32 %v988_v41  ;;  %vm1026_vm4 = vweird.f32 %v988_v41 }
 0x28e   : > { %v865_v43 = vpop.xlane.xlu1 %864  ;;  %v684_v4 = vpop.xlane.xlu0 %683 }
 0x28f   : > { %v957_v17 = vmul.f32 %v865_v43, %v4559_v5  ;;  %v771_v6 = vmul.f32 %v4559_v5, %v684_v4  ;;  %v4701_v4 = vperm.slane %v4523_v63, 1 }
 0x291   : > { %v4051_v30 = vpop.eup %4050  ;;  %v989_v32 = vadd.f32 1e-05, %v957_v17  ;;  %v4664_v7 = vsub.f32 %v4572_v0, %v771_v6 }
 0x292   : > { %v1021_v50 = vmul.f32 %v4051_v30, %v988_v41  ;;  %vm1027_vm3 = vweird.f32 %v4051_v30 }
 0x293   : > { %4052 = vrsqrt.f32 %v989_v32  ;;  %v835_v51 = vmul.f32 %v4664_v7, %v4664_v7  ;;  %vm4680_vm5 = vmor %vm1026_vm4, %vm1027_vm3  ;;  %vm1036_vm7 = vweird.f32 %v989_v32 }
 0x294   : > { %v1022_v42 = vmul.f32 %v4051_v30, %v1021_v50 }
 0x295   : > { %v881_v59 = vsel %vm293_vm0, %v835_v51, 0.0 }
 0x296   : > { %v1023_v40 = vmul.f32 0.5, %v1022_v42  ;;  %v868_v10 = vpop.xlane.xlu1 %867  ;;  %882 = vadd.xlane.f32.xlu1 %v881_v59  ;;  %v687_v46 = vpop.xlane.xlu0 %686  ;;  %v4716_v59 = vperm.slane %v4523_v63, 2 }
 0x297   : > { %v958_v47 = vmul.f32 %v868_v10, %v4559_v5  ;;  %v772_v26 = vmul.f32 %v4559_v5, %v687_v46 }
 0x298   : > { %v1024_v54 = vsub.f32 1.5, %v1023_v40 }
 0x299   : > { %v4053_v0 = vpop.eup %4052  ;;  %v4671_v55 = vadd.f32 1e-05, %v958_v47  ;;  %v4674_v12 = vsub.f32 %v4584_v13, %v772_v26 }
 0x29a   : > { %v1025_v57 = vmul.f32 %v4051_v30, %v1024_v54  ;;  %v1031_v29 = vmul.f32 %v4053_v0, %v989_v32  ;;  %vm1037_vm6 = vweird.f32 %v4053_v0 }
 0x29b   : > { %4054 = vrsqrt.f32 %v4671_v55  ;;  %v836_v58 = vmul.f32 %v4674_v12, %v4674_v12  ;;  %vm1038_vm8 = vmor %vm1036_vm7, %vm1037_vm6  ;;  %vm1046_vm10 = vweird.f32 %v4671_v55 }
 0x29c   : > { %v1032_v61 = vmul.f32 %v4053_v0, %v1031_v29  ;;  %v1029_v13 = vsel %vm4680_vm5, %v4051_v30, %v1025_v57  ;;  %v590_v30 = vadd.f32 %v589_v39, %v4527_v48 }
 0x29d   : > { %v884_v2 = vsel %vm293_vm0, %v836_v58, 0.0  ;;  %v1340_v43 = vmul.f32 %v1029_v13, %v4562_v56  ;;  %v706_v56 = vsel %vm293_vm0, %v4690_v20, 0.0 }
 0x29e   : > { %v1033_v8 = vmul.f32 0.5, %v1032_v61  ;;  %v871_v9 = vpop.xlane.xlu2 %870  ;;  %v690_v21 = vpop.xlane.xlu1 %689  ;;  %885 = vadd.xlane.f32.xlu1 %v884_v2  ;;  %v592_v2 = vadd.f32 %v591_v35, %v4527_v48 }
 0x29f   : > { %v959_v11 = vmul.f32 %v871_v9, %v4559_v5  ;;  %v773_v14 = vmul.f32 %v4559_v5, %v690_v21  ;;  %v1373_v42 = vmul.f32 %v4701_v4, %v1340_v43 }
 0x2a0   : > { %v1034_v22 = vsub.f32 1.5, %v1033_v8 }
 0x2a1   : > { %v4692_v3 = vpop.eup %4054  ;;  %v4694_v41 = vadd.f32 1e-05, %v959_v11  ;;  %v4697_v24 = vsub.f32 %v4596_v15, %v773_v14  ;;  %v4730_v29 = vadd.f32 %v4716_v59, %v1373_v42 }
 0x2a2   : > { %v1035_v17 = vmul.f32 %v4053_v0, %v1034_v22  ;;  %v1041_v6 = vmul.f32 %v4692_v3, %v4671_v55  ;;  %vm1047_vm9 = vweird.f32 %v4692_v3 }
 0x2a3   : > { %4056 = vrsqrt.f32 %v4694_v41  ;;  %v837_v25 = vmul.f32 %v4697_v24, %v4697_v24  ;;  %vm4745_vm11 = vmor %vm1046_vm10, %vm1047_vm9  ;;  %vm1056_vm13 = vweird.f32 %v4694_v41 }
 0x2a4   : > { %v1039_v15 = vsel %vm1038_vm8, %v4053_v0, %v1035_v17  ;;  %v1042_v50 = vmul.f32 %v4692_v3, %v1041_v6  ;;  %v4722_v0 = vadd.f32 %v590_v30, %v4391_v27  ;;  %v4759_v6 = vadd.f32 %v592_v2, %v4394_v28 }
 0x2a5   : > { %v887_v51 = vsel %vm293_vm0, %v837_v25, 0.0  ;;  %v1341_v32 = vmul.f32 %v1039_v15, %v4569_v62 }
 0x2a6   : > { %v1043_v40 = vmul.f32 0.5, %v1042_v50  ;;  %v874_v10 = vpop.xlane.xlu2 %873  ;;  %888 = vadd.xlane.f32.xlu2 %v887_v51  ;;  %v693_v46 = vpop.xlane.xlu1 %692  ;;  %707 = vadd.xlane.f32.xlu1 %v706_v56  ;;  %v709_v21 = vsel %vm293_vm0, %v4722_v0, 0.0 }
 0x2a7   : > { %v960_v39 = vmul.f32 %v874_v10, %v4559_v5  ;;  %v774_v47 = vmul.f32 %v4559_v5, %v693_v46  ;;  %v1374_v26 = vmul.f32 %v4701_v4, %v1341_v32  ;;  %v596_v32 = vpop.f32.mrf.mxu1 }
 0x2a8   : > { %v1044_v54 = vsub.f32 1.5, %v1043_v40  ;;  %v595_v40 = vadd.f32 %v594_v60, %v4527_v48 }
 0x2a9   : > { %v4057_v62 = vpop.eup %4056  ;;  %v4724_v57 = vadd.f32 1e-05, %v960_v39  ;;  %v4727_v63 = vsub.f32 %v4609_v16, %v774_v47  ;;  %v4733_v58 = vadd.f32 %v4716_v59, %v1374_v26 }
 0x2aa   : > { %v1045_v61 = vmul.f32 %v4692_v3, %v1044_v54  ;;  %v1051_v27 = vmul.f32 %v4057_v62, %v4694_v41  ;;  %vm1057_vm12 = vweird.f32 %v4057_v62 }
 0x2ab   : > { %4058 = vrsqrt.f32 %v4724_v57  ;;  %v1438_v1 = vpack.c.bf16 %v4733_v58, %v4730_v29  ;;  %v838_v16 = vmul.f32 %v4727_v63, %v4727_v63  ;;  %vm1058_vm14 = vmor %vm1056_vm13, %vm1057_vm12  ;;  %vm1066_vm2 = vweird.f32 %v4724_v57 }
 0x2ac   : > { %v1052_v13 = vmul.f32 %v4057_v62, %v1051_v27  ;;  %v1049_v11 = vsel %vm4745_vm11, %v4692_v3, %v1045_v61 }
 0x2ad   : > { %3933 = vmatmul.msk.bf16.vlgmr.msra.gmra.mxu2 %vm293_vm0, %v1438_v1  ;;  %v890_v9 = vsel %vm293_vm0, %v838_v16, 0.0  ;;  %v1342_v3 = vmul.f32 %v1049_v11, %v4581_v34  ;;  %v4789_v1 = vadd.f32 %v595_v40, %v4413_v36 }
 0x2ae   : > { %v1053_v14 = vmul.f32 0.5, %v1052_v13  ;;  %v696_v35 = vpop.xlane.xlu2 %695  ;;  %891 = vadd.xlane.f32.xlu2 %v890_v9  ;;  %710 = vadd.xlane.f32.xlu1 %v709_v21  ;;  %v877_v55 = vpop.xlane.xlu0 %876 }
 0x2af   : > { %v775_v22 = vmul.f32 %v4559_v5, %v696_v35  ;;  %v961_v43 = vmul.f32 %v877_v55, %v4559_v5  ;;  %v1375_v41 = vmul.f32 %v4701_v4, %v1342_v3  ;;  %v715_v21 = vsel %vm293_vm0, %v4789_v1, 0.0  ;;  %v599_v11 = vpop.f32.mrf.mxu1 }
 0x2b0   : > { %v1054_v17 = vsub.f32 1.5, %v1053_v14 }
 0x2b1   : > { %v4059_v25 = vpop.eup %4058  ;;  %v4762_v30 = vsub.f32 %v4622_v18, %v775_v22  ;;  %v993_v15 = vadd.f32 1e-05, %v961_v43  ;;  %v712_v18 = vsel %vm293_vm0, %v4759_v6, 0.0  ;;  %v4783_v27 = vadd.f32 %v4716_v59, %v1375_v41 }
 0x2b2   : > { %v1055_v50 = vmul.f32 %v4057_v62, %v1054_v17  ;;  %v1061_v56 = vmul.f32 %v4059_v25, %v4724_v57  ;;  %vm1067_vm15 = vweird.f32 %v4059_v25 }
 0x2b3   : > { %4060 = vrsqrt.f32 %v993_v15  ;;  %v839_v51 = vmul.f32 %v4762_v30, %v4762_v30  ;;  %vm1068_vm3 = vmor %vm1066_vm2, %vm1067_vm15  ;;  %vm1076_vm5 = vweird.f32 %v993_v15 }
 0x2b4   : > { %v1059_v28 = vsel %vm1058_vm14, %v4057_v62, %v1055_v50  ;;  %v1062_v42 = vmul.f32 %v4059_v25, %v1061_v56 }
 0x2b5   : > { %v893_v34 = vsel %vm293_vm0, %v839_v51, 0.0  ;;  %v1343_v10 = vmul.f32 %v1059_v28, %v4593_v23 }
 0x2b6   : > { %v1063_v46 = vmul.f32 0.5, %v1062_v42  ;;  %v699_v39 = vpop.xlane.xlu2 %698  ;;  %894 = vadd.xlane.f32.xlu0 %v893_v34  ;;  %713 = vadd.xlane.f32.xlu2 %v712_v18  ;;  %v4775_v47 = vpop.xlane.xlu0 %879 }
 0x2b7   : > { %v776_v26 = vmul.f32 %v4559_v5, %v699_v39  ;;  %v1376_v54 = vmul.f32 %v4701_v4, %v1343_v10  ;;  %v601_v18 = vpop.f32.mrf.mxu1 }
 0x2b8   : > { %v1064_v62 = vsub.f32 1.5, %v1063_v46  ;;  %v602_v39 = vadd.f32 %v601_v18, %v4527_v48 }
 0x2b9   : > { %v4061_v61 = vpop.eup %4060  ;;  %v4780_v60 = vsub.f32 %v4635_v19, %v776_v26  ;;  %v4786_v23 = vadd.f32 %v4716_v59, %v1376_v54  ;;  %v597_v19 = vadd.f32 %v596_v32, %v4527_v48  ;;  %v600_v32 = vadd.f32 %v599_v11, %v4527_v48 }
 0x2ba   : > { %v1065_v16 = vmul.f32 %v4059_v25, %v1064_v62  ;;  %v1071_v2 = vmul.f32 %v4061_v61, %v993_v15  ;;  %vm1077_vm4 = vweird.f32 %v4061_v61 }
 0x2bb   : > { %v1439_v13 = vpack.c.bf16 %v4786_v23, %v4783_v27  ;;  %v840_v8 = vmul.f32 %v4780_v60, %v4780_v60  ;;  %v4803_v57 = vadd.f32 %v597_v19, %v4416_v37  ;;  %vm1078_vm6 = vmor %vm1076_vm5, %vm1077_vm4 }
 0x2bc   : > { %v1072_v9 = vmul.f32 %v4061_v61, %v1071_v2  ;;  %v1069_v14 = vsel %vm1068_vm3, %v4059_v25, %v1065_v16 }
 0x2bd   : > { %3934 = vmatmul.msk.bf16.gmra.mxu2 %vm293_vm0, %v1439_v13  ;;  %v896_v36 = vsel %vm293_vm0, %v840_v8, 0.0  ;;  %v1344_v3 = vmul.f32 %v1069_v14, %v4606_v38  ;;  %v718_v51 = vsel %vm293_vm0, %v4803_v57, 0.0  ;;  %v962_v13 = vmul.f32 %v4775_v47, %v4559_v5 }
 0x2be   : > { %v1073_v35 = vmul.f32 0.5, %v1072_v9  ;;  %897 = vadd.xlane.f32.xlu0 %v896_v36  ;;  %716 = vadd.xlane.f32.xlu2 %v715_v21  ;;  %v702_v55 = vpop.xlane.xlu0 %701 }
 0x2bf   : > { %v777_v22 = vmul.f32 %v4559_v5, %v702_v55  ;;  %v604_v54 = vpop.f32.mrf.mxu1  ;;  %v994_v8 = vadd.f32 1e-05, %v962_v13 }
 0x2c0   : > { %v1074_v43 = vsub.f32 1.5, %v1073_v35  ;;  %v605_v62 = vadd.f32 %v604_v54, %v4527_v48 }
 0x2c1   : > { %v4806_v17 = vsub.f32 %v4644_v31, %v777_v22  ;;  %v1377_v31 = vmul.f32 %v4701_v4, %v1344_v3  ;;  %4062 = vrsqrt.f32 %v994_v8  ;;  %vm1086_vm8 = vweird.f32 %v994_v8 }
 0x2c2   : > { %v1075_v50 = vmul.f32 %v4061_v61, %v1074_v43  ;;  %v4847_v16 = vadd.f32 %v605_v62, %v4447_v52 }
 0x2c3   : > { %v841_v25 = vmul.f32 %v4806_v17, %v4806_v17  ;;  %v4823_v34 = vadd.f32 %v4716_v59, %v1377_v31 }
 0x2c4   : > { %v1079_v56 = vsel %vm1078_vm6, %v4061_v61, %v1075_v50  ;;  %v727_v2 = vsel %vm293_vm0, %v4847_v16, 0.0 }
 0x2c5   : > { %v899_v37 = vsel %vm293_vm0, %v841_v25, 0.0  ;;  %v1345_v28 = vmul.f32 %v1079_v56, %v4619_v53  ;;  %v4829_v53 = vadd.f32 %v600_v32, %v4430_v44  ;;  %v4841_v44 = vadd.f32 %v602_v39, %v4433_v45 }
 0x2c6   : > { %719 = vadd.xlane.f32.xlu0 %v718_v51  ;;  %900 = vadd.xlane.f32.xlu1 %v899_v37  ;;  %v705_v38 = vpop.xlane.xlu0 %704 }
 0x2c7   : > { %v778_v15 = vmul.f32 %v4559_v5, %v705_v38  ;;  %v1378_v42 = vmul.f32 %v4701_v4, %v1345_v28  ;;  %v724_v61 = vsel %vm293_vm0, %v4841_v44, 0.0  ;;  %v4063_v45 = vpop.eup %4062  ;;  %v606_v50 = vpop.f32.mrf.mxu1 }
 0x2c8   : > { %v1081_v19 = vmul.f32 %v4063_v45, %v994_v8  ;;  %vm1087_vm7 = vweird.f32 %v4063_v45 }
 0x2c9   : > { %v4820_v40 = vsub.f32 %v4650_v33, %v778_v15  ;;  %v4826_v10 = vadd.f32 %v4716_v59, %v1378_v42  ;;  %v721_v33 = vsel %vm293_vm0, %v4829_v53, 0.0  ;;  %vm1088_vm9 = vmor %vm1086_vm8, %vm1087_vm7 }
 0x2ca   : > { %v1082_v9 = vmul.f32 %v4063_v45, %v1081_v19 }
 0x2cb   : > { %v1440_v41 = vpack.c.bf16 %v4826_v10, %v4823_v34  ;;  %v842_v46 = vmul.f32 %v4820_v40, %v4820_v40 }
 0x2cc   : > { %v1083_v14 = vmul.f32 0.5, %v1082_v9 }
 0x2cd   : > { %3935 = vmatmul.msk.bf16.gmra.mxu2 %vm293_vm0, %v1440_v41  ;;  %v902_v26 = vsel %vm293_vm0, %v842_v46, 0.0 }
 0x2ce   : > { %722 = vadd.xlane.f32.xlu0 %v721_v33  ;;  %903 = vadd.xlane.f32.xlu1 %v902_v26  ;;  %v1084_v52 = vsub.f32 1.5, %v1083_v14 }
 0x2cf   : > { %v609_v62 = vpop.f32.mrf.mxu1 }
 0x2d0   : > { %v1085_v3 = vmul.f32 %v4063_v45, %v1084_v52 }
 0x2d2   : > { %v1089_v56 = vsel %vm1088_vm9, %v4063_v45, %v1085_v3 }
 0x2d3   : > { %v1346_v41 = vmul.f32 %v1089_v56, %v4632_v49 }
 0x2d6   : > { %725 = vadd.xlane.f32.xlu1 %v724_v61 }
 0x2de   : > { %728 = vadd.xlane.f32.xlu1 %v727_v2 }
 0x309   : > { %v883_v36 = vpop.xlane.xlu1 %882 }
 0x30a   : > { %v963_v21 = vmul.f32 %v883_v36, %v4559_v5 }
 0x30c   : > { %v995_v11 = vadd.f32 1e-05, %v963_v21 }
 0x30e   : > { %4064 = vrsqrt.f32 %v995_v11  ;;  %vm1096_vm11 = vweird.f32 %v995_v11 }
 0x311   : > { %v886_v35 = vpop.xlane.xlu1 %885 }
 0x312   : > { %v964_v55 = vmul.f32 %v886_v35, %v4559_v5 }
 0x314   : > { %v4065_v22 = vpop.eup %4064  ;;  %v996_v43 = vadd.f32 1e-05, %v964_v55 }
 0x315   : > { %v1091_v47 = vmul.f32 %v4065_v22, %v995_v11  ;;  %vm1097_vm10 = vweird.f32 %v4065_v22 }
 0x316   : > { %4066 = vrsqrt.f32 %v996_v43  ;;  %vm1098_vm12 = vmor %vm1096_vm11, %vm1097_vm10  ;;  %vm1106_vm14 = vweird.f32 %v996_v43 }
 0x317   : > { %v1092_v25 = vmul.f32 %v4065_v22, %v1091_v47  ;;  %v607_v47 = vadd.f32 %v606_v50, %v4527_v48 }
 0x319   : > { %v1093_v51 = vmul.f32 0.5, %v1092_v25  ;;  %v889_v32 = vpop.xlane.xlu2 %888  ;;  %v708_v37 = vpop.xlane.xlu1 %707 }
 0x31a   : > { %v965_v28 = vmul.f32 %v889_v32, %v4559_v5  ;;  %v779_v31 = vmul.f32 %v4559_v5, %v708_v37 }
 0x31b   : > { %v1094_v38 = vsub.f32 1.5, %v1093_v51 }
 0x31c   : > { %v4067_v15 = vpop.eup %4066  ;;  %v997_v42 = vadd.f32 1e-05, %v965_v28  ;;  %v4858_v18 = vsub.f32 %v4690_v20, %v779_v31  ;;  %v1379_v20 = vmul.f32 %v4701_v4, %v1346_v41  ;;  %v611_v31 = vpop.f32.mrf.mxu1 }
 0x31d   : > { %v1095_v46 = vmul.f32 %v4065_v22, %v1094_v38  ;;  %v1101_v39 = vmul.f32 %v4067_v15, %v996_v43  ;;  %vm1107_vm13 = vweird.f32 %v4067_v15 }
 0x31e   : > { %4068 = vrsqrt.f32 %v997_v42  ;;  %v843_v33 = vmul.f32 %v4858_v18, %v4858_v18  ;;  %vm4886_vm15 = vmor %vm1106_vm14, %vm1107_vm13  ;;  %vm1116_vm3 = vweird.f32 %v997_v42 }
 0x31f   : > { %v1099_v26 = vsel %vm1098_vm12, %v4065_v22, %v1095_v46  ;;  %v1102_v54 = vmul.f32 %v4067_v15, %v1101_v39 }
 0x320   : > { %v905_v61 = vsel %vm293_vm0, %v843_v33, 0.0  ;;  %v1347_v2 = vmul.f32 %v1099_v26, %v4664_v7  ;;  %v4875_v7 = vadd.f32 %v4716_v59, %v1379_v20  ;;  %v4242_v33 = vld [vmem:[%s4316_s30 + $0xb8] sm:$0xff] }
 0x321   : > { %v1103_v13 = vmul.f32 0.5, %v1102_v54  ;;  %v892_v8 = vpop.xlane.xlu2 %891  ;;  %906 = vadd.xlane.f32.xlu2 %v905_v61  ;;  %v711_v49 = vpop.xlane.xlu1 %710 }
 0x322   : > { %v966_v45 = vmul.f32 %v892_v8, %v4559_v5  ;;  %v780_v19 = vmul.f32 %v4559_v5, %v711_v49  ;;  %v1380_v9 = vmul.f32 %v4701_v4, %v1347_v2 }
 0x323   : > { %v1104_v36 = vsub.f32 1.5, %v1103_v13 }
 0x324   : > { %v4069_v21 = vpop.eup %4068  ;;  %v4869_v11 = vadd.f32 1e-05, %v966_v45  ;;  %v4872_v14 = vsub.f32 %v4722_v0, %v780_v19  ;;  %v4878_v52 = vadd.f32 %v4716_v59, %v1380_v9 }
 0x325   : > { %v1105_v35 = vmul.f32 %v4067_v15, %v1104_v36  ;;  %v1111_v55 = vmul.f32 %v4069_v21, %v997_v42  ;;  %vm1117_vm2 = vweird.f32 %v4069_v21 }
 0x326   : > { %4070 = vrsqrt.f32 %v4869_v11  ;;  %v1441_v22 = vpack.c.bf16 %v4878_v52, %v4875_v7  ;;  %v844_v3 = vmul.f32 %v4872_v14, %v4872_v14  ;;  %vm1118_vm4 = vmor %vm1116_vm3, %vm1117_vm2  ;;  %vm1126_vm6 = vweird.f32 %v4869_v11 }
 0x327   : > { %v1112_v0 = vmul.f32 %v4069_v21, %v1111_v55  ;;  %v1109_v51 = vsel %vm4886_vm15, %v4067_v15, %v1105_v35  ;;  %v4904_v15 = vadd.f32 %v4242_v33, %v607_v47  ;;  %v4243_v55 = vld [vmem:[%s4316_s30 + $0xc0] sm:$0xff] }
 0x328   : > { %3936 = vmatmul.msk.bf16.gmra.mxu2 %vm293_vm0, %v1441_v22  ;;  %v908_v56 = vsel %vm293_vm0, %v844_v3, 0.0  ;;  %v1348_v26 = vmul.f32 %v1109_v51, %v4674_v12 }
 0x329   : > { %v1113_v32 = vmul.f32 0.5, %v1112_v0  ;;  %v714_v37 = vpop.xlane.xlu2 %713  ;;  %909 = vadd.xlane.f32.xlu2 %v908_v56  ;;  %v895_v28 = vpop.xlane.xlu0 %894  ;;  %v730_v12 = vsel %vm293_vm0, %v4904_v15, 0.0 }
 0x32a   : > { %v781_v43 = vmul.f32 %v4559_v5, %v714_v37  ;;  %v967_v50 = vmul.f32 %v895_v28, %v4559_v5  ;;  %v1381_v49 = vmul.f32 %v4701_v4, %v1348_v26  ;;  %v614_v56 = vpop.f32.mrf.mxu1  ;;  %v612_v28 = vadd.f32 %v611_v31, %v4527_v48 }
 0x32b   : > { %v1114_v38 = vsub.f32 1.5, %v1113_v32 }
 0x32c   : > { %v4896_v41 = vpop.eup %4070  ;;  %v4899_v46 = vsub.f32 %v4759_v6, %v781_v43  ;;  %v4901_v39 = vadd.f32 1e-05, %v967_v50  ;;  %v610_v6 = vadd.f32 %v609_v62, %v4527_v48  ;;  %v4931_v47 = vadd.f32 %v4716_v59, %v1381_v49  ;;  %v4245_v50 = vld [vmem:[%s4316_s30 + $0xd0] sm:$0xff] }
 0x32d   : > { %v1115_v54 = vmul.f32 %v4069_v21, %v1114_v38  ;;  %v1121_v61 = vmul.f32 %v4896_v41, %v4869_v11  ;;  %vm1127_vm5 = vweird.f32 %v4896_v41 }
 0x32e   : > { %4072 = vrsqrt.f32 %v4901_v39  ;;  %v845_v2 = vmul.f32 %v4899_v46, %v4899_v46  ;;  %v4923_v22 = vadd.f32 %v4243_v55, %v610_v6  ;;  %vm4946_vm7 = vmor %vm1126_vm6, %vm1127_vm5  ;;  %vm1136_vm9 = vweird.f32 %v4901_v39 }
 0x32f   : > { %v1119_v20 = vsel %vm1118_vm4, %v4069_v21, %v1115_v54  ;;  %v1122_v13 = vmul.f32 %v4896_v41, %v1121_v61 }
 0x330   : > { %v911_v8 = vsel %vm293_vm0, %v845_v2, 0.0  ;;  %v1349_v42 = vmul.f32 %v1119_v20, %v4697_v24  ;;  %v733_v33 = vsel %vm293_vm0, %v4923_v22, 0.0  ;;  %v4244_v20 = vld [vmem:[%s4316_s30 + $0xc8] sm:$0xff] }
 0x331   : > { %v1123_v45 = vmul.f32 0.5, %v1122_v13  ;;  %912 = vadd.xlane.f32.xlu0 %v911_v8  ;;  %v717_v19 = vpop.xlane.xlu2 %716  ;;  %731 = vadd.xlane.f32.xlu2 %v730_v12  ;;  %v898_v9 = vpop.xlane.xlu0 %897  ;;  %v4960_v13 = vadd.f32 %v4244_v20, %v612_v28 }
 0x332   : > { %v782_v62 = vmul.f32 %v4559_v5, %v717_v19  ;;  %v968_v36 = vmul.f32 %v898_v9, %v4559_v5  ;;  %v1382_v21 = vmul.f32 %v4701_v4, %v1349_v42  ;;  %v616_v9 = vpop.f32.mrf.mxu1 }
 0x333   : > { %v1124_v35 = vsub.f32 1.5, %v1123_v45 }
 0x334   : > { %v4073_v3 = vpop.eup %4072  ;;  %v4926_v24 = vsub.f32 %v4789_v1, %v782_v62  ;;  %v4928_v0 = vadd.f32 1e-05, %v968_v36  ;;  %v4934_v25 = vadd.f32 %v4716_v59, %v1382_v21  ;;  %v736_v21 = vsel %vm293_vm0, %v4960_v13, 0.0 }
 0x335   : > { %v1125_v51 = vmul.f32 %v4896_v41, %v1124_v35  ;;  %v1131_v32 = vmul.f32 %v4073_v3, %v4901_v39  ;;  %vm1137_vm8 = vweird.f32 %v4073_v3 }
 0x336   : > { %4074 = vrsqrt.f32 %v4928_v0  ;;  %v1442_v1 = vpack.c.bf16 %v4934_v25, %v4931_v47  ;;  %v846_v37 = vmul.f32 %v4926_v24, %v4926_v24  ;;  %vm1138_vm10 = vmor %vm1136_vm9, %vm1137_vm8  ;;  %vm1146_vm12 = vweird.f32 %v4928_v0 }
 0x337   : > { %v1132_v43 = vmul.f32 %v4073_v3, %v1131_v32  ;;  %v1129_v26 = vsel %vm4946_vm7, %v4896_v41, %v1125_v51 }
 0x338   : > { %3937 = vmatmul.msk.bf16.gmra.mxu2 %vm293_vm0, %v1442_v1  ;;  %v914_v38 = vsel %vm293_vm0, %v846_v37, 0.0  ;;  %v1350_v41 = vmul.f32 %v1129_v26, %v4727_v63 }
 0x339   : > { %v1133_v31 = vmul.f32 0.5, %v1132_v43  ;;  %915 = vadd.xlane.f32.xlu0 %v914_v38  ;;  %734 = vadd.xlane.f32.xlu2 %v733_v33  ;;  %v901_v11 = vpop.xlane.xlu1 %900  ;;  %v720_v54 = vpop.xlane.xlu0 %719 }
 0x33a   : > { %v969_v61 = vmul.f32 %v901_v11, %v4559_v5  ;;  %v783_v2 = vmul.f32 %v4559_v5, %v720_v54  ;;  %v1383_v35 = vmul.f32 %v4701_v4, %v1350_v41  ;;  %v619_v20 = vpop.f32.mrf.mxu1 }
 0x33b   : > { %v1134_v6 = vsub.f32 1.5, %v1133_v31 }
 0x33c   : > { %v4075_v8 = vpop.eup %4074  ;;  %v1001_v12 = vadd.f32 1e-05, %v969_v61  ;;  %v4963_v42 = vsub.f32 %v4803_v57, %v783_v2  ;;  %v615_v57 = vadd.f32 %v614_v56, %v4527_v48  ;;  %v4984_v43 = vadd.f32 %v4716_v59, %v1383_v35 }
 0x33d   : > { %v1135_v49 = vmul.f32 %v4073_v3, %v1134_v6  ;;  %v1141_v45 = vmul.f32 %v4075_v8, %v4928_v0  ;;  %vm1147_vm11 = vweird.f32 %v4075_v8  ;;  %v620_v35 = vadd.f32 %v619_v20, %v4527_v48 }
 0x33e   : > { %4076 = vrsqrt.f32 %v1001_v12  ;;  %v847_v19 = vmul.f32 %v4963_v42, %v4963_v42  ;;  %v4990_v38 = vadd.f32 %v4245_v50, %v615_v57  ;;  %vm4998_vm13 = vmor %vm1146_vm12, %vm1147_vm11  ;;  %vm1156_vm15 = vweird.f32 %v1001_v12 }
 0x33f   : > { %v1139_v62 = vsel %vm1138_vm10, %v4073_v3, %v1135_v49  ;;  %v1142_v36 = vmul.f32 %v4075_v8, %v1141_v45 }
 0x340   : > { %v917_v63 = vsel %vm293_vm0, %v847_v19, 0.0  ;;  %v1351_v39 = vmul.f32 %v1139_v62, %v4762_v30  ;;  %v739_v2 = vsel %vm293_vm0, %v4990_v38, 0.0 }
 0x341   : > { %v1143_v55 = vmul.f32 0.5, %v1142_v36  ;;  %737 = vadd.xlane.f32.xlu0 %v736_v21  ;;  %v4976_v51 = vpop.xlane.xlu1 %903  ;;  %918 = vadd.xlane.f32.xlu1 %v917_v63  ;;  %v723_v32 = vpop.xlane.xlu0 %722 }
 0x342   : > { %v784_v3 = vmul.f32 %v4559_v5, %v723_v32  ;;  %v1384_v1 = vmul.f32 %v4701_v4, %v1351_v39 }
 0x343   : > { %v1144_v37 = vsub.f32 1.5, %v1143_v55 }
 0x344   : > { %v4077_v28 = vpop.eup %4076  ;;  %v4981_v56 = vsub.f32 %v4829_v53, %v784_v3  ;;  %v4987_v30 = vadd.f32 %v4716_v59, %v1384_v1  ;;  %v617_v53 = vadd.f32 %v616_v9, %v4527_v48  ;;  %v4246_v9 = vld [vmem:[%s4316_s30 + $0xd8] sm:$0xff]  ;;  %v621_v1 = vpop.f32.mrf.mxu1 }
 0x345   : > { %v1145_v33 = vmul.f32 %v4075_v8, %v1144_v37  ;;  %v1151_v26 = vmul.f32 %v4077_v28, %v1001_v12  ;;  %vm1157_vm14 = vweird.f32 %v4077_v28 }
 0x346   : > { %v1443_v31 = vpack.c.bf16 %v4987_v30, %v4984_v43  ;;  %v848_v11 = vmul.f32 %v4981_v56, %v4981_v56  ;;  %v5010_v62 = vadd.f32 %v4246_v9, %v617_v53  ;;  %vm1158_vm2 = vmor %vm1156_vm15, %vm1157_vm14 }
 0x347   : > { %v1152_v54 = vmul.f32 %v4077_v28, %v1151_v26  ;;  %v1149_v41 = vsel %vm4998_vm13, %v4075_v8, %v1145_v33 }
 0x348   : > { %3938 = vmatmul.msk.bf16.gmra.mxu2 %vm293_vm0, %v1443_v31  ;;  %v920_v6 = vsel %vm293_vm0, %v848_v11, 0.0  ;;  %v1352_v21 = vmul.f32 %v1149_v41, %v4780_v60  ;;  %v742_v39 = vsel %vm293_vm0, %v5010_v62, 0.0  ;;  %v622_v11 = vadd.f32 %v621_v1, %v4527_v48  ;;  %v4249_v41 = vld [vmem:[%s4316_s30 + $0xf0] sm:$0xff] }
 0x349   : > { %v1153_v49 = vmul.f32 0.5, %v1152_v54  ;;  %740 = vadd.xlane.f32.xlu0 %v739_v2  ;;  %v726_v45 = vpop.xlane.xlu1 %725  ;;  %921 = vadd.xlane.f32.xlu1 %v920_v6  ;;  %v4248_v54 = vld [vmem:[%s4316_s30 + $0xe8] sm:$0xff] }
 0x34a   : > { %v785_v0 = vmul.f32 %v4559_v5, %v726_v45  ;;  %v1385_v32 = vmul.f32 %v4701_v4, %v1352_v21  ;;  %v5048_v61 = vadd.f32 %v4248_v54, %v622_v11 }
 0x34b   : > { %v1154_v19 = vsub.f32 1.5, %v1153_v49 }
 0x34c   : > { %v5013_v36 = vsub.f32 %v4841_v44, %v785_v0  ;;  %v624_v2 = vpop.f32.mrf.mxu1  ;;  %v748_v20 = vsel %vm293_vm0, %v5048_v61, 0.0  ;;  %v970_v0 = vmul.f32 %v4976_v51, %v4559_v5 }
 0x34d   : > { %v1155_v57 = vmul.f32 %v4077_v28, %v1154_v19  ;;  %v625_v6 = vadd.f32 %v624_v2, %v4527_v48 }
 0x34e   : > { %v849_v8 = vmul.f32 %v5013_v36, %v5013_v36  ;;  %v1002_v19 = vadd.f32 1e-05, %v970_v0 }
 0x34f   : > { %v1159_v63 = vsel %vm1158_vm2, %v4077_v28, %v1155_v57  ;;  %v5030_v28 = vadd.f32 %v4716_v59, %v1385_v32  ;;  %v5054_v49 = vadd.f32 %v4249_v41, %v625_v6 }
 0x350   : > { %v923_v55 = vsel %vm293_vm0, %v849_v8, 0.0  ;;  %v1353_v44 = vmul.f32 %v1159_v63, %v4806_v17  ;;  %v4247_v17 = vld [vmem:[%s4316_s30 + $0xe0] sm:$0xff]  ;;  %4078 = vrsqrt.f32 %v1002_v19  ;;  %vm1166_vm4 = vweird.f32 %v1002_v19 }
 0x351   : > { %924 = vadd.xlane.f32.xlu2 %v923_v55  ;;  %v729_v60 = vpop.xlane.xlu1 %728  ;;  %743 = vadd.xlane.f32.xlu1 %v742_v39  ;;  %v5036_v33 = vadd.f32 %v4247_v17, %v620_v35  ;;  %v751_v45 = vsel %vm293_vm0, %v5054_v49, 0.0 }
 0x352   : > { %v786_v12 = vmul.f32 %v4559_v5, %v729_v60  ;;  %v1386_v3 = vmul.f32 %v4701_v4, %v1353_v44 }
 0x353   : > { %v745_v53 = vsel %vm293_vm0, %v5036_v33, 0.0 }
 0x354   : > { %v5027_v37 = vsub.f32 %v4847_v16, %v786_v12  ;;  %v5033_v50 = vadd.f32 %v4716_v59, %v1386_v3 }
 0x356   : > { %v1444_v26 = vpack.c.bf16 %v5033_v50, %v5030_v28  ;;  %v850_v31 = vmul.f32 %v5027_v37, %v5027_v37  ;;  %v4079_v9 = vpop.eup %4078 }
 0x357   : > { %v1161_v21 = vmul.f32 %v4079_v9, %v1002_v19  ;;  %vm1167_vm3 = vweird.f32 %v4079_v9 }
 0x358   : > { %3939 = vmatmul.msk.bf16.gmra.mxu2 %vm293_vm0, %v1444_v26  ;;  %v926_v16 = vsel %vm293_vm0, %v850_v31, 0.0  ;;  %vm1168_vm5 = vmor %vm1166_vm4, %vm1167_vm3 }
 0x359   : > { %927 = vadd.xlane.f32.xlu2 %v926_v16  ;;  %746 = vadd.xlane.f32.xlu1 %v745_v53  ;;  %v1162_v57 = vmul.f32 %v4079_v9, %v1161_v21 }
 0x35b   : > { %v1163_v35 = vmul.f32 0.5, %v1162_v57 }
 0x35d   : > { %v1164_v55 = vsub.f32 1.5, %v1163_v35 }
 0x35f   : > { %v1165_v3 = vmul.f32 %v4079_v9, %v1164_v55  ;;  %v5073_v55 = vpop.f32.mrf.mxu2 }
 0x361   : > { %749 = vadd.xlane.f32.xlu2 %v748_v20  ;;  %v1169_v17 = vsel %vm1168_vm5, %v4079_v9, %v1165_v3 }
 0x362   : > { %v1354_v41 = vmul.f32 %v1169_v17, %v4820_v40 }
 0x369   : > { %752 = vadd.xlane.f32.xlu2 %v751_v45 }
 0x394   : > { %v907_v8 = vpop.xlane.xlu2 %906 }
 0x395   : > { %v971_v63 = vmul.f32 %v907_v8, %v4559_v5 }
 0x397   : > { %v1003_v39 = vadd.f32 1e-05, %v971_v63 }
 0x399   : > { %4080 = vrsqrt.f32 %v1003_v39  ;;  %vm1176_vm7 = vweird.f32 %v1003_v39 }
 0x39c   : > { %v910_v44 = vpop.xlane.xlu2 %909 }
 0x39d   : > { %v972_v32 = vmul.f32 %v910_v44, %v4559_v5 }
 0x39f   : > { %v4081_v60 = vpop.eup %4080  ;;  %v1004_v12 = vadd.f32 1e-05, %v972_v32 }
 0x3a0   : > { %v1171_v51 = vmul.f32 %v4081_v60, %v1003_v39  ;;  %vm1177_vm6 = vweird.f32 %v4081_v60 }
 0x3a1   : > { %4082 = vrsqrt.f32 %v1004_v12  ;;  %vm1178_vm8 = vmor %vm1176_vm7, %vm1177_vm6  ;;  %vm1186_vm10 = vweird.f32 %v1004_v12 }
 0x3a2   : > { %v1172_v1 = vmul.f32 %v4081_v60, %v1171_v51 }
 0x3a4   : > { %v1173_v26 = vmul.f32 0.5, %v1172_v1  ;;  %v732_v31 = vpop.xlane.xlu2 %731  ;;  %v913_v11 = vpop.xlane.xlu0 %912 }
 0x3a5   : > { %v787_v16 = vmul.f32 %v4559_v5, %v732_v31  ;;  %v973_v53 = vmul.f32 %v913_v11, %v4559_v5 }
 0x3a6   : > { %v1174_v54 = vsub.f32 1.5, %v1173_v26  ;;  %v626_v26 = vpop.f32.mrf.mxu1 }
 0x3a7   : > { %v4083_v2 = vpop.eup %4082  ;;  %v5065_v6 = vsub.f32 %v4904_v15, %v787_v16  ;;  %v1005_v20 = vadd.f32 1e-05, %v973_v53  ;;  %v1387_v15 = vmul.f32 %v4701_v4, %v1354_v41 }
 0x3a8   : > { %v1175_v45 = vmul.f32 %v4081_v60, %v1174_v54  ;;  %v1181_v0 = vmul.f32 %v4083_v2, %v1004_v12  ;;  %vm1187_vm9 = vweird.f32 %v4083_v2  ;;  %v627_v54 = vadd.f32 %v626_v26, %v4527_v48 }
 0x3a9   : > { %4084 = vrsqrt.f32 %v1005_v20  ;;  %v851_v19 = vmul.f32 %v5065_v6, %v5065_v6  ;;  %v5084_v1 = vadd.f32 %v4716_v59, %v1387_v15  ;;  %vm5095_vm11 = vmor %vm1186_vm10, %vm1187_vm9  ;;  %v5105_v15 = vpop.f32.mrf.mxu2  ;;  %vm1196_vm13 = vweird.f32 %v1005_v20 }
 0x3aa   : > { %v1179_v9 = vsel %vm1178_vm8, %v4081_v60, %v1175_v45  ;;  %v1182_v21 = vmul.f32 %v4083_v2, %v1181_v0 }
 0x3ab   : > { %v929_v57 = vsel %vm293_vm0, %v851_v19, 0.0  ;;  %v1355_v8 = vmul.f32 %v1179_v9, %v4858_v18 }
 0x3ac   : > { %v1183_v63 = vmul.f32 0.5, %v1182_v21  ;;  %930 = vadd.xlane.f32.xlu0 %v929_v57  ;;  %v735_v35 = vpop.xlane.xlu2 %734  ;;  %v916_v40 = vpop.xlane.xlu0 %915 }
 0x3ad   : > { %v788_v39 = vmul.f32 %v4559_v5, %v735_v35  ;;  %v974_v44 = vmul.f32 %v916_v40, %v4559_v5  ;;  %v1388_v32 = vmul.f32 %v4701_v4, %v1355_v8  ;;  %v4250_v40 = vld [vmem:[%s4316_s30 + $0xf8] sm:$0xff] }
 0x3ae   : > { %v1184_v60 = vsub.f32 1.5, %v1183_v63 }
 0x3af   : > { %v4085_v3 = vpop.eup %4084  ;;  %v5079_v51 = vsub.f32 %v4923_v22, %v788_v39  ;;  %v5081_v18 = vadd.f32 1e-05, %v974_v44  ;;  %v5087_v17 = vadd.f32 %v4716_v59, %v1388_v32  ;;  %v5111_v39 = vadd.f32 %v4250_v40, %v627_v54 }
 0x3b0   : > { %v1185_v31 = vmul.f32 %v4083_v2, %v1184_v60  ;;  %v1191_v11 = vmul.f32 %v4085_v3, %v1005_v20  ;;  %vm1197_vm12 = vweird.f32 %v4085_v3 }
 0x3b1   : > { %4086 = vrsqrt.f32 %v5081_v18  ;;  %v1445_v16 = vpack.c.bf16 %v5087_v17, %v5084_v1  ;;  %v852_v22 = vmul.f32 %v5079_v51, %v5079_v51  ;;  %vm1198_vm14 = vmor %vm1196_vm13, %vm1197_vm12  ;;  %vm1206_vm2 = vweird.f32 %v5081_v18 }
 0x3b2   : > { %v1192_v53 = vmul.f32 %v4085_v3, %v1191_v11  ;;  %v1189_v0 = vsel %vm5095_vm11, %v4083_v2, %v1185_v31 }
 0x3b3   : > { %3940 = vmatmul.msk.bf16.gmra.mxu2 %vm293_vm0, %v1445_v16  ;;  %v932_v45 = vsel %vm293_vm0, %v852_v22, 0.0  ;;  %v1356_v2 = vmul.f32 %v1189_v0, %v4872_v14 }
 0x3b4   : > { %v1193_v19 = vmul.f32 0.5, %v1192_v53  ;;  %933 = vadd.xlane.f32.xlu0 %v932_v45  ;;  %v919_v9 = vpop.xlane.xlu1 %918  ;;  %v738_v21 = vpop.xlane.xlu0 %737 }
 0x3b5   : > { %v975_v12 = vmul.f32 %v919_v9, %v4559_v5  ;;  %v789_v48 = vmul.f32 %v4559_v5, %v738_v21  ;;  %v1389_v14 = vmul.f32 %v4701_v4, %v1356_v2 }
 0x3b6   : > { %v1194_v57 = vsub.f32 1.5, %v1193_v19 }
 0x3b7   : > { %v4087_v8 = vpop.eup %4086  ;;  %v1007_v63 = vadd.f32 1e-05, %v975_v12  ;;  %v5108_v35 = vsub.f32 %v4960_v13, %v789_v48  ;;  %v754_v13 = vsel %vm293_vm0, %v5111_v39, 0.0 }
 0x3b8   : > { %v1195_v44 = vmul.f32 %v4085_v3, %v1194_v57  ;;  %v1201_v32 = vmul.f32 %v4087_v8, %v5081_v18  ;;  %vm1207_vm15 = vweird.f32 %v4087_v8  ;;  %v5134_v57 = vpop.f32.mrf.mxu2 }
 0x3b9   : > { %4088 = vrsqrt.f32 %v1007_v63  ;;  %v853_v60 = vmul.f32 %v5108_v35, %v5108_v35  ;;  %vm5141_vm3 = vmor %vm1206_vm2, %vm1207_vm15  ;;  %vm1216_vm5 = vweird.f32 %v1007_v63 }
 0x3ba   : > { %v1199_v26 = vsel %vm1198_vm14, %v4085_v3, %v1195_v44  ;;  %v1202_v31 = vmul.f32 %v4087_v8, %v1201_v32 }
 0x3bb   : > { %v935_v11 = vsel %vm293_vm0, %v853_v60, 0.0  ;;  %v1357_v16 = vmul.f32 %v1199_v26, %v4899_v46  ;;  %v5129_v46 = vadd.f32 %v4716_v59, %v1389_v14  ;;  %v4030_v60 = vld [vmem:[%s6988_s3 + $0x8] sm:$0xff] }
 0x3bc   : > { %v1203_v22 = vmul.f32 0.5, %v1202_v31  ;;  %v922_v20 = vpop.xlane.xlu1 %921  ;;  %936 = vadd.xlane.f32.xlu1 %v935_v11  ;;  %v741_v53 = vpop.xlane.xlu0 %740  ;;  %755 = vadd.xlane.f32.xlu0 %v754_v13 }
 0x3bd   : > { %v976_v54 = vmul.f32 %v922_v20, %v4559_v5  ;;  %v790_v41 = vmul.f32 %v4559_v5, %v741_v53  ;;  %v1390_v3 = vmul.f32 %v4701_v4, %v1357_v16  ;;  %7011 = vst [vmem:[#allocation2_spill] sm:$0xff] %v5129_v46  ;;  %1725 = vmatpush.bf16.msrb.mxu2 %v4030_v60 }
 0x3be   : > { %v1204_v45 = vsub.f32 1.5, %v1203_v22  ;;  %4035 = vmatpush.bf16.msra.mxu3 %v4030_v60 }
 0x3bf   : > { %v4089_v0 = vpop.eup %4088  ;;  %v1008_v19 = vadd.f32 1e-05, %v976_v54  ;;  %v5126_v9 = vsub.f32 %v4990_v38, %v790_v41  ;;  %v5132_v21 = vadd.f32 %v4716_v59, %v1390_v3 }
 0x3c0   : > { %v1205_v12 = vmul.f32 %v4087_v8, %v1204_v45  ;;  %v1211_v48 = vmul.f32 %v4089_v0, %v1007_v63  ;;  %vm1217_vm4 = vweird.f32 %v4089_v0 }
 0x3c1   : > { %7012 = vst [vmem:[#allocation3_spill] sm:$0xff] %v5132_v21  ;;  %4090 = vrsqrt.f32 %v1008_v19  ;;  %v1446_v40 = vpack.c.bf16 %v5132_v21, %v5129_v46  ;;  %v854_v2 = vmul.f32 %v5126_v9, %v5126_v9  ;;  %vm1218_vm6 = vmor %vm1216_vm5, %vm1217_vm4  ;;  %vm1226_vm8 = vweird.f32 %v1008_v19 }
 0x3c2   : > { %v1212_v38 = vmul.f32 %v4089_v0, %v1211_v48  ;;  %v1209_v26 = vsel %vm5141_vm3, %v4087_v8, %v1205_v12  ;;  %v5160_v48 = vpop.f32.mrf.mxu2 }
 0x3c3   : > { %3941 = vmatmul.msk.bf16.gmra.mxu2 %vm293_vm0, %v1446_v40  ;;  %v938_v32 = vsel %vm293_vm0, %v854_v2, 0.0  ;;  %v1358_v54 = vmul.f32 %v1209_v26, %v4926_v24 }
 0x3c4   : > { %v1213_v31 = vmul.f32 0.5, %v1212_v38  ;;  %v925_v11 = vpop.xlane.xlu2 %924  ;;  %v744_v13 = vpop.xlane.xlu1 %743  ;;  %939 = vadd.xlane.f32.xlu1 %v938_v32 }
 0x3c5   : > { %v977_v18 = vmul.f32 %v925_v11, %v4559_v5  ;;  %v791_v16 = vmul.f32 %v4559_v5, %v744_v13 }
 0x3c6   : > { %v1214_v14 = vsub.f32 1.5, %v1213_v31 }
 0x3c7   : > { %v4091_v22 = vpop.eup %4090  ;;  %v1009_v20 = vadd.f32 1e-05, %v977_v18  ;;  %v5155_v53 = vsub.f32 %v5010_v62, %v791_v16  ;;  %v1391_v62 = vmul.f32 %v4701_v4, %v1358_v54 }
 0x3c8   : > { %v1215_v8 = vmul.f32 %v4089_v0, %v1214_v14  ;;  %v1221_v41 = vmul.f32 %v4091_v22, %v1008_v19  ;;  %vm1227_vm7 = vweird.f32 %v4091_v22 }
 0x3c9   : > { %4092 = vrsqrt.f32 %v1009_v20  ;;  %v855_v3 = vmul.f32 %v5155_v53, %v5155_v53  ;;  %v5171_v31 = vadd.f32 %v4716_v59, %v1391_v62  ;;  %vm1228_vm9 = vmor %vm1226_vm8, %vm1227_vm7  ;;  %vm1236_vm11 = vweird.f32 %v1009_v20 }
 0x3ca   : > { %v1219_v45 = vsel %vm1218_vm6, %v4089_v0, %v1215_v8  ;;  %v1222_v12 = vmul.f32 %v4091_v22, %v1221_v41 }
 0x3cb   : > { %v941_v40 = vsel %vm293_vm0, %v855_v3, 0.0  ;;  %v1359_v2 = vmul.f32 %v1219_v45, %v4963_v42  ;;  %7015 = vst [vmem:[#allocation4_spill] sm:$0xff] %v5171_v31  ;;  %v5183_v45 = vpop.f32.mrf.mxu2 }
 0x3cc   : > { %v1223_v38 = vmul.f32 0.5, %v1222_v12  ;;  %v928_v24 = vpop.xlane.xlu2 %927  ;;  %v747_v44 = vpop.xlane.xlu1 %746  ;;  %942 = vadd.xlane.f32.xlu2 %v941_v40 }
 0x3cd   : > { %v792_v63 = vmul.f32 %v4559_v5, %v747_v44  ;;  %v1392_v32 = vmul.f32 %v4701_v4, %v1359_v2 }
 0x3ce   : > { %v1224_v60 = vsub.f32 1.5, %v1223_v38 }
 0x3cf   : > { %v4093_v26 = vpop.eup %4092  ;;  %v5168_v0 = vsub.f32 %v5036_v33, %v792_v63  ;;  %v5174_v42 = vadd.f32 %v4716_v59, %v1392_v32 }
 0x3d0   : > { %v1225_v11 = vmul.f32 %v4091_v22, %v1224_v60  ;;  %v1231_v13 = vmul.f32 %v4093_v26, %v1009_v20  ;;  %vm1237_vm10 = vweird.f32 %v4093_v26 }
 0x3d1   : > { %7016 = vst [vmem:[#allocation5_spill] sm:$0xff] %v5174_v42  ;;  %v1447_v18 = vpack.c.bf16 %v5174_v42, %v5171_v31  ;;  %v856_v16 = vmul.f32 %v5168_v0, %v5168_v0  ;;  %vm1238_vm12 = vmor %vm1236_vm11, %vm1237_vm10 }
 0x3d2   : > { %v1232_v14 = vmul.f32 %v4093_v26, %v1231_v13  ;;  %v1229_v54 = vsel %vm1228_vm9, %v4091_v22, %v1225_v11 }
 0x3d3   : > { %3942 = vmatmul.msk.bf16.gmra.mxu2 %vm293_vm0, %v1447_v18  ;;  %v944_v33 = vsel %vm293_vm0, %v856_v16, 0.0  ;;  %v1360_v40 = vmul.f32 %v1229_v54, %v4981_v56  ;;  %v978_v54 = vmul.f32 %v928_v24, %v4559_v5 }
 0x3d4   : > { %v1233_v8 = vmul.f32 0.5, %v1232_v14  ;;  %v750_v41 = vpop.xlane.xlu2 %749  ;;  %945 = vadd.xlane.f32.xlu0 %v944_v33 }
 0x3d5   : > { %v793_v3 = vmul.f32 %v4559_v5, %v750_v41  ;;  %v1393_v63 = vmul.f32 %v4701_v4, %v1360_v40 }
 0x3d6   : > { %v1234_v12 = vsub.f32 1.5, %v1233_v8  ;;  %v1010_v8 = vadd.f32 1e-05, %v978_v54 }
 0x3d7   : > { %v5187_v19 = vsub.f32 %v5048_v61, %v793_v3  ;;  %v5200_v20 = vadd.f32 %v4716_v59, %v1393_v63 }
 0x3d8   : > { %v1235_v2 = vmul.f32 %v4093_v26, %v1234_v12  ;;  %4094 = vrsqrt.f32 %v1010_v8  ;;  %vm1246_vm14 = vweird.f32 %v1010_v8 }
 0x3d9   : > { %v857_v22 = vmul.f32 %v5187_v19, %v5187_v19  ;;  %7017 = vst [vmem:[#allocation6_spill] sm:$0xff] %v5200_v20 }
 0x3da   : > { %v1239_v62 = vsel %vm1238_vm12, %v4093_v26, %v1235_v2 }
 0x3db   : > { %v1361_v38 = vmul.f32 %v1239_v62, %v5013_v36  ;;  %v947_v44 = vsel %vm293_vm0, %v857_v22, 0.0  ;;  %v5205_v36 = vpop.f32.mrf.mxu2 }
 0x3dc   : > { %948 = vadd.xlane.f32.xlu1 %v947_v44  ;;  %v753_v32 = vpop.xlane.xlu2 %752 }
 0x3dd   : > { %v794_v56 = vmul.f32 %v4559_v5, %v753_v32  ;;  %v1394_v61 = vmul.f32 %v4701_v4, %v1361_v38 }
 0x3de   : > { %v4095_v3 = vpop.eup %4094 }
 0x3df   : > { %v5197_v60 = vsub.f32 %v5054_v49, %v794_v56  ;;  %v5203_v26 = vadd.f32 %v4716_v59, %v1394_v61  ;;  %v1241_v40 = vmul.f32 %v4095_v3, %v1010_v8  ;;  %vm1247_vm13 = vweird.f32 %v4095_v3 }
 0x3e0   : > { %vm1248_vm15 = vmor %vm1246_vm14, %vm1247_vm13 }
 0x3e1   : > { %7018 = vst [vmem:[#allocation7_spill] sm:$0xff] %v5203_v26  ;;  %v1448_v11 = vpack.c.bf16 %v5203_v26, %v5200_v20  ;;  %v858_v13 = vmul.f32 %v5197_v60, %v5197_v60  ;;  %v1242_v2 = vmul.f32 %v4095_v3, %v1241_v40 }
 0x3e3   : > { %3943 = vmatmul.msk.bf16.gmra.mxu2 %vm293_vm0, %v1448_v11  ;;  %v950_v18 = vsel %vm293_vm0, %v858_v13, 0.0  ;;  %v5213_v49 = vpop.f32.mrf.mxu2  ;;  %v1243_v44 = vmul.f32 0.5, %v1242_v2 }
 0x3e4   : > { %951 = vadd.xlane.f32.xlu2 %v950_v18 }
 0x3e5   : > { %v1244_v32 = vsub.f32 1.5, %v1243_v44 }
 0x3e7   : > { %v1245_v13 = vmul.f32 %v4095_v3, %v1244_v32 }
 0x3eb   : > { %v5215_v16 = vpop.f32.mrf.mxu2 }
 0x3f3   : > { %v5217_v14 = vpop.f32.mrf.mxu2 }
 0x3fb   : > { %v5219_v33 = vpop.f32.mrf.mxu2 }
 0x403   : > { %v5222_v41 = vpop.f32.mrf.mxu2 }
 0x40b   : > { %v5224_v12 = vpop.f32.mrf.mxu2 }
 0x413   : > { %v5227_v63 = vpop.f32.mrf.mxu2 }
 0x41b   : > { %v5230_v40 = vpop.f32.mrf.mxu2 }
 0x41f   : > { %v931_v22 = vpop.xlane.xlu0 %930 }
 0x420   : > { %v979_v62 = vmul.f32 %v931_v22, %v4559_v5  ;;  %v1249_v22 = vsel %vm1248_vm15, %v4095_v3, %v1245_v13 }
 0x421   : > { %v1362_v32 = vmul.f32 %v1249_v22, %v5027_v37 }
 0x422   : > { %v1011_v38 = vadd.f32 1e-05, %v979_v62 }
 0x423   : > { %v1395_v37 = vmul.f32 %v4701_v4, %v1362_v32 }
 0x424   : > { %4096 = vrsqrt.f32 %v1011_v38  ;;  %vm1256_vm3 = vweird.f32 %v1011_v38 }
 0x427   : > { %v934_v56 = vpop.xlane.xlu0 %933 }
 0x428   : > { %v980_v24 = vmul.f32 %v934_v56, %v4559_v5 }
 0x42a   : > { %v4097_v61 = vpop.eup %4096  ;;  %v1012_v11 = vadd.f32 1e-05, %v980_v24 }
 0x42b   : > { %v1251_v18 = vmul.f32 %v4097_v61, %v1011_v38  ;;  %vm1257_vm2 = vweird.f32 %v4097_v61 }
 0x42c   : > { %4098 = vrsqrt.f32 %v1012_v11  ;;  %vm1258_vm4 = vmor %vm1256_vm3, %vm1257_vm2  ;;  %vm1266_vm6 = vweird.f32 %v1012_v11 }
 0x42d   : > { %v1252_v54 = vmul.f32 %v4097_v61, %v1251_v18 }
 0x42f   : > { %v1253_v2 = vmul.f32 0.5, %v1252_v54  ;;  %v937_v62 = vpop.xlane.xlu1 %936  ;;  %v756_v26 = vpop.xlane.xlu0 %755 }
 0x430   : > { %v981_v44 = vmul.f32 %v937_v62, %v4559_v5  ;;  %v795_v20 = vmul.f32 %v4559_v5, %v756_v26 }
 0x431   : > { %v1254_v56 = vsub.f32 1.5, %v1253_v2 }
 0x432   : > { %v4099_v24 = vpop.eup %4098  ;;  %v1013_v42 = vadd.f32 1e-05, %v981_v44  ;;  %v5236_v8 = vsub.f32 %v5111_v39, %v795_v20 }
 0x433   : > { %v1255_v18 = vmul.f32 %v4097_v61, %v1254_v56  ;;  %v1261_v31 = vmul.f32 %v4099_v24, %v1012_v11  ;;  %vm1267_vm5 = vweird.f32 %v4099_v24 }
 0x434   : > { %4100 = vrsqrt.f32 %v1013_v42  ;;  %v859_v3 = vmul.f32 %v5236_v8, %v5236_v8  ;;  %vm1268_vm7 = vmor %vm1266_vm6, %vm1267_vm5  ;;  %vm1276_vm9 = vweird.f32 %v1013_v42 }
 0x435   : > { %v1259_v13 = vsel %vm1258_vm4, %v4097_v61, %v1255_v18  ;;  %v1262_v54 = vmul.f32 %v4099_v24, %v1261_v31  ;;  %v5246_v61 = vadd.f32 %v4716_v59, %v1395_v37 }
 0x436   : > { %v1363_v26 = vmul.f32 %v1259_v13, %v5065_v6  ;;  %v1563_v2 = vpop.f32.mrf.mxu2  ;;  %v953_v62 = vsel %vm293_vm0, %v859_v3, 0.0  ;;  %v5256_v3 = vld [vmem:[%s6987_s2 + $0x1] ss:$0 sm:$0xff] }
 0x437   : > { %v1263_v22 = vmul.f32 0.5, %v1262_v54  ;;  %v940_v39 = vpop.xlane.xlu1 %939  ;;  %954 = vadd.xlane.f32.xlu0 %v953_v62  ;;  %7019 = vst [vmem:[#allocation8_spill] sm:$0xff] %v5246_v61  ;;  %v1624_v37 = vadd.f32 %v5256_v3, %v1563_v2 }
 0x438   : > { %v982_v20 = vmul.f32 %v940_v39, %v4559_v5  ;;  %v1396_v38 = vmul.f32 %v4701_v4, %v1363_v26 }
 0x439   : > { %v1264_v44 = vsub.f32 1.5, %v1263_v22 }
 0x43a   : > { %v4101_v56 = vpop.eup %4100  ;;  %v1014_v21 = vadd.f32 1e-05, %v982_v20  ;;  %v5249_v6 = vadd.f32 %v4716_v59, %v1396_v38 }
 0x43b   : > { %v1265_v31 = vmul.f32 %v4099_v24, %v1264_v44  ;;  %v1271_v18 = vmul.f32 %v4101_v56, %v1013_v42  ;;  %vm1277_vm8 = vweird.f32 %v4101_v56 }
 0x43c   : > { %7020 = vst [vmem:[#allocation9_spill] sm:$0xff] %v5249_v6  ;;  %4102 = vrsqrt.f32 %v1014_v21  ;;  %v1449_v32 = vpack.c.bf16 %v5249_v6, %v5246_v61  ;;  %vm1278_vm10 = vmor %vm1276_vm9, %vm1277_vm8  ;;  %vm1286_vm12 = vweird.f32 %v1014_v21 }
 0x43d   : > { %v1272_v13 = vmul.f32 %v4101_v56, %v1271_v18  ;;  %v1269_v26 = vsel %vm1268_vm7, %v4099_v24, %v1265_v31 }
 0x43e   : > { %v1565_v54 = vpop.f32.mrf.mxu2  ;;  %3944 = vmatmul.msk.bf16.gmra.mxu2 %vm293_vm0, %v1449_v32  ;;  %v1364_v11 = vmul.f32 %v1269_v26, %v5079_v51 }
 0x43f   : > { %v1273_v62 = vmul.f32 0.5, %v1272_v13  ;;  %v1625_v22 = vadd.f32 %v5256_v3, %v1565_v54  ;;  %v943_v39 = vpop.xlane.xlu2 %942 }
 0x440   : > { %v983_v20 = vmul.f32 %v943_v39, %v4559_v5  ;;  %v1397_v13 = vmul.f32 %v4701_v4, %v1364_v11 }
 0x441   : > { %v1274_v38 = vsub.f32 1.5, %v1273_v62  ;;  %v1651_v44 = vpack.c.bf16 %v1625_v22, %v1624_v37 }
 0x442   : > { %v4103_v6 = vpop.eup %4102  ;;  %v1015_v18 = vadd.f32 1e-05, %v983_v20  ;;  %v5269_v39 = vadd.f32 %v4716_v59, %v1397_v13 }
 0x443   : > { %v1275_v61 = vmul.f32 %v4101_v56, %v1274_v38  ;;  %v1281_v46 = vmul.f32 %v4103_v6, %v1014_v21  ;;  %3963 = vmatmul.msk.bf16.vlgmr.msra.gmra.mxu3 %vm491_vm1, %v1651_v44  ;;  %vm1287_vm11 = vweird.f32 %v4103_v6 }
 0x444   : > { %4104 = vrsqrt.f32 %v1015_v18  ;;  %vm1288_vm13 = vmor %vm1286_vm12, %vm1287_vm11  ;;  %vm1296_vm15 = vweird.f32 %v1015_v18 }
 0x445   : > { %v1279_v24 = vsel %vm1278_vm10, %v4101_v56, %v1275_v61  ;;  %v1282_v2 = vmul.f32 %v4103_v6, %v1281_v46 }
 0x446   : > { %v1365_v31 = vmul.f32 %v1279_v24, %v5108_v35  ;;  %v1568_v32 = vpop.f32.mrf.mxu2 }
 0x447   : > { %v1283_v54 = vmul.f32 0.5, %v1282_v2  ;;  %v946_v62 = vpop.xlane.xlu0 %945  ;;  %v1626_v24 = vadd.f32 %v5256_v3, %v1568_v32 }
 0x448   : > { %v984_v37 = vmul.f32 %v946_v62, %v4559_v5  ;;  %v1398_v51 = vmul.f32 %v4701_v4, %v1365_v31 }
 0x449   : > { %v1284_v26 = vsub.f32 1.5, %v1283_v54 }
 0x44a   : > { %v4105_v42 = vpop.eup %4104  ;;  %v1016_v22 = vadd.f32 1e-05, %v984_v37  ;;  %v5272_v56 = vadd.f32 %v4716_v59, %v1398_v51 }
 0x44b   : > { %v1285_v46 = vmul.f32 %v4103_v6, %v1284_v26  ;;  %v1291_v35 = vmul.f32 %v4105_v42, %v1015_v18  ;;  %vm1297_vm14 = vweird.f32 %v4105_v42 }
 0x44c   : > { %4106 = vrsqrt.f32 %v1016_v22  ;;  %v1450_v61 = vpack.c.bf16 %v5272_v56, %v5269_v39  ;;  %vm1298_vm2 = vmor %vm1296_vm15, %vm1297_vm14  ;;  %vm1306_vm4 = vweird.f32 %v1016_v22 }
 0x44d   : > { %v1292_v20 = vmul.f32 %v4105_v42, %v1291_v35  ;;  %v1289_v44 = vsel %vm1288_vm13, %v4103_v6, %v1285_v46 }
 0x44e   : > { %v1570_v38 = vpop.f32.mrf.mxu2  ;;  %3945 = vmatmul.msk.bf16.gmra.mxu2 %vm293_vm0, %v1450_v61  ;;  %v1366_v21 = vmul.f32 %v1289_v44, %v5126_v9 }
 0x44f   : > { %v1293_v11 = vmul.f32 0.5, %v1292_v20  ;;  %v1627_v2 = vadd.f32 %v5256_v3, %v1570_v38  ;;  %v949_v31 = vpop.xlane.xlu1 %948 }
 0x450   : > { %v985_v13 = vmul.f32 %v949_v31, %v4559_v5  ;;  %v1399_v20 = vmul.f32 %v4701_v4, %v1366_v21 }
 0x451   : > { %v1294_v54 = vsub.f32 1.5, %v1293_v11  ;;  %v1652_v62 = vpack.c.bf16 %v1627_v2, %v1626_v24 }
 0x452   : > { %v4107_v37 = vpop.eup %4106  ;;  %v1017_v51 = vadd.f32 1e-05, %v985_v13  ;;  %v5286_v44 = vadd.f32 %v4716_v59, %v1399_v20 }
 0x453   : > { %v1295_v26 = vmul.f32 %v4105_v42, %v1294_v54  ;;  %v1301_v35 = vmul.f32 %v4107_v37, %v1016_v22  ;;  %3964 = vmatmul.msk.bf16.gmra.mxu3 %vm491_vm1, %v1652_v62  ;;  %vm1307_vm3 = vweird.f32 %v4107_v37 }
 0x454   : > { %4108 = vrsqrt.f32 %v1017_v51  ;;  %vm1308_vm5 = vmor %vm1306_vm4, %vm1307_vm3  ;;  %vm1316_vm7 = vweird.f32 %v1017_v51 }
 0x455   : > { %v1299_v6 = vsel %vm1298_vm2, %v4105_v42, %v1295_v26  ;;  %v1302_v32 = vmul.f32 %v4107_v37, %v1301_v35 }
 0x456   : > { %v1367_v46 = vmul.f32 %v1299_v6, %v5155_v53  ;;  %v1573_v61 = vpop.f32.mrf.mxu2 }
 0x457   : > { %v1303_v38 = vmul.f32 0.5, %v1302_v32  ;;  %v1628_v21 = vadd.f32 %v5256_v3, %v1573_v61 }
 0x458   : > { %v1400_v11 = vmul.f32 %v4701_v4, %v1367_v46 }
 0x459   : > { %v1304_v24 = vsub.f32 1.5, %v1303_v38 }
 0x45a   : > { %v4109_v9 = vpop.eup %4108  ;;  %v5289_v18 = vadd.f32 %v4716_v59, %v1400_v11 }
 0x45b   : > { %v1305_v2 = vmul.f32 %v4107_v37, %v1304_v24  ;;  %v1311_v42 = vmul.f32 %v4109_v9, %v1017_v51  ;;  %vm1317_vm6 = vweird.f32 %v4109_v9 }
 0x45c   : > { %v1451_v53 = vpack.c.bf16 %v5289_v18, %v5286_v44  ;;  %vm1318_vm8 = vmor %vm1316_vm7, %vm1317_vm6 }
 0x45d   : > { %v1312_v31 = vmul.f32 %v4109_v9, %v1311_v42  ;;  %v1309_v54 = vsel %vm1308_vm5, %v4107_v37, %v1305_v2  ;;  %v952_v42 = vpop.xlane.xlu2 %951 }
 0x45e   : > { %v1575_v13 = vpop.f32.mrf.mxu2  ;;  %3946 = vmatmul.msk.bf16.gmra.mxu2 %vm293_vm0, %v1451_v53  ;;  %v1368_v32 = vmul.f32 %v1309_v54, %v5168_v0  ;;  %v986_v53 = vmul.f32 %v952_v42, %v4559_v5 }
 0x45f   : > { %v1313_v62 = vmul.f32 0.5, %v1312_v31  ;;  %v1629_v26 = vadd.f32 %v5256_v3, %v1575_v13 }
 0x460   : > { %v1401_v37 = vmul.f32 %v4701_v4, %v1368_v32  ;;  %v1018_v31 = vadd.f32 1e-05, %v986_v53 }
 0x461   : > { %v1314_v35 = vsub.f32 1.5, %v1313_v62  ;;  %v1653_v6 = vpack.c.bf16 %v1629_v26, %v1628_v21 }
 0x462   : > { %v5302_v11 = vadd.f32 %v4716_v59, %v1401_v37  ;;  %4110 = vrsqrt.f32 %v1018_v31  ;;  %vm1326_vm10 = vweird.f32 %v1018_v31 }
 0x463   : > { %v1315_v46 = vmul.f32 %v4109_v9, %v1314_v35  ;;  %3965 = vmatmul.msk.bf16.gmra.mxu3 %vm491_vm1, %v1653_v6 }
 0x465   : > { %v1319_v22 = vsel %vm1318_vm8, %v4109_v9, %v1315_v46 }
 0x466   : > { %v1369_v20 = vmul.f32 %v1319_v22, %v5187_v19  ;;  %v1578_v38 = vpop.f32.mrf.mxu2 }
 0x467   : > { %v1630_v9 = vadd.f32 %v5256_v3, %v1578_v38 }
 0x468   : > { %v1402_v61 = vmul.f32 %v4701_v4, %v1369_v20  ;;  %v4111_v13 = vpop.eup %4110 }
 0x469   : > { %v1321_v54 = vmul.f32 %v4111_v13, %v1018_v31  ;;  %vm1327_vm9 = vweird.f32 %v4111_v13 }
 0x46a   : > { %v5305_v24 = vadd.f32 %v4716_v59, %v1402_v61  ;;  %vm1328_vm11 = vmor %vm1326_vm10, %vm1327_vm9 }
 0x46b   : > { %v1322_v62 = vmul.f32 %v4111_v13, %v1321_v54 }
 0x46c   : > { %v1452_v0 = vpack.c.bf16 %v5305_v24, %v5302_v11 }
 0x46d   : > { %v1323_v6 = vmul.f32 0.5, %v1322_v62 }
 0x46e   : > { %v1580_v51 = vpop.f32.mrf.mxu2  ;;  %3947 = vmatmul.msk.bf16.gmra.mxu2 %vm293_vm0, %v1452_v0 }
 0x46f   : > { %v1631_v19 = vadd.f32 %v5256_v3, %v1580_v51  ;;  %v1324_v32 = vsub.f32 1.5, %v1323_v6 }
 0x471   : > { %v1654_v2 = vpack.c.bf16 %v1631_v19, %v1630_v9  ;;  %v1325_v22 = vmul.f32 %v4111_v13, %v1324_v32 }
 0x473   : > { %3966 = vmatmul.msk.bf16.gmra.mxu3 %vm491_vm1, %v1654_v2  ;;  %v1329_v37 = vsel %vm1328_vm11, %v4111_v13, %v1325_v22 }
 0x474   : > { %v1370_v51 = vmul.f32 %v1329_v37, %v5197_v60  ;;  %v1613_v37 = vadd.f32 %v5256_v3, %v5160_v48  ;;  %v1614_v48 = vadd.f32 %v5256_v3, %v5183_v45  ;;  %v1619_v45 = vadd.f32 %v5256_v3, %v5219_v33 }
 0x475   : > { %v1622_v33 = vadd.f32 %v5256_v3, %v5227_v63 }
 0x476   : > { %v1403_v53 = vmul.f32 %v4701_v4, %v1370_v51 }
 0x478   : > { %v5320_v31 = vadd.f32 %v4716_v59, %v1403_v53 }
 0x4aa   : > { %v955_v21 = vpop.xlane.xlu0 %954 }
 0x4ab   : > { %v987_v26 = vmul.f32 %v955_v21, %v4559_v5 }
 0x4ad   : > { %v1019_v35 = vadd.f32 1e-05, %v987_v26 }
 0x4af   : > { %4112 = vrsqrt.f32 %v1019_v35  ;;  %vm1336_vm13 = vweird.f32 %v1019_v35 }
 0x4b5   : > { %v4113_v46 = vpop.eup %4112 }
 0x4b6   : > { %v1331_v20 = vmul.f32 %v4113_v46, %v1019_v35  ;;  %vm1337_vm12 = vweird.f32 %v4113_v46  ;;  %v1611_v35 = vadd.f32 %v5256_v3, %v5105_v15  ;;  %v1612_v15 = vadd.f32 %v5256_v3, %v5134_v57 }
 0x4b7   : > { %vm1338_vm14 = vmor %vm1336_vm13, %vm1337_vm12 }
 0x4b8   : > { %v1332_v38 = vmul.f32 %v4113_v46, %v1331_v20 }
 0x4ba   : > { %v1333_v61 = vmul.f32 0.5, %v1332_v38 }
 0x4bc   : > { %v1334_v0 = vsub.f32 1.5, %v1333_v61  ;;  %v1645_v61 = vpack.c.bf16 %v1613_v37, %v1612_v15 }
 0x4be   : > { %v1335_v9 = vmul.f32 %v4113_v46, %v1334_v0 }
 0x4c0   : > { %v1339_v19 = vsel %vm1338_vm14, %v4113_v46, %v1335_v9 }
 0x4c1   : > { %v1371_v2 = vmul.f32 %v1339_v19, %v5236_v8  ;;  %v1583_v42 = vpop.f32.mrf.mxu2 }
 0x4c2   : > { %v1632_v21 = vadd.f32 %v5256_v3, %v1583_v42 }
 0x4c3   : > { %v1404_v54 = vmul.f32 %v4701_v4, %v1371_v2  ;;  %v1615_v2 = vadd.f32 %v5256_v3, %v5205_v36  ;;  %v1616_v36 = vadd.f32 %v5256_v3, %v5213_v49  ;;  %v1623_v49 = vadd.f32 %v5256_v3, %v5230_v40 }
 0x4c5   : > { %v5323_v13 = vadd.f32 %v4716_v59, %v1404_v54  ;;  %v1610_v59 = vadd.f32 %v5256_v3, %v5073_v55  ;;  %v1646_v42 = vpack.c.bf16 %v1615_v2, %v1614_v48 }
 0x4c7   : > { %v1453_v60 = vpack.c.bf16 %v5323_v13, %v5320_v31  ;;  %v1644_v6 = vpack.c.bf16 %v1611_v35, %v1610_v59  ;;  %v1650_v59 = vpack.c.bf16 %v1623_v49, %v1622_v33 }
 0x4c9   : > { %v1585_v62 = vpop.f32.mrf.mxu2  ;;  %3948 = vmatmul.msk.bf16.gmra.mxu2 %vm293_vm0, %v1453_v60 }
 0x4ca   : > { %v1633_v8 = vadd.f32 %v5256_v3, %v1585_v62  ;;  %v1617_v62 = vadd.f32 %v5256_v3, %v5215_v16  ;;  %v1620_v16 = vadd.f32 %v5256_v3, %v5222_v41  ;;  %v5380_v41 = vld [vmem:[%s6989_s4 + $0x4] sm:$0x7] }
 0x4cb   : > { %v5384_v40 = vperm.slane %v5380_v41, 0 }
 0x4cc   : > { %v1655_v26 = vpack.c.bf16 %v1633_v8, %v1632_v21  ;;  %v1647_v21 = vpack.c.bf16 %v1617_v62, %v1616_v36  ;;  %v1618_v8 = vadd.f32 %v5256_v3, %v5217_v14 }
 0x4ce   : > { %3967 = vmatmul.msk.bf16.gmra.mxu3 %vm491_vm1, %v1655_v26  ;;  %v1648_v26 = vpack.c.bf16 %v1619_v45, %v1618_v8 }
 0x4d1   : > { %v1588_v4 = vpop.f32.mrf.mxu2 }
 0x4d2   : > { %v1634_v46 = vadd.f32 %v5256_v3, %v1588_v4  ;;  %v1621_v4 = vadd.f32 %v5256_v3, %v5224_v12 }
 0x4d4   : > { %v1649_v35 = vpack.c.bf16 %v1621_v4, %v1620_v16 }
 0x4d9   : > { %v1590_v32 = vpop.f32.mrf.mxu2  ;;  %3956 = vmatmul.msk.bf16.vlgmr.msrb.gmra.mxu2 %vm491_vm1, %v1644_v6 }
 0x4da   : > { %v1635_v22 = vadd.f32 %v5256_v3, %v1590_v32 }
 0x4dc   : > { %v1656_v20 = vpack.c.bf16 %v1635_v22, %v1634_v46 }
 0x4de   : > { %3968 = vmatmul.msk.bf16.gmra.mxu3 %vm491_vm1, %v1656_v20 }
 0x4e1   : > { %v1593_v38 = vpop.f32.mrf.mxu2 }
 0x4e2   : > { %v1636_v0 = vadd.f32 %v5256_v3, %v1593_v38 }
 0x4e9   : > { %v1595_v55 = vpop.f32.mrf.mxu2  ;;  %3957 = vmatmul.msk.bf16.gmra.mxu2 %vm491_vm1, %v1645_v61 }
 0x4ea   : > { %v1637_v51 = vadd.f32 %v5256_v3, %v1595_v55 }
 0x4ec   : > { %v1657_v9 = vpack.c.bf16 %v1637_v51, %v1636_v0 }
 0x4ee   : > { %3969 = vmatmul.msk.bf16.gmra.mxu3 %vm491_vm1, %v1657_v9 }
 0x4f1   : > { %v1598_v19 = vpop.f32.mrf.mxu2 }
 0x4f2   : > { %v1638_v53 = vadd.f32 %v5256_v3, %v1598_v19 }
 0x4f9   : > { %v1600_v57 = vpop.f32.mrf.mxu2  ;;  %3958 = vmatmul.msk.bf16.gmra.mxu2 %vm491_vm1, %v1646_v42 }
 0x4fa   : > { %v1639_v54 = vadd.f32 %v5256_v3, %v1600_v57 }
 0x4fc   : > { %v1658_v60 = vpack.c.bf16 %v1639_v54, %v1638_v53 }
 0x4fe   : > { %3970 = vmatmul.msk.bf16.gmra.mxu3 %vm491_vm1, %v1658_v60 }
 0x509   : > { %3959 = vmatmul.msk.bf16.gmra.mxu2 %vm491_vm1, %v1647_v21 }
 0x519   : > { %3960 = vmatmul.msk.bf16.gmra.mxu2 %vm491_vm1, %v1648_v26 }
 0x529   : > { %3961 = vmatmul.msk.bf16.gmra.mxu2 %vm491_vm1, %v1649_v35 }
 0x539   : > { %3962 = vmatmul.msk.bf16.gmra.mxu2 %vm491_vm1, %v1650_v59 }
 0x54c   : > { %v1603_v14 = vpop.f32.mrf.mxu2 }
 0x54d   : > { %v1640_v32 = vadd.f32 %v5256_v3, %v1603_v14 }
 0x554   : > { %v1605_v6 = vpop.f32.mrf.mxu2 }
 0x555   : > { %v1641_v12 = vadd.f32 %v5256_v3, %v1605_v6 }
 0x557   : > { %v1659_v46 = vpack.c.bf16 %v1641_v12, %v1640_v32 }
 0x559   : > { %3971 = vmatmul.msk.bf16.gmra.mxu3 %vm491_vm1, %v1659_v46 }
 0x55c   : > { %v1727_v63 = vpop.f32.mrf.mxu2 }
 0x55d   : > { %v1728_v22 = vadd.f32 %v1727_v63, %v5384_v40 }
 0x55f   : > { %v1807_v20 = vadd.f32 %v1728_v22, %v4730_v29 }
 0x561   : > { %v1839_v38 = vsel %vm293_vm0, %v1807_v20, 0.0 }
 0x562   : > { %1840 = vadd.xlane.f32.xlu1 %v1839_v38 }
 0x564   : > { %v1729_v3 = vpop.f32.mrf.mxu2 }
 0x565   : > { %v1730_v37 = vadd.f32 %v1729_v3, %v5384_v40 }
 0x567   : > { %v1808_v15 = vadd.f32 %v1730_v37, %v4733_v58 }
 0x569   : > { %v1842_v61 = vsel %vm293_vm0, %v1808_v15, 0.0 }
 0x56a   : > { %1843 = vadd.xlane.f32.xlu2 %v1842_v61 }
 0x56c   : > { %v1732_v55 = vpop.f32.mrf.mxu2 }
 0x56d   : > { %v1733_v0 = vadd.f32 %v1732_v55, %v5384_v40 }
 0x56f   : > { %v1809_v51 = vadd.f32 %v1733_v0, %v4783_v27 }
 0x571   : > { %v1845_v9 = vsel %vm293_vm0, %v1809_v51, 0.0 }
 0x572   : > { %1846 = vadd.xlane.f32.xlu0 %v1845_v9 }
 0x574   : > { %v1734_v29 = vpop.f32.mrf.mxu2 }
 0x575   : > { %v1735_v19 = vadd.f32 %v1734_v29, %v5384_v40 }
 0x577   : > { %v1810_v2 = vadd.f32 %v1735_v19, %v4786_v23 }
 0x579   : > { %v1848_v48 = vsel %vm293_vm0, %v1810_v2, 0.0 }
 0x57a   : > { %1849 = vadd.xlane.f32.xlu1 %v1848_v48 }
 0x57c   : > { %v1737_v58 = vpop.f32.mrf.mxu2 }
 0x57d   : > { %v1738_v42 = vadd.f32 %v1737_v58, %v5384_v40 }
 0x57f   : > { %v1811_v57 = vadd.f32 %v1738_v42, %v4823_v34 }
 0x581   : > { %v1851_v53 = vsel %vm293_vm0, %v1811_v57, 0.0 }
 0x582   : > { %1852 = vadd.xlane.f32.xlu2 %v1851_v53 }
 0x584   : > { %v1739_v27 = vpop.f32.mrf.mxu2 }
 0x585   : > { %v1740_v54 = vadd.f32 %v1739_v27, %v5384_v40 }
 0x587   : > { %v5403_v60 = vadd.f32 %v1740_v54, %v4826_v10 }
 0x589   : > { %v1854_v23 = vsel %vm293_vm0, %v5403_v60, 0.0 }
 0x58a   : > { %1855 = vadd.xlane.f32.xlu0 %v1854_v23 }
 0x58c   : > { %v1742_v62 = vpop.f32.mrf.mxu2 }
 0x58d   : > { %v1743_v36 = vadd.f32 %v1742_v62, %v5384_v40 }
 0x58f   : > { %v5409_v21 = vadd.f32 %v1743_v36, %v4875_v7 }
 0x591   : > { %v1857_v34 = vsel %vm293_vm0, %v5409_v21, 0.0 }
 0x592   : > { %1858 = vadd.xlane.f32.xlu0 %v1857_v34 }
 0x594   : > { %v1744_v45 = vpop.f32.mrf.mxu2 }
 0x595   : > { %v1745_v35 = vadd.f32 %v1744_v45, %v5384_v40 }
 0x597   : > { %v5424_v14 = vadd.f32 %v1745_v35, %v4878_v52 }
 0x599   : > { %v1860_v63 = vsel %vm293_vm0, %v5424_v14, 0.0 }
 0x59c   : > { %v1747_v10 = vpop.f32.mrf.mxu2 }
 0x59d   : > { %v1748_v12 = vadd.f32 %v1747_v10, %v5384_v40 }
 0x59f   : > { %v5436_v52 = vadd.f32 %v1748_v12, %v4931_v47 }
 0x5a1   : > { %v1863_v55 = vsel %vm293_vm0, %v5436_v52, 0.0 }
 0x5a4   : > { %v1749_v6 = vpop.f32.mrf.mxu2 }
 0x5ac   : > { %v1752_v37 = vpop.f32.mrf.mxu2 }
 0x5ad   : > { %v1753_v19 = vadd.f32 %v1752_v37, %v5384_v40  ;;  %v4032_v37 = vld [vmem:[%s6986_s1 + $0x28] sm:$0xff] }
 0x5ae   : > { %2696 = vmatpush.bf16.msrb.mxu1 %v4032_v37 }
 0x5b4   : > { %v1754_v42 = vpop.f32.mrf.mxu2 }
 0x5b5   : > { %v1755_v23 = vadd.f32 %v1754_v42, %v5384_v40 }
 0x5d5   : > { %v1841_v8 = vpop.xlane.xlu1 %1840 }
 0x5d6   : > { %v1935_v26 = vmul.f32 %v1841_v8, %v4559_v5 }
 0x5d8   : > { %v5414_v4 = vsub.f32 %v1807_v20, %v1935_v26 }
 0x5da   : > { %v1999_v16 = vmul.f32 %v5414_v4, %v5414_v4 }
 0x5dc   : > { %v2031_v49 = vsel %vm293_vm0, %v1999_v16, 0.0 }
 0x5dd   : > { %v1844_v7 = vpop.xlane.xlu2 %1843  ;;  %2032 = vadd.xlane.f32.xlu1 %v2031_v49 }
 0x5de   : > { %v1936_v33 = vmul.f32 %v1844_v7, %v4559_v5 }
 0x5e0   : > { %v5421_v59 = vsub.f32 %v1808_v15, %v1936_v33  ;;  %v1750_v15 = vadd.f32 %v1749_v6, %v5384_v40 }
 0x5e2   : > { %v2000_v32 = vmul.f32 %v5421_v59, %v5421_v59  ;;  %v5448_v47 = vadd.f32 %v1750_v15, %v4934_v25  ;;  %v5460_v25 = vadd.f32 %v1753_v19, %v4984_v43  ;;  %v5473_v43 = vadd.f32 %v1755_v23, %v4987_v30 }
 0x5e4   : > { %v2034_v46 = vsel %vm293_vm0, %v2000_v32, 0.0  ;;  %v1866_v48 = vsel %vm293_vm0, %v5448_v47, 0.0  ;;  %v1869_v62 = vsel %vm293_vm0, %v5460_v25, 0.0  ;;  %v1872_v35 = vsel %vm293_vm0, %v5473_v43, 0.0 }
 0x5e5   : > { %v1847_v22 = vpop.xlane.xlu0 %1846  ;;  %2035 = vadd.xlane.f32.xlu2 %v2034_v46  ;;  %1861 = vadd.xlane.f32.xlu1 %v1860_v63 }
 0x5e6   : > { %v1937_v20 = vmul.f32 %v1847_v22, %v4559_v5 }
 0x5e8   : > { %v5433_v38 = vsub.f32 %v1809_v51, %v1937_v20 }
 0x5ea   : > { %v2001_v3 = vmul.f32 %v5433_v38, %v5433_v38 }
 0x5ec   : > { %v2037_v61 = vsel %vm293_vm0, %v2001_v3, 0.0 }
 0x5ed   : > { %2038 = vadd.xlane.f32.xlu2 %v2037_v61  ;;  %1864 = vadd.xlane.f32.xlu1 %v1863_v55  ;;  %v1850_v0 = vpop.xlane.xlu1 %1849  ;;  %v4031_v61 = vld [vmem:[%s6986_s1 + $0x20] sm:$0xff] }
 0x5ee   : > { %v1938_v51 = vmul.f32 %v1850_v0, %v4559_v5  ;;  %2697 = vmatpush.bf16.msrb.mxu1 %v4031_v61 }
 0x5f0   : > { %v5445_v9 = vsub.f32 %v1810_v2, %v1938_v51 }
 0x5f2   : > { %v2002_v29 = vmul.f32 %v5445_v9, %v5445_v9 }
 0x5f4   : > { %v2040_v58 = vsel %vm293_vm0, %v2002_v29, 0.0 }
 0x5f5   : > { %1867 = vadd.xlane.f32.xlu2 %v1866_v48  ;;  %v1853_v53 = vpop.xlane.xlu2 %1852  ;;  %2041 = vadd.xlane.f32.xlu0 %v2040_v58 }
 0x5f6   : > { %v1939_v2 = vmul.f32 %v1853_v53, %v4559_v5 }
 0x5f8   : > { %v5457_v27 = vsub.f32 %v1811_v57, %v1939_v2  ;;  %v1757_v57 = vpop.f32.mrf.mxu2 }
 0x5f9   : > { %v1758_v10 = vadd.f32 %v1757_v57, %v5384_v40 }
 0x5fa   : > { %v2003_v54 = vmul.f32 %v5457_v27, %v5457_v27 }
 0x5fb   : > { %v5486_v30 = vadd.f32 %v1758_v10, %v5030_v28 }
 0x5fc   : > { %v2043_v36 = vsel %vm293_vm0, %v2003_v54, 0.0 }
 0x5fd   : > { %v1856_v34 = vpop.xlane.xlu0 %1855  ;;  %1870 = vadd.xlane.f32.xlu2 %v1869_v62  ;;  %2044 = vadd.xlane.f32.xlu0 %v2043_v36  ;;  %v1875_v46 = vsel %vm293_vm0, %v5486_v30, 0.0 }
 0x5fe   : > { %v1940_v45 = vmul.f32 %v1856_v34, %v4559_v5 }
 0x600   : > { %v5470_v8 = vsub.f32 %v5403_v60, %v1940_v45  ;;  %v1759_v33 = vpop.f32.mrf.mxu2 }
 0x601   : > { %v1760_v32 = vadd.f32 %v1759_v33, %v5384_v40 }
 0x602   : > { %v2004_v26 = vmul.f32 %v5470_v8, %v5470_v8 }
 0x603   : > { %v5495_v63 = vadd.f32 %v1760_v32, %v5033_v50 }
 0x604   : > { %v2046_v16 = vsel %vm293_vm0, %v2004_v26, 0.0 }
 0x605   : > { %v1859_v49 = vpop.xlane.xlu0 %1858  ;;  %2047 = vadd.xlane.f32.xlu1 %v2046_v16  ;;  %1873 = vadd.xlane.f32.xlu0 %v1872_v35  ;;  %v1878_v22 = vsel %vm293_vm0, %v5495_v63, 0.0 }
 0x606   : > { %v1941_v7 = vmul.f32 %v1859_v49, %v4559_v5 }
 0x608   : > { %v5483_v60 = vsub.f32 %v5409_v21, %v1941_v7  ;;  %v1762_v21 = vpop.f32.mrf.mxu3 }
 0x609   : > { %v1763_v28 = vadd.f32 %v1762_v21, %v5384_v40 }
 0x60a   : > { %v2005_v6 = vmul.f32 %v5483_v60, %v5483_v60 }
 0x60b   : > { %v5501_v20 = vadd.f32 %v1763_v28, %v5084_v1 }
 0x60c   : > { %v2049_v12 = vsel %vm293_vm0, %v2005_v6, 0.0 }
 0x60d   : > { %2050 = vadd.xlane.f32.xlu1 %v2049_v12  ;;  %1876 = vadd.xlane.f32.xlu0 %v1875_v46  ;;  %v1881_v3 = vsel %vm293_vm0, %v5501_v20, 0.0 }
 0x610   : > { %v1764_v1 = vpop.f32.mrf.mxu3 }
 0x611   : > { %v1765_v6 = vadd.f32 %v1764_v1, %v5384_v40 }
 0x615   : > { %1879 = vadd.xlane.f32.xlu1 %v1878_v22 }
 0x618   : > { %v1767_v45 = vpop.f32.mrf.mxu3 }
 0x61d   : > { %1882 = vadd.xlane.f32.xlu1 %v1881_v3 }
 0x620   : > { %v1769_v61 = vpop.f32.mrf.mxu3 }
 0x650   : > { %v2033_v50 = vpop.xlane.xlu1 %2032 }
 0x651   : > { %v2127_v15 = vmul.f32 %v2033_v50, %v4559_v5  ;;  %v5535_v50 = vadd.f32 %v1765_v6, %v5087_v17 }
 0x653   : > { %v2159_v55 = vadd.f32 1e-05, %v2127_v15 }
 0x655   : > { %4114 = vrsqrt.f32 %v2159_v55  ;;  %vm2197_vm2 = vweird.f32 %v2159_v55 }
 0x658   : > { %v2036_v0 = vpop.xlane.xlu2 %2035  ;;  %v1862_v51 = vpop.xlane.xlu1 %1861 }
 0x659   : > { %v2128_v29 = vmul.f32 %v2036_v0, %v4559_v5  ;;  %v1942_v19 = vmul.f32 %v1862_v51, %v4559_v5 }
 0x65b   : > { %v4115_v48 = vpop.eup %4114  ;;  %v2160_v58 = vadd.f32 1e-05, %v2128_v29  ;;  %v5515_v42 = vsub.f32 %v5424_v14, %v1942_v19 }
 0x65c   : > { %v2192_v53 = vmul.f32 %v4115_v48, %v2159_v55  ;;  %vm2198_vm15 = vweird.f32 %v4115_v48  ;;  %v5538_v55 = vperm.slane %v5380_v41, 1 }
 0x65d   : > { %4116 = vrsqrt.f32 %v2160_v58  ;;  %v2006_v2 = vmul.f32 %v5515_v42, %v5515_v42  ;;  %vm2199_vm3 = vmor %vm2197_vm2, %vm2198_vm15  ;;  %vm2207_vm5 = vweird.f32 %v2160_v58 }
 0x65e   : > { %v2193_v54 = vmul.f32 %v4115_v48, %v2192_v53 }
 0x65f   : > { %v2052_v23 = vsel %vm293_vm0, %v2006_v2, 0.0 }
 0x660   : > { %v2194_v62 = vmul.f32 0.5, %v2193_v54  ;;  %v2039_v36 = vpop.xlane.xlu2 %2038  ;;  %2053 = vadd.xlane.f32.xlu2 %v2052_v23  ;;  %v1865_v34 = vpop.xlane.xlu1 %1864 }
 0x661   : > { %v2129_v57 = vmul.f32 %v2039_v36, %v4559_v5  ;;  %v1943_v26 = vmul.f32 %v1865_v34, %v4559_v5 }
 0x662   : > { %v2195_v10 = vsub.f32 1.5, %v2194_v62 }
 0x663   : > { %v4117_v14 = vpop.eup %4116  ;;  %v5522_v16 = vadd.f32 1e-05, %v2129_v57  ;;  %v5525_v35 = vsub.f32 %v5436_v52, %v1943_v26 }
 0x664   : > { %v2196_v49 = vmul.f32 %v4115_v48, %v2195_v10  ;;  %v2202_v7 = vmul.f32 %v4117_v14, %v2160_v58  ;;  %vm2208_vm4 = vweird.f32 %v4117_v14 }
 0x665   : > { %4118 = vrsqrt.f32 %v5522_v16  ;;  %v2007_v33 = vmul.f32 %v5525_v35, %v5525_v35  ;;  %vm2209_vm6 = vmor %vm2207_vm5, %vm2208_vm4  ;;  %vm2217_vm8 = vweird.f32 %v5522_v16 }
 0x666   : > { %v2203_v32 = vmul.f32 %v4117_v14, %v2202_v7  ;;  %v2200_v46 = vsel %vm2199_vm3, %v4115_v48, %v2196_v49  ;;  %v1768_v48 = vadd.f32 %v1767_v45, %v5384_v40 }
 0x667   : > { %v2055_v12 = vsel %vm293_vm0, %v2007_v33, 0.0  ;;  %v2511_v1 = vmul.f32 %v2200_v46, %v5414_v4  ;;  %v1884_v4 = vsel %vm293_vm0, %v5535_v50, 0.0  ;;  %v1772_v46 = vpop.f32.mrf.mxu3 }
 0x668   : > { %v2204_v21 = vmul.f32 0.5, %v2203_v32  ;;  %v1868_v28 = vpop.xlane.xlu2 %1867  ;;  %v2042_v52 = vpop.xlane.xlu0 %2041  ;;  %2056 = vadd.xlane.f32.xlu2 %v2055_v12 }
 0x669   : > { %v1944_v22 = vmul.f32 %v1868_v28, %v4559_v5  ;;  %v2130_v3 = vmul.f32 %v2042_v52, %v4559_v5  ;;  %v2544_v23 = vmul.f32 %v5538_v55, %v2511_v1  ;;  %v1770_v28 = vadd.f32 %v1769_v61, %v5384_v40 }
 0x66a   : > { %v2205_v37 = vsub.f32 1.5, %v2204_v21 }
 0x66b   : > { %v4119_v15 = vpop.eup %4118  ;;  %v5542_v0 = vsub.f32 %v5448_v47, %v1944_v22  ;;  %v2162_v51 = vadd.f32 1e-05, %v2130_v3  ;;  %v5551_v47 = vperm.slane %v5380_v41, 2  ;;  %v7021_v41 = vld [vmem:[#allocation2_spill] sm:$0xff]  ;;  %v7025_v22 = vld [vmem:[#allocation4_spill] sm:$0xff] }
 0x66c   : > { %v2206_v29 = vmul.f32 %v4117_v14, %v2205_v37  ;;  %v2212_v19 = vmul.f32 %v4119_v15, %v5522_v16  ;;  %vm2218_vm7 = vweird.f32 %v4119_v15 }
 0x66d   : > { %4120 = vrsqrt.f32 %v2162_v51  ;;  %v2008_v17 = vmul.f32 %v5542_v0, %v5542_v0  ;;  %v5568_v33 = vadd.f32 %v5551_v47, %v2544_v23  ;;  %vm5580_vm9 = vmor %vm2217_vm8, %vm2218_vm7  ;;  %vm2227_vm11 = vweird.f32 %v2162_v51 }
 0x66e   : > { %v2210_v53 = vsel %vm2209_vm6, %v4117_v14, %v2206_v29  ;;  %v2213_v2 = vmul.f32 %v4119_v15, %v2212_v19  ;;  %v5560_v14 = vadd.f32 %v1768_v48, %v7021_v41 }
 0x66f   : > { %v2512_v54 = vmul.f32 %v2210_v53, %v5421_v59  ;;  %v2058_v58 = vsel %vm293_vm0, %v2008_v17, 0.0  ;;  %v7024_v53 = vld [vmem:[#allocation3_spill] sm:$0xff] }
 0x670   : > { %v2214_v62 = vmul.f32 0.5, %v2213_v2  ;;  %v1871_v36 = vpop.xlane.xlu2 %1870  ;;  %2059 = vadd.xlane.f32.xlu0 %v2058_v58  ;;  %v2045_v34 = vpop.xlane.xlu0 %2044  ;;  %1885 = vadd.xlane.f32.xlu2 %v1884_v4  ;;  %v1887_v37 = vsel %vm293_vm0, %v5560_v14, 0.0  ;;  %v5593_v2 = vadd.f32 %v1770_v28, %v7024_v53 }
 0x671   : > { %v1945_v45 = vmul.f32 %v1871_v36, %v4559_v5  ;;  %v2131_v57 = vmul.f32 %v2045_v34, %v4559_v5  ;;  %v2545_v26 = vmul.f32 %v5538_v55, %v2512_v54 }
 0x672   : > { %v2215_v10 = vsub.f32 1.5, %v2214_v62 }
 0x673   : > { %v4121_v59 = vpop.eup %4120  ;;  %v5563_v49 = vsub.f32 %v5460_v25, %v1945_v45  ;;  %v5565_v7 = vadd.f32 1e-05, %v2131_v57  ;;  %v5571_v6 = vadd.f32 %v5551_v47, %v2545_v26  ;;  %v1890_v57 = vsel %vm293_vm0, %v5593_v2, 0.0  ;;  %v1774_v26 = vpop.f32.mrf.mxu3 }
 0x674   : > { %v2216_v32 = vmul.f32 %v4119_v15, %v2215_v10  ;;  %v2222_v12 = vmul.f32 %v4121_v59, %v2162_v51  ;;  %vm2228_vm10 = vweird.f32 %v4121_v59 }
 0x675   : > { %4122 = vrsqrt.f32 %v5565_v7  ;;  %v2609_v21 = vpack.c.bf16 %v5571_v6, %v5568_v33  ;;  %v2009_v25 = vmul.f32 %v5563_v49, %v5563_v49  ;;  %vm2229_vm12 = vmor %vm2227_vm11, %vm2228_vm10  ;;  %vm2237_vm14 = vweird.f32 %v5565_v7 }
 0x676   : > { %v2223_v52 = vmul.f32 %v4121_v59, %v2222_v12  ;;  %v2220_v1 = vsel %vm5580_vm9, %v4119_v15, %v2216_v32 }
 0x677   : > { %3984 = vmatmul.msk.bf16.vlgmr.msrb.gmra.mxu1 %vm293_vm0, %v2609_v21  ;;  %v2061_v3 = vsel %vm293_vm0, %v2009_v25, 0.0  ;;  %v2513_v54 = vmul.f32 %v2220_v1, %v5433_v38  ;;  %v1773_v38 = vadd.f32 %v1772_v46, %v5384_v40 }
 0x678   : > { %v2224_v29 = vmul.f32 0.5, %v2223_v52  ;;  %2062 = vadd.xlane.f32.xlu0 %v2061_v3  ;;  %v1874_v61 = vpop.xlane.xlu0 %1873  ;;  %1888 = vadd.xlane.f32.xlu2 %v1887_v37  ;;  %v2048_v16 = vpop.xlane.xlu1 %2047 }
 0x679   : > { %v1946_v19 = vmul.f32 %v1874_v61, %v4559_v5  ;;  %v2132_v17 = vmul.f32 %v2048_v16, %v4559_v5  ;;  %v2546_v51 = vmul.f32 %v5538_v55, %v2513_v54  ;;  %v5622_v3 = vadd.f32 %v1773_v38, %v7025_v22 }
 0x67a   : > { %v2225_v48 = vsub.f32 1.5, %v2224_v29 }
 0x67b   : > { %v4123_v4 = vpop.eup %4122  ;;  %v5597_v58 = vsub.f32 %v5473_v43, %v1946_v19  ;;  %v2164_v15 = vadd.f32 1e-05, %v2132_v17  ;;  %v1893_v19 = vsel %vm293_vm0, %v5622_v3, 0.0 }
 0x67c   : > { %v2226_v23 = vmul.f32 %v4121_v59, %v2225_v48  ;;  %v2232_v62 = vmul.f32 %v4123_v4, %v5565_v7  ;;  %vm2238_vm13 = vweird.f32 %v4123_v4  ;;  %v7026_v7 = vld [vmem:[#allocation5_spill] sm:$0xff] }
 0x67d   : > { %4124 = vrsqrt.f32 %v2164_v15  ;;  %v2010_v36 = vmul.f32 %v5597_v58, %v5597_v58  ;;  %vm2239_vm15 = vmor %vm2237_vm14, %vm2238_vm13  ;;  %vm2247_vm3 = vweird.f32 %v2164_v15 }
 0x67e   : > { %v2230_v34 = vsel %vm2229_vm12, %v4121_v59, %v2226_v23  ;;  %v2233_v45 = vmul.f32 %v4123_v4, %v2232_v62  ;;  %v1777_v62 = vpop.f32.mrf.mxu3 }
 0x67f   : > { %v2514_v43 = vmul.f32 %v2230_v34, %v5445_v9  ;;  %v2064_v10 = vsel %vm293_vm0, %v2010_v36, 0.0  ;;  %v5616_v9 = vadd.f32 %v5551_v47, %v2546_v51 }
 0x680   : > { %v2234_v41 = vmul.f32 0.5, %v2233_v45  ;;  %1891 = vadd.xlane.f32.xlu0 %v1890_v57  ;;  %2065 = vadd.xlane.f32.xlu1 %v2064_v10  ;;  %v1877_v32 = vpop.xlane.xlu0 %1876  ;;  %v5608_v12 = vpop.xlane.xlu1 %2050  ;;  %v1778_v10 = vadd.f32 %v1777_v62, %v5384_v40 }
 0x681   : > { %v1947_v59 = vmul.f32 %v1877_v32, %v4559_v5  ;;  %v2547_v21 = vmul.f32 %v5538_v55, %v2514_v43  ;;  %v2133_v62 = vmul.f32 %v5608_v12, %v4559_v5 }
 0x682   : > { %v2235_v25 = vsub.f32 1.5, %v2234_v41 }
 0x683   : > { %v4125_v28 = vpop.eup %4124  ;;  %v5613_v46 = vsub.f32 %v5486_v30, %v1947_v59  ;;  %v5619_v52 = vadd.f32 %v5551_v47, %v2547_v21  ;;  %v1775_v30 = vadd.f32 %v1774_v26, %v5384_v40 }
 0x684   : > { %v2236_v37 = vmul.f32 %v4123_v4, %v2235_v25  ;;  %v2242_v1 = vmul.f32 %v4125_v28, %v2164_v15  ;;  %vm2248_vm2 = vweird.f32 %v4125_v28 }
 0x685   : > { %v2610_v29 = vpack.c.bf16 %v5619_v52, %v5616_v9  ;;  %v2011_v61 = vmul.f32 %v5613_v46, %v5613_v46  ;;  %v5636_v34 = vadd.f32 %v1775_v30, %v7026_v7  ;;  %vm2249_vm4 = vmor %vm2247_vm3, %vm2248_vm2  ;;  %v7028_v30 = vld [vmem:[#allocation7_spill] sm:$0xff] }
 0x686   : > { %v2243_v16 = vmul.f32 %v4125_v28, %v2242_v1  ;;  %v2240_v48 = vsel %vm2239_vm15, %v4123_v4, %v2236_v37  ;;  %v1779_v22 = vpop.f32.mrf.mxu3 }
 0x687   : > { %3985 = vmatmul.msk.bf16.gmra.mxu1 %vm293_vm0, %v2610_v29  ;;  %v2067_v17 = vsel %vm293_vm0, %v2011_v61, 0.0  ;;  %v2515_v45 = vmul.f32 %v2240_v48, %v5457_v27  ;;  %v1896_v43 = vsel %vm293_vm0, %v5636_v34, 0.0  ;;  %v1780_v29 = vadd.f32 %v1779_v22, %v5384_v40 }
 0x688   : > { %v2244_v53 = vmul.f32 0.5, %v2243_v16  ;;  %1894 = vadd.xlane.f32.xlu0 %v1893_v19  ;;  %2068 = vadd.xlane.f32.xlu1 %v2067_v17  ;;  %v1880_v54 = vpop.xlane.xlu1 %1879 }
 0x689   : > { %v1948_v23 = vmul.f32 %v1880_v54, %v4559_v5  ;;  %v2548_v27 = vmul.f32 %v5538_v55, %v2515_v45  ;;  %v5674_v16 = vadd.f32 %v1780_v29, %v7028_v30 }
 0x68a   : > { %v2245_v36 = vsub.f32 1.5, %v2244_v53  ;;  %v7029_v53 = vld [vmem:[#allocation8_spill] sm:$0xff] }
 0x68b   : > { %v5640_v57 = vsub.f32 %v5495_v63, %v1948_v23  ;;  %v5656_v21 = vadd.f32 %v5551_v47, %v2548_v27  ;;  %v1902_v48 = vsel %vm293_vm0, %v5674_v16, 0.0 }
 0x68c   : > { %v2246_v38 = vmul.f32 %v4125_v28, %v2245_v36  ;;  %v2165_v36 = vadd.f32 1e-05, %v2133_v62 }
 0x68d   : > { %v2012_v4 = vmul.f32 %v5640_v57, %v5640_v57 }
 0x68e   : > { %v2250_v26 = vsel %vm2249_vm4, %v4125_v28, %v2246_v38  ;;  %v1782_v19 = vpop.f32.mrf.mxu3  ;;  %4126 = vrsqrt.f32 %v2165_v36  ;;  %vm2257_vm6 = vweird.f32 %v2165_v36 }
 0x68f   : > { %v2516_v51 = vmul.f32 %v2250_v26, %v5470_v8  ;;  %v2070_v41 = vsel %vm293_vm0, %v2012_v4, 0.0  ;;  %v7027_v8 = vld [vmem:[#allocation6_spill] sm:$0xff]  ;;  %v1783_v17 = vadd.f32 %v1782_v19, %v5384_v40 }
 0x690   : > { %1897 = vadd.xlane.f32.xlu1 %v1896_v43  ;;  %2071 = vadd.xlane.f32.xlu2 %v2070_v41  ;;  %v1883_v63 = vpop.xlane.xlu1 %1882  ;;  %v5662_v28 = vadd.f32 %v1778_v10, %v7027_v8 }
 0x691   : > { %v1949_v15 = vmul.f32 %v1883_v63, %v4559_v5  ;;  %v2549_v32 = vmul.f32 %v5538_v55, %v2516_v51  ;;  %v5680_v54 = vadd.f32 %v1783_v17, %v7029_v53  ;;  %v4033_v63 = vld [vmem:[%s6988_s3 + $0x10] sm:$0xff] }
 0x692   : > { %2896 = vmatpush.bf16.msrb.mxu3 %v4033_v63 }
 0x693   : > { %v5653_v59 = vsub.f32 %v5501_v20, %v1949_v15  ;;  %v5659_v25 = vadd.f32 %v5551_v47, %v2549_v32  ;;  %v1899_v20 = vsel %vm293_vm0, %v5662_v28, 0.0  ;;  %v1905_v23 = vsel %vm293_vm0, %v5680_v54, 0.0 }
 0x694   : > { %v4127_v7 = vpop.eup %4126 }
 0x695   : > { %v2611_v37 = vpack.c.bf16 %v5659_v25, %v5656_v21  ;;  %v2013_v1 = vmul.f32 %v5653_v59, %v5653_v59  ;;  %v2252_v45 = vmul.f32 %v4127_v7, %v2165_v36  ;;  %vm2258_vm5 = vweird.f32 %v4127_v7 }
 0x696   : > { %vm2259_vm7 = vmor %vm2257_vm6, %vm2258_vm5 }
 0x697   : > { %3986 = vmatmul.msk.bf16.gmra.mxu1 %vm293_vm0, %v2611_v37  ;;  %v2073_v61 = vsel %vm293_vm0, %v2013_v1, 0.0  ;;  %v2253_v38 = vmul.f32 %v4127_v7, %v2252_v45  ;;  %v1784_v37 = vpop.f32.mrf.mxu3 }
 0x698   : > { %1900 = vadd.xlane.f32.xlu1 %v1899_v20  ;;  %2074 = vadd.xlane.f32.xlu2 %v2073_v61 }
 0x699   : > { %v2254_v10 = vmul.f32 0.5, %v2253_v38 }
 0x69b   : > { %v2255_v51 = vsub.f32 1.5, %v2254_v10 }
 0x69d   : > { %v2256_v32 = vmul.f32 %v4127_v7, %v2255_v51 }
 0x69f   : > { %v2260_v1 = vsel %vm2259_vm7, %v4127_v7, %v2256_v32 }
 0x6a0   : > { %1903 = vadd.xlane.f32.xlu2 %v1902_v48  ;;  %v2517_v53 = vmul.f32 %v2260_v1, %v5483_v60 }
 0x6a2   : > { %v2550_v60 = vmul.f32 %v5538_v55, %v2517_v53 }
 0x6a4   : > { %v5711_v1 = vadd.f32 %v5551_v47, %v2550_v60 }
 0x6a8   : > { %1906 = vadd.xlane.f32.xlu2 %v1905_v23 }
 0x6d3   : > { %v2054_v4 = vpop.xlane.xlu2 %2053 }
 0x6d4   : > { %v2134_v26 = vmul.f32 %v2054_v4, %v4559_v5 }
 0x6d6   : > { %v2166_v43 = vadd.f32 1e-05, %v2134_v26 }
 0x6d8   : > { %4128 = vrsqrt.f32 %v2166_v43  ;;  %vm2267_vm9 = vweird.f32 %v2166_v43 }
 0x6db   : > { %v2057_v41 = vpop.xlane.xlu2 %2056 }
 0x6dc   : > { %v2135_v27 = vmul.f32 %v2057_v41, %v4559_v5 }
 0x6de   : > { %v4129_v12 = vpop.eup %4128  ;;  %v2167_v15 = vadd.f32 1e-05, %v2135_v27  ;;  %v1787_v27 = vpop.f32.mrf.mxu3 }
 0x6df   : > { %v2262_v8 = vmul.f32 %v4129_v12, %v2166_v43  ;;  %vm2268_vm8 = vweird.f32 %v4129_v12 }
 0x6e0   : > { %4130 = vrsqrt.f32 %v2167_v15  ;;  %vm2269_vm10 = vmor %vm2267_vm9, %vm2268_vm8  ;;  %vm2277_vm12 = vweird.f32 %v2167_v15 }
 0x6e1   : > { %v2263_v22 = vmul.f32 %v4129_v12, %v2262_v8 }
 0x6e3   : > { %v2264_v29 = vmul.f32 0.5, %v2263_v22  ;;  %v2060_v20 = vpop.xlane.xlu0 %2059  ;;  %v1886_v61 = vpop.xlane.xlu2 %1885 }
 0x6e4   : > { %v2136_v30 = vmul.f32 %v2060_v20, %v4559_v5  ;;  %v1950_v19 = vmul.f32 %v1886_v61, %v4559_v5 }
 0x6e5   : > { %v2265_v17 = vsub.f32 1.5, %v2264_v29 }
 0x6e6   : > { %v4131_v48 = vpop.eup %4130  ;;  %v2168_v23 = vadd.f32 1e-05, %v2136_v30  ;;  %v5695_v62 = vsub.f32 %v5535_v50, %v1950_v19 }
 0x6e7   : > { %v2266_v36 = vmul.f32 %v4129_v12, %v2265_v17  ;;  %v2272_v45 = vmul.f32 %v4131_v48, %v2167_v15  ;;  %vm2278_vm11 = vweird.f32 %v4131_v48  ;;  %v1785_v17 = vadd.f32 %v1784_v37, %v5384_v40  ;;  %v1789_v37 = vpop.f32.mrf.mxu3 }
 0x6e8   : > { %4132 = vrsqrt.f32 %v2168_v23  ;;  %v2014_v7 = vmul.f32 %v5695_v62, %v5695_v62  ;;  %vm2279_vm13 = vmor %vm2277_vm12, %vm2278_vm11  ;;  %vm2287_vm15 = vweird.f32 %v2168_v23 }
 0x6e9   : > { %v2270_v38 = vsel %vm2269_vm10, %v4129_v12, %v2266_v36  ;;  %v2273_v4 = vmul.f32 %v4131_v48, %v2272_v45 }
 0x6ea   : > { %v2518_v26 = vmul.f32 %v2270_v38, %v5515_v42  ;;  %v2076_v10 = vsel %vm293_vm0, %v2014_v7, 0.0 }
 0x6eb   : > { %v2274_v51 = vmul.f32 0.5, %v2273_v4  ;;  %v2063_v41 = vpop.xlane.xlu0 %2062  ;;  %2077 = vadd.xlane.f32.xlu0 %v2076_v10  ;;  %v1889_v50 = vpop.xlane.xlu2 %1888 }
 0x6ec   : > { %v2137_v43 = vmul.f32 %v2063_v41, %v4559_v5  ;;  %v1951_v63 = vmul.f32 %v1889_v50, %v4559_v5  ;;  %v2551_v32 = vmul.f32 %v5538_v55, %v2518_v26  ;;  %v7030_v50 = vld [vmem:[#allocation9_spill] sm:$0xff] }
 0x6ed   : > { %v2275_v8 = vsub.f32 1.5, %v2274_v51 }
 0x6ee   : > { %v4133_v12 = vpop.eup %4132  ;;  %v5705_v22 = vadd.f32 1e-05, %v2137_v43  ;;  %v5708_v42 = vsub.f32 %v5560_v14, %v1951_v63  ;;  %v5714_v29 = vadd.f32 %v5551_v47, %v2551_v32  ;;  %v5735_v43 = vadd.f32 %v1785_v17, %v7030_v50 }
 0x6ef   : > { %v2276_v20 = vmul.f32 %v4131_v48, %v2275_v8  ;;  %v2282_v61 = vmul.f32 %v4133_v12, %v2168_v23  ;;  %vm2288_vm14 = vweird.f32 %v4133_v12 }
 0x6f0   : > { %4134 = vrsqrt.f32 %v5705_v22  ;;  %v2612_v30 = vpack.c.bf16 %v5714_v29, %v5711_v1  ;;  %v2015_v19 = vmul.f32 %v5708_v42, %v5708_v42  ;;  %vm2289_vm2 = vmor %vm2287_vm15, %vm2288_vm14  ;;  %vm2297_vm4 = vweird.f32 %v5705_v22 }
 0x6f1   : > { %v2283_v14 = vmul.f32 %v4133_v12, %v2282_v61  ;;  %v2280_v36 = vsel %vm2279_vm13, %v4131_v48, %v2276_v20  ;;  %v5747_v61 = vld [vmem:[%s6987_s2 + $0x2] ss:$0 sm:$0xff] }
 0x6f2   : > { %3987 = vmatmul.msk.bf16.gmra.mxu1 %vm293_vm0, %v2612_v30  ;;  %v2079_v53 = vsel %vm293_vm0, %v2015_v19, 0.0  ;;  %v2519_v51 = vmul.f32 %v2280_v36, %v5525_v35  ;;  %v1788_v35 = vadd.f32 %v1787_v27, %v5384_v40  ;;  %v1908_v19 = vsel %vm293_vm0, %v5735_v43, 0.0 }
 0x6f3   : > { %v2284_v45 = vmul.f32 0.5, %v2283_v14  ;;  %v1892_v7 = vpop.xlane.xlu0 %1891  ;;  %2080 = vadd.xlane.f32.xlu0 %v2079_v53  ;;  %v2066_v38 = vpop.xlane.xlu1 %2065 }
 0x6f4   : > { %v1952_v4 = vmul.f32 %v1892_v7, %v4559_v5  ;;  %v2138_v26 = vmul.f32 %v2066_v38, %v4559_v5  ;;  %v2699_v10 = vpop.f32.mrf.mxu1  ;;  %v2552_v14 = vmul.f32 %v5538_v55, %v2519_v51 }
 0x6f5   : > { %v2285_v60 = vsub.f32 1.5, %v2284_v45  ;;  %v2781_v38 = vadd.f32 %v5747_v61, %v2699_v10 }
 0x6f6   : > { %v5726_v15 = vpop.eup %4134  ;;  %v5730_v41 = vsub.f32 %v5593_v2, %v1952_v4  ;;  %v5732_v48 = vadd.f32 1e-05, %v2138_v26  ;;  %v5760_v26 = vadd.f32 %v1788_v35, %v5269_v39  ;;  %v1792_v35 = vpop.f32.mrf.mxu3 }
 0x6f7   : > { %v2286_v63 = vmul.f32 %v4133_v12, %v2285_v60  ;;  %v2292_v32 = vmul.f32 %v5726_v15, %v5705_v22  ;;  %vm2298_vm3 = vweird.f32 %v5726_v15 }
 0x6f8   : > { %4136 = vrsqrt.f32 %v5732_v48  ;;  %v2016_v8 = vmul.f32 %v5730_v41, %v5730_v41  ;;  %vm5784_vm5 = vmor %vm2297_vm4, %vm2298_vm3  ;;  %vm2307_vm7 = vweird.f32 %v5732_v48 }
 0x6f9   : > { %v2290_v2 = vsel %vm2289_vm2, %v4133_v12, %v2286_v63  ;;  %v2293_v20 = vmul.f32 %v5726_v15, %v2292_v32  ;;  %v5768_v63 = vadd.f32 %v5551_v47, %v2552_v14  ;;  %v1911_v14 = vsel %vm293_vm0, %v5760_v26, 0.0 }
 0x6fa   : > { %v2520_v23 = vmul.f32 %v2290_v2, %v5542_v0  ;;  %v2082_v30 = vsel %vm293_vm0, %v2016_v8, 0.0 }
 0x6fb   : > { %v2294_v17 = vmul.f32 0.5, %v2293_v20  ;;  %2083 = vadd.xlane.f32.xlu1 %v2082_v30  ;;  %v1895_v27 = vpop.xlane.xlu0 %1894  ;;  %1909 = vadd.xlane.f32.xlu0 %v1908_v19  ;;  %v2069_v12 = vpop.xlane.xlu1 %2068  ;;  %v1790_v20 = vadd.f32 %v1789_v37, %v5384_v40 }
 0x6fc   : > { %v1953_v53 = vmul.f32 %v1895_v27, %v4559_v5  ;;  %v2139_v36 = vmul.f32 %v2069_v12, %v4559_v5  ;;  %v2701_v45 = vpop.f32.mrf.mxu1  ;;  %v2553_v7 = vmul.f32 %v5538_v55, %v2520_v23 }
 0x6fd   : > { %v2295_v0 = vsub.f32 1.5, %v2294_v17  ;;  %v2782_v4 = vadd.f32 %v5747_v61, %v2701_v45 }
 0x6fe   : > { %v4137_v60 = vpop.eup %4136  ;;  %v5763_v51 = vsub.f32 %v5622_v3, %v1953_v53  ;;  %v5765_v50 = vadd.f32 1e-05, %v2139_v36  ;;  %v5771_v32 = vadd.f32 %v5551_v47, %v2553_v7  ;;  %v5798_v7 = vadd.f32 %v1790_v20, %v5272_v56  ;;  %v1794_v20 = vpop.f32.mrf.mxu3 }
 0x6ff   : > { %v2296_v8 = vmul.f32 %v5726_v15, %v2295_v0  ;;  %v2302_v10 = vmul.f32 %v4137_v60, %v5732_v48  ;;  %v2815_v39 = vpack.c.bf16 %v2782_v4, %v2781_v38  ;;  %vm2308_vm6 = vweird.f32 %v4137_v60 }
 0x700   : > { %4138 = vrsqrt.f32 %v5765_v50  ;;  %v2613_v3 = vpack.c.bf16 %v5771_v32, %v5768_v63  ;;  %v2017_v2 = vmul.f32 %v5763_v51, %v5763_v51  ;;  %vm2309_vm8 = vmor %vm2307_vm7, %vm2308_vm6  ;;  %vm2317_vm10 = vweird.f32 %v5765_v50 }
 0x701   : > { %v2303_v23 = vmul.f32 %v4137_v60, %v2302_v10  ;;  %4007 = vmatmul.msk.bf16.vlgmr.msrb.gmra.mxu3 %vm491_vm1, %v2815_v39  ;;  %v2300_v37 = vsel %vm5784_vm5, %v5726_v15, %v2296_v8 }
 0x702   : > { %3988 = vmatmul.msk.bf16.gmra.mxu1 %vm293_vm0, %v2613_v3  ;;  %v2085_v19 = vsel %vm293_vm0, %v2017_v2, 0.0  ;;  %v2521_v38 = vmul.f32 %v2300_v37, %v5563_v49  ;;  %v1914_v2 = vsel %vm293_vm0, %v5798_v7, 0.0  ;;  %v1793_v49 = vadd.f32 %v1792_v35, %v5384_v40 }
 0x703   : > { %v2304_v17 = vmul.f32 0.5, %v2303_v23  ;;  %2086 = vadd.xlane.f32.xlu1 %v2085_v19  ;;  %1912 = vadd.xlane.f32.xlu0 %v1911_v14  ;;  %v2072_v22 = vpop.xlane.xlu2 %2071  ;;  %v1898_v27 = vpop.xlane.xlu1 %1897 }
 0x704   : > { %v2140_v12 = vmul.f32 %v2072_v22, %v4559_v5  ;;  %v1954_v53 = vmul.f32 %v1898_v27, %v4559_v5  ;;  %v2704_v36 = vpop.f32.mrf.mxu1  ;;  %v2554_v48 = vmul.f32 %v5538_v55, %v2521_v38  ;;  %v5830_v38 = vadd.f32 %v1793_v49, %v5286_v44 }
 0x705   : > { %v2305_v45 = vsub.f32 1.5, %v2304_v17  ;;  %v2783_v35 = vadd.f32 %v5747_v61, %v2704_v36 }
 0x706   : > { %v4139_v0 = vpop.eup %4138  ;;  %v2172_v4 = vadd.f32 1e-05, %v2140_v12  ;;  %v5802_v15 = vsub.f32 %v5636_v34, %v1954_v53  ;;  %v5824_v53 = vadd.f32 %v5551_v47, %v2554_v48  ;;  %v1917_v44 = vsel %vm293_vm0, %v5830_v38, 0.0 }
 0x707   : > { %v2306_v8 = vmul.f32 %v4137_v60, %v2305_v45  ;;  %v2312_v10 = vmul.f32 %v4139_v0, %v5765_v50  ;;  %vm2318_vm9 = vweird.f32 %v4139_v0  ;;  %v1797_v50 = vpop.f32.mrf.mxu3 }
 0x708   : > { %4140 = vrsqrt.f32 %v2172_v4  ;;  %v2018_v39 = vmul.f32 %v5802_v15, %v5802_v15  ;;  %vm2319_vm11 = vmor %vm2317_vm10, %vm2318_vm9  ;;  %vm2327_vm13 = vweird.f32 %v2172_v4 }
 0x709   : > { %v2310_v3 = vsel %vm2309_vm8, %v4137_v60, %v2306_v8  ;;  %v2313_v56 = vmul.f32 %v4139_v0, %v2312_v10 }
 0x70a   : > { %v2522_v34 = vmul.f32 %v2310_v3, %v5597_v58  ;;  %v2088_v23 = vsel %vm293_vm0, %v2018_v39, 0.0  ;;  %v1795_v3 = vadd.f32 %v1794_v20, %v5384_v40 }
 0x70b   : > { %v2314_v30 = vmul.f32 0.5, %v2313_v56  ;;  %1915 = vadd.xlane.f32.xlu1 %v1914_v2  ;;  %v5814_v19 = vpop.xlane.xlu2 %2074  ;;  %2089 = vadd.xlane.f32.xlu2 %v2088_v23  ;;  %v1901_v14 = vpop.xlane.xlu1 %1900 }
 0x70c   : > { %v1955_v60 = vmul.f32 %v1901_v14, %v4559_v5  ;;  %v2706_v37 = vpop.f32.mrf.mxu1  ;;  %v2555_v17 = vmul.f32 %v5538_v55, %v2522_v34  ;;  %v5845_v14 = vadd.f32 %v1795_v3, %v5289_v18 }
 0x70d   : > { %v2315_v22 = vsub.f32 1.5, %v2314_v30  ;;  %v2784_v58 = vadd.f32 %v5747_v61, %v2706_v37 }
 0x70e   : > { %v4141_v27 = vpop.eup %4140  ;;  %v5821_v12 = vsub.f32 %v5662_v28, %v1955_v60  ;;  %v5827_v45 = vadd.f32 %v5551_v47, %v2555_v17 }
 0x70f   : > { %v2316_v8 = vmul.f32 %v4139_v0, %v2315_v22  ;;  %v2322_v10 = vmul.f32 %v4141_v27, %v2172_v4  ;;  %v2816_v39 = vpack.c.bf16 %v2784_v58, %v2783_v35  ;;  %vm2328_vm12 = vweird.f32 %v4141_v27 }
 0x710   : > { %v2614_v36 = vpack.c.bf16 %v5827_v45, %v5824_v53  ;;  %v2019_v28 = vmul.f32 %v5821_v12, %v5821_v12  ;;  %vm2329_vm14 = vmor %vm2327_vm13, %vm2328_vm12  ;;  %v1920_v35 = vsel %vm293_vm0, %v5845_v14, 0.0  ;;  %v1798_v58 = vadd.f32 %v1797_v50, %v5384_v40 }
 0x711   : > { %v2323_v56 = vmul.f32 %v4141_v27, %v2322_v10  ;;  %4008 = vmatmul.msk.bf16.gmra.mxu3 %vm491_vm1, %v2816_v39  ;;  %v2320_v49 = vsel %vm2319_vm11, %v4139_v0, %v2316_v8 }
 0x712   : > { %3989 = vmatmul.msk.bf16.gmra.mxu1 %vm293_vm0, %v2614_v36  ;;  %v2091_v2 = vsel %vm293_vm0, %v2019_v28, 0.0  ;;  %v2523_v60 = vmul.f32 %v2320_v49, %v5613_v46 }
 0x713   : > { %v2324_v34 = vmul.f32 0.5, %v2323_v56  ;;  %1918 = vadd.xlane.f32.xlu1 %v1917_v44  ;;  %v1904_v23 = vpop.xlane.xlu2 %1903  ;;  %2092 = vadd.xlane.f32.xlu2 %v2091_v2  ;;  %v5873_v56 = vadd.f32 %v1798_v58, %v5302_v11  ;;  %v1799_v44 = vpop.f32.mrf.mxu3 }
 0x714   : > { %v1956_v20 = vmul.f32 %v1904_v23, %v4559_v5  ;;  %v2709_v48 = vpop.f32.mrf.mxu1  ;;  %v2556_v46 = vmul.f32 %v5538_v55, %v2523_v60 }
 0x715   : > { %v2325_v30 = vsub.f32 1.5, %v2324_v34  ;;  %v1923_v11 = vsel %vm293_vm0, %v5873_v56, 0.0 }
 0x716   : > { %v5849_v37 = vsub.f32 %v5674_v16, %v1956_v20 }
 0x717   : > { %v2326_v17 = vmul.f32 %v4141_v27, %v2325_v30 }
 0x718   : > { %v2020_v0 = vmul.f32 %v5849_v37, %v5849_v37 }
 0x719   : > { %v2330_v22 = vsel %vm2329_vm14, %v4141_v27, %v2326_v17  ;;  %v2785_v27 = vadd.f32 %v5747_v61, %v2709_v48 }
 0x71a   : > { %v2524_v18 = vmul.f32 %v2330_v22, %v5640_v57  ;;  %v2094_v8 = vsel %vm293_vm0, %v2020_v0, 0.0  ;;  %v5867_v57 = vadd.f32 %v5551_v47, %v2556_v46  ;;  %v2141_v0 = vmul.f32 %v5814_v19, %v4559_v5 }
 0x71b   : > { %2095 = vadd.xlane.f32.xlu0 %v2094_v8  ;;  %v1907_v16 = vpop.xlane.xlu2 %1906  ;;  %1921 = vadd.xlane.f32.xlu2 %v1920_v35  ;;  %v1802_v48 = vpop.f32.mrf.mxu3 }
 0x71c   : > { %v1957_v4 = vmul.f32 %v1907_v16, %v4559_v5  ;;  %v2711_v10 = vpop.f32.mrf.mxu1  ;;  %v2557_v39 = vmul.f32 %v5538_v55, %v2524_v18  ;;  %v1803_v50 = vadd.f32 %v1802_v48, %v5384_v40  ;;  %v2173_v22 = vadd.f32 1e-05, %v2141_v0 }
 0x71d   : > { %v2786_v36 = vadd.f32 %v5747_v61, %v2711_v10 }
 0x71e   : > { %v5864_v28 = vsub.f32 %v5680_v54, %v1957_v4  ;;  %v5870_v3 = vadd.f32 %v5551_v47, %v2557_v39  ;;  %v1800_v54 = vadd.f32 %v1799_v44, %v5384_v40  ;;  %v5892_v60 = vadd.f32 %v1803_v50, %v5320_v31 }
 0x71f   : > { %v2817_v2 = vpack.c.bf16 %v2786_v36, %v2785_v27  ;;  %4142 = vrsqrt.f32 %v2173_v22  ;;  %vm2337_vm2 = vweird.f32 %v2173_v22 }
 0x720   : > { %v2615_v49 = vpack.c.bf16 %v5870_v3, %v5867_v57  ;;  %v2021_v34 = vmul.f32 %v5864_v28, %v5864_v28  ;;  %v5886_v20 = vadd.f32 %v1800_v54, %v5305_v24  ;;  %v1929_v17 = vsel %vm293_vm0, %v5892_v60, 0.0 }
 0x721   : > { %4009 = vmatmul.msk.bf16.gmra.mxu3 %vm491_vm1, %v2817_v2 }
 0x722   : > { %3990 = vmatmul.msk.bf16.gmra.mxu1 %vm293_vm0, %v2615_v49  ;;  %v2097_v23 = vsel %vm293_vm0, %v2021_v34, 0.0  ;;  %v1926_v30 = vsel %vm293_vm0, %v5886_v20, 0.0 }
 0x723   : > { %2098 = vadd.xlane.f32.xlu0 %v2097_v23  ;;  %1924 = vadd.xlane.f32.xlu2 %v1923_v11 }
 0x725   : > { %v4143_v24 = vpop.eup %4142 }
 0x726   : > { %v2332_v35 = vmul.f32 %v4143_v24, %v2173_v22  ;;  %vm2338_vm15 = vweird.f32 %v4143_v24 }
 0x727   : > { %vm2339_vm3 = vmor %vm2337_vm2, %vm2338_vm15 }
 0x728   : > { %v2333_v58 = vmul.f32 %v4143_v24, %v2332_v35 }
 0x72a   : > { %v2334_v16 = vmul.f32 0.5, %v2333_v58 }
 0x72b   : > { %1927 = vadd.xlane.f32.xlu0 %v1926_v30 }
 0x72c   : > { %v2335_v31 = vsub.f32 1.5, %v2334_v16 }
 0x72e   : > { %v2336_v36 = vmul.f32 %v4143_v24, %v2335_v31 }
 0x730   : > { %v2340_v2 = vsel %vm2339_vm3, %v4143_v24, %v2336_v36 }
 0x733   : > { %1930 = vadd.xlane.f32.xlu0 %v1929_v17  ;;  %v2525_v17 = vmul.f32 %v2340_v2, %v5653_v59 }
 0x735   : > { %v2558_v59 = vmul.f32 %v5538_v55, %v2525_v17 }
 0x75e   : > { %v2078_v18 = vpop.xlane.xlu0 %2077 }
 0x75f   : > { %v2142_v8 = vmul.f32 %v2078_v18, %v4559_v5 }
 0x761   : > { %v2174_v46 = vadd.f32 1e-05, %v2142_v8 }
 0x763   : > { %4144 = vrsqrt.f32 %v2174_v46  ;;  %vm2347_vm5 = vweird.f32 %v2174_v46 }
 0x766   : > { %v2081_v4 = vpop.xlane.xlu0 %2080 }
 0x767   : > { %v2143_v10 = vmul.f32 %v2081_v4, %v4559_v5 }
 0x769   : > { %v4145_v39 = vpop.eup %4144  ;;  %v2175_v27 = vadd.f32 1e-05, %v2143_v10 }
 0x76a   : > { %v2342_v19 = vmul.f32 %v4145_v39, %v2174_v46  ;;  %vm2348_vm4 = vweird.f32 %v4145_v39 }
 0x76b   : > { %4146 = vrsqrt.f32 %v2175_v27  ;;  %vm2349_vm6 = vmor %vm2347_vm5, %vm2348_vm4  ;;  %vm2357_vm8 = vweird.f32 %v2175_v27 }
 0x76c   : > { %v2343_v44 = vmul.f32 %v4145_v39, %v2342_v19 }
 0x76e   : > { %v2344_v49 = vmul.f32 0.5, %v2343_v44  ;;  %v1910_v34 = vpop.xlane.xlu0 %1909  ;;  %v2084_v54 = vpop.xlane.xlu1 %2083 }
 0x76f   : > { %v1958_v23 = vmul.f32 %v1910_v34, %v4559_v5  ;;  %v2144_v11 = vmul.f32 %v2084_v54, %v4559_v5  ;;  %v2714_v48 = vpop.f32.mrf.mxu1 }
 0x770   : > { %v2345_v50 = vsub.f32 1.5, %v2344_v49 }
 0x771   : > { %v4147_v30 = vpop.eup %4146  ;;  %v5904_v0 = vsub.f32 %v5735_v43, %v1958_v23  ;;  %v2176_v22 = vadd.f32 1e-05, %v2144_v11  ;;  %v5922_v23 = vadd.f32 %v5551_v47, %v2558_v59 }
 0x772   : > { %v2346_v35 = vmul.f32 %v4145_v39, %v2345_v50  ;;  %v2352_v24 = vmul.f32 %v4147_v30, %v2175_v27  ;;  %v1804_v50 = vpop.f32.mrf.mxu3  ;;  %vm2358_vm7 = vweird.f32 %v4147_v30 }
 0x773   : > { %4148 = vrsqrt.f32 %v2176_v22  ;;  %v2022_v58 = vmul.f32 %v5904_v0, %v5904_v0  ;;  %vm2359_vm9 = vmor %vm2357_vm8, %vm2358_vm7  ;;  %vm2367_vm11 = vweird.f32 %v2176_v22 }
 0x774   : > { %v2350_v18 = vsel %vm2349_vm6, %v4145_v39, %v2346_v35  ;;  %v2353_v8 = vmul.f32 %v4147_v30, %v2352_v24  ;;  %v2787_v39 = vadd.f32 %v5747_v61, %v2714_v48 }
 0x775   : > { %v2526_v16 = vmul.f32 %v2350_v18, %v5695_v62  ;;  %v2100_v31 = vsel %vm293_vm0, %v2022_v58, 0.0  ;;  %v1805_v18 = vadd.f32 %v1804_v50, %v5384_v40 }
 0x776   : > { %v2354_v4 = vmul.f32 0.5, %v2353_v8  ;;  %2101 = vadd.xlane.f32.xlu1 %v2100_v31  ;;  %v1913_v43 = vpop.xlane.xlu0 %1912  ;;  %v2087_v10 = vpop.xlane.xlu1 %2086 }
 0x777   : > { %v1959_v46 = vmul.f32 %v1913_v43, %v4559_v5  ;;  %v2145_v36 = vmul.f32 %v2087_v10, %v4559_v5  ;;  %v2716_v19 = vpop.f32.mrf.mxu1  ;;  %v2559_v44 = vmul.f32 %v5538_v55, %v2526_v16 }
 0x778   : > { %v2355_v2 = vsub.f32 1.5, %v2354_v4  ;;  %v2788_v62 = vadd.f32 %v5747_v61, %v2716_v19 }
 0x779   : > { %v4149_v49 = vpop.eup %4148  ;;  %v5917_v34 = vsub.f32 %v5760_v26, %v1959_v46  ;;  %v5919_v54 = vadd.f32 1e-05, %v2145_v36  ;;  %v5925_v11 = vadd.f32 %v5551_v47, %v2559_v44 }
 0x77a   : > { %v2356_v17 = vmul.f32 %v4147_v30, %v2355_v2  ;;  %v2362_v35 = vmul.f32 %v4149_v49, %v2176_v22  ;;  %v2818_v24 = vpack.c.bf16 %v2788_v62, %v2787_v39  ;;  %vm2368_vm10 = vweird.f32 %v4149_v49 }
 0x77b   : > { %4150 = vrsqrt.f32 %v5919_v54  ;;  %v2616_v48 = vpack.c.bf16 %v5925_v11, %v5922_v23  ;;  %v2023_v26 = vmul.f32 %v5917_v34, %v5917_v34  ;;  %vm2369_vm12 = vmor %vm2367_vm11, %vm2368_vm10  ;;  %vm2377_vm14 = vweird.f32 %v5919_v54 }
 0x77c   : > { %v2363_v58 = vmul.f32 %v4149_v49, %v2362_v35  ;;  %4010 = vmatmul.msk.bf16.gmra.mxu3 %vm491_vm1, %v2818_v24  ;;  %v2360_v16 = vsel %vm2359_vm9, %v4147_v30, %v2356_v17  ;;  %v5945_v30 = vadd.f32 %v1805_v18, %v5323_v13 }
 0x77d   : > { %3991 = vmatmul.msk.bf16.gmra.mxu1 %vm293_vm0, %v2616_v48  ;;  %v2103_v8 = vsel %vm293_vm0, %v2023_v26, 0.0  ;;  %v2527_v40 = vmul.f32 %v2360_v16, %v5708_v42 }
 0x77e   : > { %v2364_v31 = vmul.f32 0.5, %v2363_v58  ;;  %2104 = vadd.xlane.f32.xlu1 %v2103_v8  ;;  %v2090_v59 = vpop.xlane.xlu2 %2089  ;;  %v1916_v4 = vpop.xlane.xlu1 %1915  ;;  %v1932_v13 = vsel %vm293_vm0, %v5945_v30, 0.0 }
 0x77f   : > { %v2146_v43 = vmul.f32 %v2090_v59, %v4559_v5  ;;  %v1960_v10 = vmul.f32 %v1916_v4, %v4559_v5  ;;  %v2719_v27 = vpop.f32.mrf.mxu1  ;;  %v2560_v35 = vmul.f32 %v5538_v55, %v2527_v40 }
 0x780   : > { %v2365_v46 = vsub.f32 1.5, %v2364_v31  ;;  %v2789_v8 = vadd.f32 %v5747_v61, %v2719_v27 }
 0x781   : > { %v4151_v36 = vpop.eup %4150  ;;  %v5939_v19 = vadd.f32 1e-05, %v2146_v43  ;;  %v5942_v44 = vsub.f32 %v5798_v7, %v1960_v10  ;;  %v5967_v43 = vadd.f32 %v5551_v47, %v2560_v35 }
 0x782   : > { %v2366_v2 = vmul.f32 %v4149_v49, %v2365_v46  ;;  %v2372_v39 = vmul.f32 %v4151_v36, %v5919_v54  ;;  %vm2378_vm13 = vweird.f32 %v4151_v36 }
 0x783   : > { %4152 = vrsqrt.f32 %v5939_v19  ;;  %v2024_v62 = vmul.f32 %v5942_v44, %v5942_v44  ;;  %vm2379_vm15 = vmor %vm2377_vm14, %vm2378_vm13  ;;  %vm2387_vm3 = vweird.f32 %v5939_v19 }
 0x784   : > { %v2370_v50 = vsel %vm2369_vm12, %v4149_v49, %v2366_v2  ;;  %v2373_v42 = vmul.f32 %v4151_v36, %v2372_v39  ;;  %v5973_v2 = vpop.f32.mrf.mxu3 }
 0x785   : > { %v2528_v17 = vmul.f32 %v2370_v50, %v5730_v41  ;;  %v2106_v7 = vsel %vm293_vm0, %v2024_v62, 0.0 }
 0x786   : > { %v2374_v22 = vmul.f32 0.5, %v2373_v42  ;;  %v2093_v24 = vpop.xlane.xlu2 %2092  ;;  %2107 = vadd.xlane.f32.xlu2 %v2106_v7  ;;  %v1919_v48 = vpop.xlane.xlu1 %1918  ;;  %1933 = vadd.xlane.f32.xlu1 %v1932_v13 }
 0x787   : > { %v2147_v26 = vmul.f32 %v2093_v24, %v4559_v5  ;;  %v1961_v58 = vmul.f32 %v1919_v48, %v4559_v5  ;;  %v2721_v49 = vpop.f32.mrf.mxu1  ;;  %v2561_v18 = vmul.f32 %v5538_v55, %v2528_v17 }
 0x788   : > { %v2375_v41 = vsub.f32 1.5, %v2374_v22  ;;  %v2790_v16 = vadd.f32 %v5747_v61, %v2721_v49 }
 0x789   : > { %v4153_v31 = vpop.eup %4152  ;;  %v5961_v59 = vadd.f32 1e-05, %v2147_v26  ;;  %v5964_v4 = vsub.f32 %v5830_v38, %v1961_v58  ;;  %v5970_v10 = vadd.f32 %v5551_v47, %v2561_v18 }
 0x78a   : > { %v2376_v46 = vmul.f32 %v4151_v36, %v2375_v41  ;;  %v2382_v40 = vmul.f32 %v4153_v31, %v5939_v19  ;;  %v2819_v27 = vpack.c.bf16 %v2790_v16, %v2789_v8  ;;  %vm2388_vm2 = vweird.f32 %v4153_v31 }
 0x78b   : > { %4154 = vrsqrt.f32 %v5961_v59  ;;  %v2617_v39 = vpack.c.bf16 %v5970_v10, %v5967_v43  ;;  %v2025_v38 = vmul.f32 %v5964_v4, %v5964_v4  ;;  %vm2389_vm4 = vmor %vm2387_vm3, %vm2388_vm2  ;;  %vm2397_vm6 = vweird.f32 %v5961_v59 }
 0x78c   : > { %v2383_v62 = vmul.f32 %v4153_v31, %v2382_v40  ;;  %4011 = vmatmul.msk.bf16.gmra.mxu3 %vm491_vm1, %v2819_v27  ;;  %v2380_v42 = vsel %vm2379_vm15, %v4151_v36, %v2376_v46  ;;  %v5994_v46 = vpop.f32.mrf.mxu3 }
 0x78d   : > { %3992 = vmatmul.msk.bf16.gmra.mxu1 %vm293_vm0, %v2617_v39  ;;  %v2109_v50 = vsel %vm293_vm0, %v2025_v38, 0.0  ;;  %v2529_v26 = vmul.f32 %v2380_v42, %v5763_v51 }
 0x78e   : > { %v2384_v17 = vmul.f32 0.5, %v2383_v62  ;;  %v2096_v7 = vpop.xlane.xlu0 %2095  ;;  %v1922_v13 = vpop.xlane.xlu2 %1921  ;;  %2110 = vadd.xlane.f32.xlu2 %v2109_v50 }
 0x78f   : > { %v2148_v35 = vmul.f32 %v2096_v7, %v4559_v5  ;;  %v1962_v22 = vmul.f32 %v1922_v13, %v4559_v5  ;;  %v2724_v24 = vpop.f32.mrf.mxu1 }
 0x790   : > { %v2385_v48 = vsub.f32 1.5, %v2384_v17  ;;  %v2791_v42 = vadd.f32 %v5747_v61, %v2724_v24 }
 0x791   : > { %v4155_v54 = vpop.eup %4154  ;;  %v2180_v58 = vadd.f32 1e-05, %v2148_v35  ;;  %v5988_v49 = vsub.f32 %v5845_v14, %v1962_v22  ;;  %v2562_v14 = vmul.f32 %v5538_v55, %v2529_v26 }
 0x792   : > { %v2386_v18 = vmul.f32 %v4153_v31, %v2385_v48  ;;  %v2392_v36 = vmul.f32 %v4155_v54, %v5961_v59  ;;  %vm2398_vm5 = vweird.f32 %v4155_v54 }
 0x793   : > { %4156 = vrsqrt.f32 %v2180_v58  ;;  %v2026_v41 = vmul.f32 %v5988_v49, %v5988_v49  ;;  %v6009_v13 = vadd.f32 %v5551_v47, %v2562_v14  ;;  %vm2399_vm7 = vmor %vm2397_vm6, %vm2398_vm5  ;;  %vm2407_vm9 = vweird.f32 %v2180_v58 }
 0x794   : > { %v2390_v8 = vsel %vm2389_vm4, %v4153_v31, %v2386_v18  ;;  %v2393_v16 = vmul.f32 %v4155_v54, %v2392_v36 }
 0x795   : > { %v2530_v51 = vmul.f32 %v2390_v8, %v5802_v15  ;;  %v2112_v40 = vsel %vm293_vm0, %v2026_v41, 0.0  ;;  %v6025_v41 = vld [vmem:[%s6989_s4 + $0x8] sm:$0x7] }
 0x796   : > { %v2394_v27 = vmul.f32 0.5, %v2393_v16  ;;  %v5999_v39 = vpop.xlane.xlu0 %2098  ;;  %v1925_v19 = vpop.xlane.xlu2 %1924  ;;  %2113 = vadd.xlane.f32.xlu0 %v2112_v40 }
 0x797   : > { %v1963_v38 = vmul.f32 %v1925_v19, %v4559_v5  ;;  %v2726_v62 = vpop.f32.mrf.mxu1  ;;  %v2563_v50 = vmul.f32 %v5538_v55, %v2530_v51  ;;  %v6027_v51 = vpop.f32.mrf.mxu3  ;;  %v6031_v19 = vperm.slane %v6025_v41, 0 }
 0x798   : > { %v2395_v31 = vsub.f32 1.5, %v2394_v27  ;;  %v2792_v17 = vadd.f32 %v5747_v61, %v2726_v62 }
 0x799   : > { %v4157_v15 = vpop.eup %4156  ;;  %v6006_v7 = vsub.f32 %v5873_v56, %v1963_v38  ;;  %v6012_v35 = vadd.f32 %v5551_v47, %v2563_v50 }
 0x79a   : > { %v2396_v22 = vmul.f32 %v4155_v54, %v2395_v31  ;;  %v2402_v48 = vmul.f32 %v4157_v15, %v2180_v58  ;;  %v2820_v26 = vpack.c.bf16 %v2792_v17, %v2791_v42  ;;  %vm2408_vm8 = vweird.f32 %v4157_v15 }
 0x79b   : > { %v2618_v18 = vpack.c.bf16 %v6012_v35, %v6009_v13  ;;  %v2027_v24 = vmul.f32 %v6006_v7, %v6006_v7  ;;  %vm2409_vm10 = vmor %vm2407_vm9, %vm2408_vm8  ;;  %v2899_v42 = vadd.f32 %v5973_v2, %v6031_v19 }
 0x79c   : > { %v2403_v56 = vmul.f32 %v4157_v15, %v2402_v48  ;;  %4012 = vmatmul.msk.bf16.gmra.mxu3 %vm491_vm1, %v2820_v26  ;;  %v2400_v8 = vsel %vm2399_vm7, %v4155_v54, %v2396_v22 }
 0x79d   : > { %3993 = vmatmul.msk.bf16.gmra.mxu1 %vm293_vm0, %v2618_v18  ;;  %v2115_v36 = vsel %vm293_vm0, %v2027_v24, 0.0  ;;  %v2531_v38 = vmul.f32 %v2400_v8, %v5821_v12 }
 0x79e   : > { %v2404_v16 = vmul.f32 0.5, %v2403_v56  ;;  %v1928_v40 = vpop.xlane.xlu0 %1927  ;;  %2116 = vadd.xlane.f32.xlu1 %v2115_v36  ;;  %v6058_v36 = vadd.f32 %v2899_v42, %v5568_v33 }
 0x79f   : > { %v1964_v59 = vmul.f32 %v1928_v40, %v4559_v5  ;;  %v2729_v14 = vpop.f32.mrf.mxu1  ;;  %v2564_v48 = vmul.f32 %v5538_v55, %v2531_v38  ;;  %v2905_v18 = vpop.f32.mrf.mxu3 }
 0x7a0   : > { %v2405_v27 = vsub.f32 1.5, %v2404_v16  ;;  %v2793_v24 = vadd.f32 %v5747_v61, %v2729_v14  ;;  %v3010_v33 = vsel %vm293_vm0, %v6058_v36, 0.0 }
 0x7a1   : > { %v6035_v62 = vsub.f32 %v5886_v20, %v1964_v59  ;;  %v2906_v59 = vadd.f32 %v2905_v18, %v6031_v19 }
 0x7a2   : > { %v2406_v50 = vmul.f32 %v4157_v15, %v2405_v27 }
 0x7a3   : > { %v2028_v54 = vmul.f32 %v6035_v62, %v6035_v62  ;;  %v6073_v27 = vadd.f32 %v2906_v59, %v5619_v52 }
 0x7a4   : > { %v2410_v31 = vsel %vm2409_vm10, %v4157_v15, %v2406_v50 }
 0x7a5   : > { %v2532_v17 = vmul.f32 %v2410_v31, %v5849_v37  ;;  %v2118_v22 = vsel %vm293_vm0, %v2028_v54, 0.0  ;;  %v6052_v37 = vadd.f32 %v5551_v47, %v2564_v48  ;;  %v3019_v54 = vsel %vm293_vm0, %v6073_v27, 0.0 }
 0x7a6   : > { %2119 = vadd.xlane.f32.xlu2 %v2118_v22  ;;  %v1931_v12 = vpop.xlane.xlu0 %1930 }
 0x7a7   : > { %v1965_v20 = vmul.f32 %v1931_v12, %v4559_v5  ;;  %v2731_v26 = vpop.f32.mrf.mxu1  ;;  %v2565_v58 = vmul.f32 %v5538_v55, %v2532_v17  ;;  %v2908_v50 = vpop.f32.mrf.mxu3 }
 0x7a8   : > { %v2794_v15 = vadd.f32 %v5747_v61, %v2731_v26 }
 0x7a9   : > { %v6049_v2 = vsub.f32 %v5892_v60, %v1965_v20  ;;  %v6055_v56 = vadd.f32 %v5551_v47, %v2565_v58  ;;  %v2901_v60 = vadd.f32 %v5994_v46, %v6031_v19  ;;  %v2909_v46 = vadd.f32 %v2908_v50, %v6031_v19 }
 0x7aa   : > { %v2821_v8 = vpack.c.bf16 %v2794_v15, %v2793_v24 }
 0x7ab   : > { %v2619_v16 = vpack.c.bf16 %v6055_v56, %v6052_v37  ;;  %v2029_v40 = vmul.f32 %v6049_v2, %v6049_v2  ;;  %v6076_v38 = vadd.f32 %v2901_v60, %v5571_v6  ;;  %v6084_v42 = vadd.f32 %v2909_v46, %v5656_v21 }
 0x7ac   : > { %4013 = vmatmul.msk.bf16.gmra.mxu3 %vm491_vm1, %v2821_v8  ;;  %v2149_v6 = vmul.f32 %v5999_v39, %v4559_v5 }
 0x7ad   : > { %3994 = vmatmul.msk.bf16.gmra.mxu1 %vm293_vm0, %v2619_v16  ;;  %v2121_v14 = vsel %vm293_vm0, %v2029_v40, 0.0  ;;  %v3013_v31 = vsel %vm293_vm0, %v6076_v38, 0.0  ;;  %v3022_v52 = vsel %vm293_vm0, %v6084_v42, 0.0 }
 0x7ae   : > { %3011 = vadd.xlane.f32.xlu2 %v3010_v33  ;;  %2122 = vadd.xlane.f32.xlu0 %v2121_v14  ;;  %v2181_v17 = vadd.f32 1e-05, %v2149_v6 }
 0x7af   : > { %v2910_v60 = vpop.f32.mrf.mxu3 }
 0x7b0   : > { %4158 = vrsqrt.f32 %v2181_v17  ;;  %vm2417_vm12 = vweird.f32 %v2181_v17 }
 0x7b6   : > { %3020 = vadd.xlane.f32.xlu2 %v3019_v54  ;;  %3014 = vadd.xlane.f32.xlu0 %v3013_v31  ;;  %v4159_v22 = vpop.eup %4158 }
 0x7b7   : > { %v2412_v48 = vmul.f32 %v4159_v22, %v2181_v17  ;;  %vm2418_vm11 = vweird.f32 %v4159_v22 }
 0x7b8   : > { %vm2419_vm13 = vmor %vm2417_vm12, %vm2418_vm11 }
 0x7b9   : > { %v2413_v12 = vmul.f32 %v4159_v22, %v2412_v48 }
 0x7bb   : > { %v2414_v18 = vmul.f32 0.5, %v2413_v12 }
 0x7bd   : > { %v2415_v21 = vsub.f32 1.5, %v2414_v18 }
 0x7be   : > { %3023 = vadd.xlane.f32.xlu0 %v3022_v52 }
 0x7bf   : > { %v2416_v40 = vmul.f32 %v4159_v22, %v2415_v21  ;;  %v2904_v21 = vadd.f32 %v6027_v51, %v6031_v19 }
 0x7c1   : > { %v2420_v33 = vsel %vm2419_vm13, %v4159_v22, %v2416_v40 }
 0x7c2   : > { %v2533_v12 = vmul.f32 %v2420_v33, %v5864_v28 }
 0x7e9   : > { %v2102_v20 = vpop.xlane.xlu1 %2101 }
 0x7ea   : > { %v2150_v26 = vmul.f32 %v2102_v20, %v4559_v5 }
 0x7ec   : > { %v2182_v58 = vadd.f32 1e-05, %v2150_v26 }
 0x7ee   : > { %4160 = vrsqrt.f32 %v2182_v58  ;;  %vm2427_vm15 = vweird.f32 %v2182_v58 }
 0x7f1   : > { %v2105_v24 = vpop.xlane.xlu1 %2104 }
 0x7f2   : > { %v2151_v15 = vmul.f32 %v2105_v24, %v4559_v5 }
 0x7f4   : > { %v4161_v8 = vpop.eup %4160  ;;  %v6092_v16 = vadd.f32 1e-05, %v2151_v15 }
 0x7f5   : > { %v2422_v39 = vmul.f32 %v4161_v8, %v2182_v58  ;;  %vm2428_vm14 = vweird.f32 %v4161_v8 }
 0x7f6   : > { %4162 = vrsqrt.f32 %v6092_v16  ;;  %vm2429_vm2 = vmor %vm2427_vm15, %vm2428_vm14  ;;  %vm2437_vm4 = vweird.f32 %v6092_v16 }
 0x7f7   : > { %v2423_v59 = vmul.f32 %v4161_v8, %v2422_v39  ;;  %v2566_v39 = vmul.f32 %v5538_v55, %v2533_v12 }
 0x7f9   : > { %v2424_v14 = vmul.f32 0.5, %v2423_v59  ;;  %v2108_v50 = vpop.xlane.xlu2 %2107  ;;  %v1934_v46 = vpop.xlane.xlu1 %1933 }
 0x7fa   : > { %v2152_v54 = vmul.f32 %v2108_v50, %v4559_v5  ;;  %v1966_v31 = vmul.f32 %v1934_v46, %v4559_v5  ;;  %v2734_v52 = vpop.f32.mrf.mxu1 }
 0x7fb   : > { %v2425_v6 = vsub.f32 1.5, %v2424_v14 }
 0x7fc   : > { %v4163_v48 = vpop.eup %4162  ;;  %v6098_v20 = vadd.f32 1e-05, %v2152_v54  ;;  %v6101_v17 = vsub.f32 %v5945_v30, %v1966_v31  ;;  %v6121_v31 = vadd.f32 %v2904_v21, %v5616_v9 }
 0x7fd   : > { %v2426_v26 = vmul.f32 %v4161_v8, %v2425_v6  ;;  %v2432_v22 = vmul.f32 %v4163_v48, %v6092_v16  ;;  %vm2438_vm3 = vweird.f32 %v4163_v48 }
 0x7fe   : > { %4164 = vrsqrt.f32 %v6098_v20  ;;  %v2030_v18 = vmul.f32 %v6101_v17, %v6101_v17  ;;  %vm2439_vm5 = vmor %vm2437_vm4, %vm2438_vm3  ;;  %vm2447_vm7 = vweird.f32 %v6098_v20 }
 0x7ff   : > { %v2430_v24 = vsel %vm2429_vm2, %v4161_v8, %v2426_v26  ;;  %v2433_v28 = vmul.f32 %v4163_v48, %v2432_v22  ;;  %v2913_v15 = vpop.f32.mrf.mxu3  ;;  %v6128_v22 = vadd.f32 %v5551_v47, %v2566_v39 }
 0x800   : > { %v2534_v40 = vmul.f32 %v2430_v24, %v5904_v0  ;;  %v2914_v30 = vadd.f32 %v2913_v15, %v6031_v19  ;;  %v2124_v58 = vsel %vm293_vm0, %v2030_v18, 0.0  ;;  %v2795_v0 = vadd.f32 %v5747_v61, %v2734_v52 }
 0x801   : > { %v2434_v59 = vmul.f32 0.5, %v2433_v28  ;;  %v2111_v33 = vpop.xlane.xlu2 %2110  ;;  %2125 = vadd.xlane.f32.xlu1 %v2124_v58  ;;  %v2911_v28 = vadd.f32 %v2910_v60, %v6031_v19 }
 0x802   : > { %v2153_v14 = vmul.f32 %v2111_v33, %v4559_v5  ;;  %v2736_v50 = vpop.f32.mrf.mxu1  ;;  %v6115_v46 = vadd.f32 %v2914_v30, %v5711_v1  ;;  %v2567_v51 = vmul.f32 %v5538_v55, %v2534_v40  ;;  %v3016_v40 = vsel %vm293_vm0, %v6121_v31, 0.0 }
 0x803   : > { %v2435_v8 = vsub.f32 1.5, %v2434_v59  ;;  %v2796_v54 = vadd.f32 %v5747_v61, %v2736_v50 }
 0x804   : > { %v4165_v6 = vpop.eup %4164  ;;  %v6123_v12 = vadd.f32 1e-05, %v2153_v14  ;;  %v3028_v26 = vsel %vm293_vm0, %v6115_v46, 0.0  ;;  %v6131_v1 = vadd.f32 %v5551_v47, %v2567_v51 }
 0x805   : > { %v2436_v18 = vmul.f32 %v4163_v48, %v2435_v8  ;;  %v2442_v52 = vmul.f32 %v4165_v6, %v6098_v20  ;;  %v2822_v61 = vpack.c.bf16 %v2796_v54, %v2795_v0  ;;  %3029 = vadd.xlane.f32.xlu2 %v3028_v26  ;;  %vm2448_vm6 = vweird.f32 %v4165_v6 }
 0x806   : > { %4166 = vrsqrt.f32 %v6123_v12  ;;  %v2620_v9 = vpack.c.bf16 %v6131_v1, %v6128_v22  ;;  %vm2449_vm8 = vmor %vm2447_vm7, %vm2448_vm6  ;;  %vm2457_vm10 = vweird.f32 %v6123_v12 }
 0x807   : > { %v2443_v21 = vmul.f32 %v4165_v6, %v2442_v52  ;;  %v2915_v24 = vpop.f32.mrf.mxu3  ;;  %4014 = vmatmul.msk.bf16.gmra.mxu3 %vm491_vm1, %v2822_v61  ;;  %v2440_v30 = vsel %vm2439_vm5, %v4163_v48, %v2436_v18  ;;  %v6152_v48 = vadd.f32 %v2911_v28, %v5659_v25 }
 0x808   : > { %v2916_v15 = vadd.f32 %v2915_v24, %v6031_v19  ;;  %3995 = vmatmul.msk.bf16.gmra.mxu1 %vm293_vm0, %v2620_v9  ;;  %v2535_v50 = vmul.f32 %v2440_v30, %v5917_v34 }
 0x809   : > { %v2444_v58 = vmul.f32 0.5, %v2443_v21  ;;  %3017 = vadd.xlane.f32.xlu1 %v3016_v40  ;;  %v2114_v39 = vpop.xlane.xlu0 %2113  ;;  %v3025_v61 = vsel %vm293_vm0, %v6152_v48, 0.0 }
 0x80a   : > { %v2154_v16 = vmul.f32 %v2114_v39, %v4559_v5  ;;  %v2739_v59 = vpop.f32.mrf.mxu1  ;;  %v6146_v33 = vadd.f32 %v2916_v15, %v5714_v29  ;;  %v2568_v25 = vmul.f32 %v5538_v55, %v2535_v50 }
 0x80b   : > { %v2445_v14 = vsub.f32 1.5, %v2444_v58 }
 0x80c   : > { %v4167_v60 = vpop.eup %4166  ;;  %v2186_v51 = vadd.f32 1e-05, %v2154_v16  ;;  %v3031_v8 = vsel %vm293_vm0, %v6146_v33, 0.0  ;;  %v6173_v39 = vadd.f32 %v5551_v47, %v2568_v25 }
 0x80d   : > { %v2446_v0 = vmul.f32 %v4165_v6, %v2445_v14  ;;  %v2452_v54 = vmul.f32 %v4167_v60, %v6123_v12  ;;  %3032 = vadd.xlane.f32.xlu0 %v3031_v8  ;;  %vm2458_vm9 = vweird.f32 %v4167_v60 }
 0x80e   : > { %4168 = vrsqrt.f32 %v2186_v51  ;;  %vm2459_vm11 = vmor %vm2457_vm10, %vm2458_vm9  ;;  %vm2467_vm13 = vweird.f32 %v2186_v51 }
 0x80f   : > { %v2450_v29 = vsel %vm2449_vm8, %v4165_v6, %v2446_v0  ;;  %v2453_v26 = vmul.f32 %v4167_v60, %v2452_v54  ;;  %v2918_v18 = vpop.f32.mrf.mxu3 }
 0x810   : > { %v2536_v34 = vmul.f32 %v2450_v29, %v5942_v44  ;;  %v2919_v52 = vadd.f32 %v2918_v18, %v6031_v19  ;;  %v6166_v44 = vld [vmem:[%s6987_s2 + $0x2] ss:$0 sm:$0xff] }
 0x811   : > { %v2454_v9 = vmul.f32 0.5, %v2453_v26  ;;  %3026 = vadd.xlane.f32.xlu1 %v3025_v61  ;;  %v2117_v20 = vpop.xlane.xlu1 %2116  ;;  %v2797_v15 = vadd.f32 %v6166_v44, %v2739_v59 }
 0x812   : > { %v2155_v21 = vmul.f32 %v2117_v20, %v4559_v5  ;;  %v2741_v24 = vpop.f32.mrf.mxu1  ;;  %v2569_v28 = vmul.f32 %v5538_v55, %v2536_v34  ;;  %v6179_v14 = vadd.f32 %v2919_v52, %v5768_v63 }
 0x813   : > { %v2455_v6 = vsub.f32 1.5, %v2454_v9  ;;  %v2798_v40 = vadd.f32 %v6166_v44, %v2741_v24 }
 0x814   : > { %v4169_v30 = vpop.eup %4168  ;;  %v6170_v58 = vadd.f32 1e-05, %v2155_v21  ;;  %v6176_v16 = vadd.f32 %v5551_v47, %v2569_v28  ;;  %v3034_v63 = vsel %vm293_vm0, %v6179_v14, 0.0 }
 0x815   : > { %v2456_v50 = vmul.f32 %v4167_v60, %v2455_v6  ;;  %v2462_v8 = vmul.f32 %v4169_v30, %v2186_v51  ;;  %v2823_v0 = vpack.c.bf16 %v2798_v40, %v2797_v15  ;;  %vm2468_vm12 = vweird.f32 %v4169_v30 }
 0x816   : > { %4170 = vrsqrt.f32 %v6170_v58  ;;  %v2621_v59 = vpack.c.bf16 %v6176_v16, %v6173_v39  ;;  %vm2469_vm14 = vmor %vm2467_vm13, %vm2468_vm12  ;;  %vm2477_vm2 = vweird.f32 %v6170_v58 }
 0x817   : > { %v2463_v54 = vmul.f32 %v4169_v30, %v2462_v8  ;;  %v2920_v29 = vpop.f32.mrf.mxu3  ;;  %4015 = vmatmul.msk.bf16.gmra.mxu3 %vm491_vm1, %v2823_v0  ;;  %v2460_v18 = vsel %vm2459_vm11, %v4167_v60, %v2456_v50 }
 0x818   : > { %v2921_v26 = vadd.f32 %v2920_v29, %v6031_v19  ;;  %3996 = vmatmul.msk.bf16.gmra.mxu1 %vm293_vm0, %v2621_v59  ;;  %v2537_v21 = vmul.f32 %v2460_v18, %v5964_v4 }
 0x819   : > { %v2464_v34 = vmul.f32 0.5, %v2463_v54  ;;  %v2120_v52 = vpop.xlane.xlu2 %2119  ;;  %3035 = vadd.xlane.f32.xlu1 %v3034_v63 }
 0x81a   : > { %v2156_v61 = vmul.f32 %v2120_v52, %v4559_v5  ;;  %v2744_v25 = vpop.f32.mrf.mxu1  ;;  %v6192_v12 = vadd.f32 %v2921_v26, %v5771_v32  ;;  %v2570_v4 = vmul.f32 %v5538_v55, %v2537_v21 }
 0x81b   : > { %v2465_v9 = vsub.f32 1.5, %v2464_v34  ;;  %v2799_v26 = vadd.f32 %v6166_v44, %v2744_v25 }
 0x81c   : > { %v4171_v20 = vpop.eup %4170  ;;  %v2188_v24 = vadd.f32 1e-05, %v2156_v61  ;;  %v3037_v28 = vsel %vm293_vm0, %v6192_v12, 0.0  ;;  %v6210_v18 = vadd.f32 %v5551_v47, %v2570_v4 }
 0x81d   : > { %v2466_v6 = vmul.f32 %v4169_v30, %v2465_v9  ;;  %v2472_v60 = vmul.f32 %v4171_v20, %v6170_v58  ;;  %3038 = vadd.xlane.f32.xlu2 %v3037_v28  ;;  %vm2478_vm15 = vweird.f32 %v4171_v20 }
 0x81e   : > { %4172 = vrsqrt.f32 %v2188_v24  ;;  %vm2479_vm3 = vmor %vm2477_vm2, %vm2478_vm15  ;;  %vm2487_vm5 = vweird.f32 %v2188_v24 }
 0x81f   : > { %v2470_v15 = vsel %vm2469_vm14, %v4169_v30, %v2466_v6  ;;  %v2473_v40 = vmul.f32 %v4171_v20, %v2472_v60  ;;  %v2923_v32 = vpop.f32.mrf.mxu3 }
 0x820   : > { %v2538_v50 = vmul.f32 %v2470_v15, %v5988_v49  ;;  %v2924_v8 = vadd.f32 %v2923_v32, %v6031_v19 }
 0x821   : > { %v2474_v0 = vmul.f32 0.5, %v2473_v40 }
 0x822   : > { %v2746_v59 = vpop.f32.mrf.mxu1  ;;  %v6202_v54 = vadd.f32 %v2924_v8, %v5824_v53  ;;  %v2571_v51 = vmul.f32 %v5538_v55, %v2538_v50 }
 0x823   : > { %v2475_v29 = vsub.f32 1.5, %v2474_v0  ;;  %v2800_v30 = vadd.f32 %v6166_v44, %v2746_v59 }
 0x824   : > { %v4173_v63 = vpop.eup %4172  ;;  %v3040_v49 = vsel %vm293_vm0, %v6202_v54, 0.0  ;;  %v6213_v34 = vadd.f32 %v5551_v47, %v2571_v51 }
 0x825   : > { %v2476_v52 = vmul.f32 %v4171_v20, %v2475_v29  ;;  %v2482_v53 = vmul.f32 %v4173_v63, %v2188_v24  ;;  %v2824_v61 = vpack.c.bf16 %v2800_v30, %v2799_v26  ;;  %3041 = vadd.xlane.f32.xlu0 %v3040_v49  ;;  %vm2488_vm4 = vweird.f32 %v4173_v63 }
 0x826   : > { %v2622_v25 = vpack.c.bf16 %v6213_v34, %v6210_v18  ;;  %vm2489_vm6 = vmor %vm2487_vm5, %vm2488_vm4 }
 0x827   : > { %v2483_v9 = vmul.f32 %v4173_v63, %v2482_v53  ;;  %v2925_v21 = vpop.f32.mrf.mxu3  ;;  %4016 = vmatmul.msk.bf16.gmra.mxu3 %vm491_vm1, %v2824_v61  ;;  %v2480_v6 = vsel %vm2479_vm3, %v4171_v20, %v2476_v52 }
 0x828   : > { %v2926_v28 = vadd.f32 %v2925_v21, %v6031_v19  ;;  %3997 = vmatmul.msk.bf16.gmra.mxu1 %vm293_vm0, %v2622_v25  ;;  %v2539_v50 = vmul.f32 %v2480_v6, %v6006_v7 }
 0x829   : > { %v2484_v60 = vmul.f32 0.5, %v2483_v9  ;;  %v2123_v9 = vpop.xlane.xlu0 %2122 }
 0x82a   : > { %v2749_v15 = vpop.f32.mrf.mxu1  ;;  %v6222_v40 = vadd.f32 %v2926_v28, %v5827_v45  ;;  %v2572_v45 = vmul.f32 %v5538_v55, %v2539_v50  ;;  %v2157_v21 = vmul.f32 %v2123_v9, %v4559_v5 }
 0x82b   : > { %v2485_v32 = vsub.f32 1.5, %v2484_v60  ;;  %v2801_v26 = vadd.f32 %v6166_v44, %v2749_v15 }
 0x82c   : > { %v3043_v58 = vsel %vm293_vm0, %v6222_v40, 0.0  ;;  %v2189_v28 = vadd.f32 1e-05, %v2157_v21 }
 0x82d   : > { %v2486_v8 = vmul.f32 %v4173_v63, %v2485_v32  ;;  %3044 = vadd.xlane.f32.xlu1 %v3043_v58 }
 0x82e   : > { %4174 = vrsqrt.f32 %v2189_v28  ;;  %vm2497_vm8 = vweird.f32 %v2189_v28 }
 0x82f   : > { %v2490_v4 = vsel %vm2489_vm6, %v4173_v63, %v2486_v8  ;;  %v2928_v0 = vpop.f32.mrf.mxu3  ;;  %v6239_v63 = vadd.f32 %v5551_v47, %v2572_v45 }
 0x830   : > { %v2540_v20 = vmul.f32 %v2490_v4, %v6035_v62  ;;  %v2929_v59 = vadd.f32 %v2928_v0, %v6031_v19 }
 0x832   : > { %v2751_v51 = vpop.f32.mrf.mxu1  ;;  %v6231_v29 = vadd.f32 %v2929_v59, %v5867_v57  ;;  %v2573_v7 = vmul.f32 %v5538_v55, %v2540_v20 }
 0x833   : > { %v2802_v24 = vadd.f32 %v6166_v44, %v2751_v51 }
 0x834   : > { %v3046_v30 = vsel %vm293_vm0, %v6231_v29, 0.0  ;;  %v6242_v62 = vadd.f32 %v5551_v47, %v2573_v7  ;;  %v4175_v6 = vpop.eup %4174 }
 0x835   : > { %v2825_v49 = vpack.c.bf16 %v2802_v24, %v2801_v26  ;;  %3047 = vadd.xlane.f32.xlu2 %v3046_v30  ;;  %v2492_v60 = vmul.f32 %v4175_v6, %v2189_v28  ;;  %vm2498_vm7 = vweird.f32 %v4175_v6  ;;  %v3012_v30 = vpop.xlane.xlu2 %3011 }
 0x836   : > { %v2623_v57 = vpack.c.bf16 %v6242_v62, %v6239_v63  ;;  %vm2499_vm9 = vmor %vm2497_vm8, %vm2498_vm7 }
 0x837   : > { %v2930_v52 = vpop.f32.mrf.mxu3  ;;  %4017 = vmatmul.msk.bf16.gmra.mxu3 %vm491_vm1, %v2825_v49  ;;  %v2493_v15 = vmul.f32 %v4175_v6, %v2492_v60 }
 0x838   : > { %v2931_v53 = vadd.f32 %v2930_v52, %v6031_v19  ;;  %3998 = vmatmul.msk.bf16.gmra.mxu1 %vm293_vm0, %v2623_v57 }
 0x839   : > { %v2494_v8 = vmul.f32 0.5, %v2493_v15 }
 0x83a   : > { %v6250_v61 = vadd.f32 %v2931_v53, %v5870_v3  ;;  %v3106_v53 = vmul.f32 %v3012_v30, %v4559_v5 }
 0x83b   : > { %v2495_v3 = vsub.f32 1.5, %v2494_v8 }
 0x83c   : > { %v3049_v25 = vsel %vm293_vm0, %v6250_v61, 0.0 }
 0x83d   : > { %3050 = vadd.xlane.f32.xlu0 %v3049_v25  ;;  %v2496_v0 = vmul.f32 %v4175_v6, %v2495_v3 }
 0x83f   : > { %v2500_v45 = vsel %vm2499_vm9, %v4175_v6, %v2496_v0 }
 0x840   : > { %v2541_v24 = vmul.f32 %v2500_v45, %v6049_v2 }
 0x842   : > { %v2574_v21 = vmul.f32 %v5538_v55, %v2541_v24 }
 0x874   : > { %v2126_v32 = vpop.xlane.xlu1 %2125 }
 0x875   : > { %v2158_v50 = vmul.f32 %v2126_v32, %v4559_v5  ;;  %v6268_v32 = vsub.f32 %v6058_v36, %v3106_v53 }
 0x877   : > { %v2190_v58 = vadd.f32 1e-05, %v2158_v50  ;;  %v6273_v50 = vadd.f32 %v5551_v47, %v2574_v21  ;;  %v3170_v0 = vmul.f32 %v6268_v32, %v6268_v32  ;;  %v3021_v21 = vpop.xlane.xlu2 %3020 }
 0x879   : > { %4176 = vrsqrt.f32 %v2190_v58  ;;  %vm2507_vm11 = vweird.f32 %v2190_v58 }
 0x87f   : > { %v4177_v4 = vpop.eup %4176 }
 0x880   : > { %v2502_v20 = vmul.f32 %v4177_v4, %v2190_v58  ;;  %vm2508_vm10 = vweird.f32 %v4177_v4 }
 0x881   : > { %vm2509_vm12 = vmor %vm2507_vm11, %vm2508_vm10 }
 0x882   : > { %v2503_v59 = vmul.f32 %v4177_v4, %v2502_v20 }
 0x884   : > { %v2504_v51 = vmul.f32 0.5, %v2503_v59 }
 0x885   : > { %v2754_v7 = vpop.f32.mrf.mxu1 }
 0x886   : > { %v2505_v26 = vsub.f32 1.5, %v2504_v51  ;;  %v2803_v60 = vadd.f32 %v6166_v44, %v2754_v7  ;;  %v3202_v51 = vsel %vm293_vm0, %v3170_v0, 0.0  ;;  %v3018_v7 = vpop.xlane.xlu1 %3017 }
 0x887   : > { %v3108_v24 = vmul.f32 %v3018_v7, %v4559_v5 }
 0x888   : > { %v2506_v49 = vmul.f32 %v4177_v4, %v2505_v26 }
 0x889   : > { %v6305_v53 = vsub.f32 %v6121_v31, %v3108_v24 }
 0x88a   : > { %v2510_v57 = vsel %vm2509_vm12, %v4177_v4, %v2506_v49  ;;  %v2933_v52 = vpop.f32.mrf.mxu3 }
 0x88b   : > { %v2542_v25 = vmul.f32 %v2510_v57, %v6101_v17  ;;  %v2934_v9 = vadd.f32 %v2933_v52, %v6031_v19  ;;  %v3172_v31 = vmul.f32 %v6305_v53, %v6305_v53 }
 0x88d   : > { %v2756_v28 = vpop.f32.mrf.mxu1  ;;  %v6262_v6 = vadd.f32 %v2934_v9, %v5922_v23  ;;  %v2575_v2 = vmul.f32 %v5538_v55, %v2542_v25  ;;  %v3015_v23 = vpop.xlane.xlu0 %3014 }
 0x88e   : > { %v2804_v15 = vadd.f32 %v6166_v44, %v2756_v28  ;;  %v3107_v36 = vmul.f32 %v3015_v23, %v4559_v5 }
 0x88f   : > { %v3052_v17 = vsel %vm293_vm0, %v6262_v6, 0.0  ;;  %v6276_v58 = vadd.f32 %v5551_v47, %v2575_v2 }
 0x890   : > { %v2826_v8 = vpack.c.bf16 %v2804_v15, %v2803_v60  ;;  %3053 = vadd.xlane.f32.xlu1 %v3052_v17  ;;  %v6290_v59 = vsub.f32 %v6076_v38, %v3107_v36 }
 0x891   : > { %v2624_v55 = vpack.c.bf16 %v6276_v58, %v6273_v50 }
 0x892   : > { %v2935_v3 = vpop.f32.mrf.mxu3  ;;  %4018 = vmatmul.msk.bf16.gmra.mxu3 %vm491_vm1, %v2826_v8 }
 0x893   : > { %v2936_v4 = vadd.f32 %v2935_v3, %v6031_v19  ;;  %3999 = vmatmul.msk.bf16.gmra.mxu1 %vm293_vm0, %v2624_v55  ;;  %v3208_v55 = vsel %vm293_vm0, %v3172_v31, 0.0 }
 0x895   : > { %v2759_v47 = vpop.f32.mrf.mxu1  ;;  %v6287_v20 = vadd.f32 %v2936_v4, %v5925_v11  ;;  %v3171_v11 = vmul.f32 %v6290_v59, %v6290_v59  ;;  %v3024_v3 = vpop.xlane.xlu0 %3023 }
 0x896   : > { %v2805_v57 = vadd.f32 %v6166_v44, %v2759_v47  ;;  %v3110_v4 = vmul.f32 %v3024_v3, %v4559_v5 }
 0x897   : > { %v3055_v45 = vsel %vm293_vm0, %v6287_v20, 0.0  ;;  %v3205_v9 = vsel %vm293_vm0, %v3171_v11, 0.0 }
 0x898   : > { %3056 = vadd.xlane.f32.xlu2 %v3055_v45  ;;  %3203 = vadd.xlane.f32.xlu1 %v3202_v51  ;;  %v6334_v7 = vsub.f32 %v6084_v42, %v3110_v4 }
 0x89a   : > { %v2938_v26 = vpop.f32.mrf.mxu3  ;;  %v3174_v42 = vmul.f32 %v6334_v7, %v6334_v7 }
 0x89b   : > { %v2939_v30 = vadd.f32 %v2938_v26, %v6031_v19 }
 0x89d   : > { %v2761_v49 = vpop.f32.mrf.mxu1  ;;  %v6300_v38 = vadd.f32 %v2939_v30, %v5967_v43  ;;  %v3109_v43 = vmul.f32 %v3021_v21, %v4559_v5  ;;  %v3027_v30 = vpop.xlane.xlu1 %3026 }
 0x89e   : > { %v2806_v52 = vadd.f32 %v6166_v44, %v2761_v49 }
 0x89f   : > { %v3058_v25 = vsel %vm293_vm0, %v6300_v38, 0.0  ;;  %v6319_v23 = vsub.f32 %v6073_v27, %v3109_v43 }
 0x8a0   : > { %v2827_v28 = vpack.c.bf16 %v2806_v52, %v2805_v57  ;;  %3059 = vadd.xlane.f32.xlu0 %v3058_v25  ;;  %3206 = vadd.xlane.f32.xlu2 %v3205_v9 }
 0x8a2   : > { %v2940_v2 = vpop.f32.mrf.mxu3  ;;  %4019 = vmatmul.msk.bf16.gmra.mxu3 %vm491_vm1, %v2827_v28  ;;  %v3214_v28 = vsel %vm293_vm0, %v3174_v42, 0.0 }
 0x8a3   : > { %v2941_v60 = vadd.f32 %v2940_v2, %v6031_v19  ;;  %v3030_v2 = vpop.xlane.xlu2 %3029 }
 0x8a5   : > { %v6316_v15 = vadd.f32 %v2941_v60, %v5970_v10  ;;  %v2764_v17 = vpop.f32.mrf.mxu1  ;;  %v3173_v10 = vmul.f32 %v6319_v23, %v6319_v23  ;;  %v3112_v60 = vmul.f32 %v3030_v2, %v4559_v5 }
 0x8a6   : > { %v2807_v45 = vadd.f32 %v6166_v44, %v2764_v17 }
 0x8a7   : > { %v3061_v8 = vsel %vm293_vm0, %v6316_v15, 0.0  ;;  %v3211_v26 = vsel %vm293_vm0, %v3173_v10, 0.0  ;;  %v6363_v3 = vsub.f32 %v6115_v46, %v3112_v60 }
 0x8a8   : > { %3062 = vadd.xlane.f32.xlu1 %v3061_v8  ;;  %3209 = vadd.xlane.f32.xlu0 %v3208_v55 }
 0x8a9   : > { %v3176_v46 = vmul.f32 %v6363_v3, %v6363_v3 }
 0x8aa   : > { %v2943_v36 = vpop.f32.mrf.mxu3 }
 0x8ab   : > { %v2944_v0 = vadd.f32 %v2943_v36, %v6031_v19 }
 0x8ad   : > { %v6329_v47 = vadd.f32 %v2944_v0, %v6009_v13  ;;  %v2766_v27 = vpop.f32.mrf.mxu1  ;;  %v3111_v13 = vmul.f32 %v3027_v30, %v4559_v5  ;;  %v3033_v0 = vpop.xlane.xlu0 %3032 }
 0x8ae   : > { %v2808_v51 = vadd.f32 %v6166_v44, %v2766_v27 }
 0x8af   : > { %v3064_v24 = vsel %vm293_vm0, %v6329_v47, 0.0  ;;  %v6348_v9 = vsub.f32 %v6152_v48, %v3111_v13  ;;  %v3036_v13 = vpop.xlane.xlu1 %3035 }
 0x8b0   : > { %v2828_v11 = vpack.c.bf16 %v2808_v51, %v2807_v45  ;;  %3212 = vadd.xlane.f32.xlu1 %v3211_v26  ;;  %3065 = vadd.xlane.f32.xlu2 %v3064_v24  ;;  %v3220_v24 = vsel %vm293_vm0, %v3176_v46, 0.0 }
 0x8b2   : > { %v2945_v49 = vpop.f32.mrf.mxu3  ;;  %4020 = vmatmul.msk.bf16.gmra.mxu3 %vm491_vm1, %v2828_v11 }
 0x8b3   : > { %v2946_v57 = vadd.f32 %v2945_v49, %v6031_v19 }
 0x8b5   : > { %v6345_v52 = vadd.f32 %v2946_v57, %v6012_v35  ;;  %v2769_v25 = vpop.f32.mrf.mxu1  ;;  %v3175_v35 = vmul.f32 %v6348_v9, %v6348_v9  ;;  %v3039_v57 = vpop.xlane.xlu2 %3038 }
 0x8b6   : > { %v2809_v8 = vadd.f32 %v6166_v44, %v2769_v25  ;;  %v6387_v42 = vpop.xlane.xlu0 %3041 }
 0x8b7   : > { %v3067_v21 = vsel %vm293_vm0, %v6345_v52, 0.0  ;;  %v3217_v4 = vsel %vm293_vm0, %v3175_v35, 0.0 }
 0x8b8   : > { %3068 = vadd.xlane.f32.xlu0 %v3067_v21  ;;  %3215 = vadd.xlane.f32.xlu2 %v3214_v28 }
 0x8ba   : > { %v2948_v43 = vpop.f32.mrf.mxu3 }
 0x8bb   : > { %v2949_v31 = vadd.f32 %v2948_v43, %v6031_v19 }
 0x8bd   : > { %v6358_v17 = vadd.f32 %v2949_v31, %v6052_v37  ;;  %v2771_v48 = vpop.f32.mrf.mxu1  ;;  %v3113_v37 = vmul.f32 %v3033_v0, %v4559_v5 }
 0x8be   : > { %v2810_v55 = vadd.f32 %v6166_v44, %v2771_v48  ;;  %v6393_v21 = vpop.xlane.xlu0 %3050 }
 0x8bf   : > { %v3070_v36 = vsel %vm293_vm0, %v6358_v17, 0.0  ;;  %v6377_v26 = vsub.f32 %v6146_v33, %v3113_v37  ;;  %v6389_v33 = vpop.xlane.xlu2 %3047 }
 0x8c0   : > { %v2829_v10 = vpack.c.bf16 %v2810_v55, %v2809_v8  ;;  %3071 = vadd.xlane.f32.xlu1 %v3070_v36  ;;  %3218 = vadd.xlane.f32.xlu0 %v3217_v4  ;;  %v3114_v4 = vmul.f32 %v3036_v13, %v4559_v5 }
 0x8c1   : > { %v3177_v11 = vmul.f32 %v6377_v26, %v6377_v26 }
 0x8c2   : > { %v2950_v27 = vpop.f32.mrf.mxu3  ;;  %4021 = vmatmul.msk.bf16.gmra.mxu3 %vm491_vm1, %v2829_v10 }
 0x8c3   : > { %v2951_v45 = vadd.f32 %v2950_v27, %v6031_v19  ;;  %v3223_v49 = vsel %vm293_vm0, %v3177_v11, 0.0  ;;  %v6409_v11 = vsub.f32 %v6179_v14, %v3114_v4 }
 0x8c5   : > { %v6374_v51 = vadd.f32 %v2951_v45, %v6055_v56  ;;  %v6385_v56 = vpop.xlane.xlu1 %3044 }
 0x8c7   : > { %v3073_v30 = vsel %vm293_vm0, %v6374_v51, 0.0 }
 0x8c8   : > { %3221 = vadd.xlane.f32.xlu1 %v3220_v24  ;;  %3074 = vadd.xlane.f32.xlu2 %v3073_v30 }
 0x8d0   : > { %3224 = vadd.xlane.f32.xlu2 %v3223_v49 }
 0x903   : > { %v6391_v25 = vpop.xlane.xlu1 %3053 }
 0x90b   : > { %v6395_v28 = vpop.xlane.xlu2 %3056  ;;  %v3204_v2 = vpop.xlane.xlu1 %3203 }
 0x90c   : > { %v3298_v43 = vmul.f32 %v3204_v2, %v4559_v5 }
 0x90e   : > { %v3330_v60 = vadd.f32 1e-05, %v3298_v43 }
 0x910   : > { %4178 = vrsqrt.f32 %v3330_v60  ;;  %v2774_v31 = vpop.f32.mrf.mxu1  ;;  %vm3368_vm14 = vweird.f32 %v3330_v60 }
 0x911   : > { %v2811_v24 = vadd.f32 %v6166_v44, %v2774_v31 }
 0x913   : > { %v3207_v35 = vpop.xlane.xlu2 %3206  ;;  %v6398_v48 = vpop.xlane.xlu0 %3059 }
 0x914   : > { %v3299_v8 = vmul.f32 %v3207_v35, %v4559_v5 }
 0x915   : > { %v2953_v55 = vpop.f32.mrf.mxu3 }
 0x916   : > { %v4179_v36 = vpop.eup %4178  ;;  %v3331_v0 = vadd.f32 1e-05, %v3299_v8  ;;  %v2954_v10 = vadd.f32 %v2953_v55, %v6031_v19  ;;  %v3115_v8 = vmul.f32 %v3039_v57, %v4559_v5 }
 0x917   : > { %v3363_v27 = vmul.f32 %v4179_v36, %v3330_v60  ;;  %vm3369_vm13 = vweird.f32 %v4179_v36 }
 0x918   : > { %4180 = vrsqrt.f32 %v3331_v0  ;;  %v6404_v37 = vadd.f32 %v2954_v10, %v6128_v22  ;;  %v2776_v45 = vpop.f32.mrf.mxu1  ;;  %v3178_v10 = vmul.f32 %v6409_v11, %v6409_v11  ;;  %vm3370_vm15 = vmor %vm3368_vm14, %vm3369_vm13  ;;  %vm3378_vm2 = vweird.f32 %v3331_v0 }
 0x919   : > { %v3364_v46 = vmul.f32 %v4179_v36, %v3363_v27  ;;  %v2812_v30 = vadd.f32 %v6166_v44, %v2776_v45 }
 0x91a   : > { %v3076_v49 = vsel %vm293_vm0, %v6404_v37, 0.0 }
 0x91b   : > { %v3365_v13 = vmul.f32 0.5, %v3364_v46  ;;  %v2830_v2 = vpack.c.bf16 %v2812_v30, %v2811_v24  ;;  %v6413_v43 = vpop.xlane.xlu1 %3062  ;;  %3077 = vadd.xlane.f32.xlu0 %v3076_v49  ;;  %v3210_v35 = vpop.xlane.xlu0 %3209  ;;  %v6424_v46 = vperm.slane %v6025_v41, 1  ;;  %v6431_v24 = vsub.f32 %v6192_v12, %v3115_v8 }
 0x91c   : > { %v3300_v22 = vmul.f32 %v3210_v35, %v4559_v5  ;;  %v3226_v35 = vsel %vm293_vm0, %v3178_v10, 0.0 }
 0x91d   : > { %v3366_v55 = vsub.f32 1.5, %v3365_v13  ;;  %v2955_v31 = vpop.f32.mrf.mxu3  ;;  %4022 = vmatmul.msk.bf16.gmra.mxu3 %vm491_vm1, %v2830_v2  ;;  %v6434_v13 = vperm.slane %v6025_v41, 2  ;;  %v3116_v41 = vmul.f32 %v6387_v42, %v4559_v5 }
 0x91e   : > { %v4181_v44 = vpop.eup %4180  ;;  %v6418_v14 = vadd.f32 1e-05, %v3300_v22  ;;  %v2956_v4 = vadd.f32 %v2955_v31, %v6031_v19 }
 0x91f   : > { %v3367_v27 = vmul.f32 %v4179_v36, %v3366_v55  ;;  %v3373_v45 = vmul.f32 %v4181_v44, %v3331_v0  ;;  %vm3379_vm1 = vweird.f32 %v4181_v44 }
 0x920   : > { %4182 = vrsqrt.f32 %v6418_v14  ;;  %v6428_v57 = vadd.f32 %v2956_v4, %v6131_v1  ;;  %vm3380_vm3 = vmor %vm3378_vm2, %vm3379_vm1  ;;  %vm3388_vm5 = vweird.f32 %v6418_v14 }
 0x921   : > { %v3371_v30 = vsel %vm3370_vm15, %v4179_v36, %v3367_v27  ;;  %v3374_v49 = vmul.f32 %v4181_v44, %v3373_v45  ;;  %v3179_v45 = vmul.f32 %v6431_v24, %v6431_v24 }
 0x922   : > { %v3682_v60 = vmul.f32 %v3371_v30, %v6268_v32  ;;  %v3079_v2 = vsel %vm293_vm0, %v6428_v57, 0.0 }
 0x923   : > { %v3375_v22 = vmul.f32 0.5, %v3374_v49  ;;  %3080 = vadd.xlane.f32.xlu1 %v3079_v2  ;;  %v3213_v55 = vpop.xlane.xlu1 %3212  ;;  %3227 = vadd.xlane.f32.xlu0 %v3226_v35  ;;  %v6440_v1 = vpop.xlane.xlu2 %3065 }
 0x924   : > { %v3715_v12 = vmul.f32 %v6424_v46, %v3682_v60  ;;  %v3301_v36 = vmul.f32 %v3213_v55, %v4559_v5  ;;  %v6467_v60 = vsub.f32 %v6202_v54, %v3116_v41  ;;  %v3229_v55 = vsel %vm293_vm0, %v3179_v45, 0.0 }
 0x925   : > { %v3376_v32 = vsub.f32 1.5, %v3375_v22  ;;  %v2958_v8 = vpop.f32.mrf.mxu3 }
 0x926   : > { %v4183_v31 = vpop.eup %4182  ;;  %v3748_v4 = vadd.f32 %v6434_v13, %v3715_v12  ;;  %v6454_v10 = vadd.f32 1e-05, %v3301_v36  ;;  %v2959_v27 = vadd.f32 %v2958_v8, %v6031_v19 }
 0x927   : > { %v3377_v30 = vmul.f32 %v4181_v44, %v3376_v32  ;;  %v3383_v49 = vmul.f32 %v4183_v31, %v6418_v14  ;;  %vm3389_vm4 = vweird.f32 %v4183_v31 }
 0x928   : > { %3780 = vst.msk [vmem:[%s6449_s12] sm:$0xff] %vm293_vm0, %v3748_v4  ;;  %4184 = vrsqrt.f32 %v6454_v10  ;;  %v6464_v42 = vadd.f32 %v2959_v27, %v6173_v39  ;;  %v3117_v4 = vmul.f32 %v6385_v56, %v4559_v5  ;;  %vm3390_vm6 = vmor %vm3388_vm5, %vm3389_vm4  ;;  %vm3398_vm8 = vweird.f32 %v6454_v10 }
 0x929   : > { %v3381_v2 = vsel %vm3380_vm3, %v4181_v44, %v3377_v30  ;;  %v3384_v35 = vmul.f32 %v4183_v31, %v3383_v49 }
 0x92a   : > { %v3683_v22 = vmul.f32 %v3381_v2, %v6290_v59  ;;  %v3082_v0 = vsel %vm293_vm0, %v6464_v42, 0.0  ;;  %v3180_v59 = vmul.f32 %v6467_v60, %v6467_v60 }
 0x92b   : > { %v3385_v12 = vmul.f32 0.5, %v3384_v35  ;;  %3230 = vadd.xlane.f32.xlu1 %v3229_v55  ;;  %v3216_v36 = vpop.xlane.xlu2 %3215  ;;  %3083 = vadd.xlane.f32.xlu2 %v3082_v0  ;;  %v6473_v32 = vpop.xlane.xlu0 %3068  ;;  %v6494_v55 = vsub.f32 %v6222_v40, %v3117_v4  ;;  %v3118_v40 = vmul.f32 %v6389_v33, %v4559_v5 }
 0x92c   : > { %v3716_v39 = vmul.f32 %v6424_v46, %v3683_v22  ;;  %v3302_v54 = vmul.f32 %v3216_v36, %v4559_v5 }
 0x92d   : > { %v3386_v44 = vsub.f32 1.5, %v3385_v12  ;;  %v2960_v41 = vpop.f32.mrf.mxu3  ;;  %v3232_v12 = vsel %vm293_vm0, %v3180_v59, 0.0 }
 0x92e   : > { %v4185_v8 = vpop.eup %4184  ;;  %v3749_v27 = vadd.f32 %v6434_v13, %v3716_v39  ;;  %v6482_v45 = vadd.f32 1e-05, %v3302_v54  ;;  %v2961_v30 = vadd.f32 %v2960_v41, %v6031_v19 }
 0x92f   : > { %v3387_v49 = vmul.f32 %v4183_v31, %v3386_v44  ;;  %v3393_v2 = vmul.f32 %v4185_v8, %v6454_v10  ;;  %vm3399_vm7 = vweird.f32 %v4185_v8 }
 0x930   : > { %3781 = vst.msk [vmem:[%s6449_s12 + $0x8] sm:$0xff] %vm293_vm0, %v3749_v27  ;;  %4186 = vrsqrt.f32 %v6482_v45  ;;  %v6491_v35 = vadd.f32 %v2961_v30, %v6176_v16  ;;  %v3181_v30 = vmul.f32 %v6494_v55, %v6494_v55  ;;  %vm3400_vm9 = vmor %vm3398_vm8, %vm3399_vm7  ;;  %vm3408_vm11 = vweird.f32 %v6482_v45 }
 0x931   : > { %v3391_v56 = vsel %vm3390_vm6, %v4183_v31, %v3387_v49  ;;  %v3394_v22 = vmul.f32 %v4185_v8, %v3393_v2 }
 0x932   : > { %v3684_v0 = vmul.f32 %v3391_v56, %v6305_v53  ;;  %v3085_v14 = vsel %vm293_vm0, %v6491_v35, 0.0  ;;  %v6521_v56 = vsub.f32 %v6231_v29, %v3118_v40 }
 0x933   : > { %v3395_v36 = vmul.f32 0.5, %v3394_v22  ;;  %v6500_v39 = vpop.xlane.xlu1 %3071  ;;  %3086 = vadd.xlane.f32.xlu0 %v3085_v14  ;;  %3233 = vadd.xlane.f32.xlu2 %v3232_v12  ;;  %v3219_v16 = vpop.xlane.xlu0 %3218  ;;  %v3235_v12 = vsel %vm293_vm0, %v3181_v30, 0.0 }
 0x934   : > { %v3717_v31 = vmul.f32 %v6424_v46, %v3684_v0  ;;  %v3303_v54 = vmul.f32 %v3219_v16, %v4559_v5 }
 0x935   : > { %v3396_v53 = vsub.f32 1.5, %v3395_v36  ;;  %v2963_v44 = vpop.f32.mrf.mxu3 }
 0x936   : > { %v4187_v41 = vpop.eup %4186  ;;  %v3750_v59 = vadd.f32 %v6434_v13, %v3717_v31  ;;  %v6507_v4 = vadd.f32 1e-05, %v3303_v54  ;;  %v2964_v27 = vadd.f32 %v2963_v44, %v6031_v19 }
 0x937   : > { %v3397_v49 = vmul.f32 %v4185_v8, %v3396_v53  ;;  %v3403_v2 = vmul.f32 %v4187_v41, %v6482_v45  ;;  %vm3409_vm10 = vweird.f32 %v4187_v41  ;;  %v3119_v53 = vmul.f32 %v6393_v21, %v4559_v5 }
 0x938   : > { %3782 = vst.msk [vmem:[%s6449_s12 + $0x10] sm:$0xff] %vm293_vm0, %v3750_v59  ;;  %4188 = vrsqrt.f32 %v6507_v4  ;;  %v6518_v33 = vadd.f32 %v2964_v27, %v6210_v18  ;;  %vm3410_vm12 = vmor %vm3408_vm11, %vm3409_vm10  ;;  %vm3418_vm14 = vweird.f32 %v6507_v4 }
 0x939   : > { %v3401_v22 = vsel %vm3400_vm9, %v4185_v8, %v3397_v49  ;;  %v3404_v0 = vmul.f32 %v4187_v41, %v3403_v2  ;;  %v6545_v21 = vsub.f32 %v6250_v61, %v3119_v53 }
 0x93a   : > { %v3685_v14 = vmul.f32 %v3401_v22, %v6319_v23  ;;  %v3088_v10 = vsel %vm293_vm0, %v6518_v33, 0.0  ;;  %v3182_v23 = vmul.f32 %v6521_v56, %v6521_v56 }
 0x93b   : > { %v3405_v36 = vmul.f32 0.5, %v3404_v0  ;;  %v3222_v16 = vpop.xlane.xlu1 %3221  ;;  %3236 = vadd.xlane.f32.xlu0 %v3235_v12  ;;  %3089 = vadd.xlane.f32.xlu1 %v3088_v10  ;;  %v6527_v31 = vpop.xlane.xlu2 %3074 }
 0x93c   : > { %v3718_v18 = vmul.f32 %v6424_v46, %v3685_v14  ;;  %v3304_v29 = vmul.f32 %v3222_v16, %v4559_v5  ;;  %v3238_v12 = vsel %vm293_vm0, %v3182_v23, 0.0 }
 0x93d   : > { %v3406_v8 = vsub.f32 1.5, %v3405_v36  ;;  %v2965_v54 = vpop.f32.mrf.mxu3 }
 0x93e   : > { %v4189_v40 = vpop.eup %4188  ;;  %v3751_v44 = vadd.f32 %v6434_v13, %v3718_v18  ;;  %v3336_v59 = vadd.f32 1e-05, %v3304_v29  ;;  %v2966_v27 = vadd.f32 %v2965_v54, %v6031_v19  ;;  %v3183_v54 = vmul.f32 %v6545_v21, %v6545_v21 }
 0x93f   : > { %v3407_v30 = vmul.f32 %v4187_v41, %v3406_v8  ;;  %v3413_v49 = vmul.f32 %v4189_v40, %v6507_v4  ;;  %vm3419_vm13 = vweird.f32 %v4189_v40 }
 0x940   : > { %3783 = vst.msk [vmem:[%s6449_s12 + $0x18] sm:$0xff] %vm293_vm0, %v3751_v44  ;;  %4190 = vrsqrt.f32 %v3336_v59  ;;  %v6542_v2 = vadd.f32 %v2966_v27, %v6213_v34  ;;  %vm3420_vm15 = vmor %vm3418_vm14, %vm3419_vm13  ;;  %vm3428_vm2 = vweird.f32 %v3336_v59 }
 0x941   : > { %v3411_v22 = vsel %vm3410_vm12, %v4187_v41, %v3407_v30  ;;  %v3414_v0 = vmul.f32 %v4189_v40, %v3413_v49 }
 0x942   : > { %v3686_v14 = vmul.f32 %v3411_v22, %v6334_v7  ;;  %v3091_v45 = vsel %vm293_vm0, %v6542_v2, 0.0 }
 0x943   : > { %v3415_v10 = vmul.f32 0.5, %v3414_v0  ;;  %3239 = vadd.xlane.f32.xlu1 %v3238_v12  ;;  %v3225_v36 = vpop.xlane.xlu2 %3224  ;;  %3092 = vadd.xlane.f32.xlu2 %v3091_v45  ;;  %v3241_v0 = vsel %vm293_vm0, %v3183_v54, 0.0 }
 0x944   : > { %v3719_v34 = vmul.f32 %v6424_v46, %v3686_v14  ;;  %v3305_v41 = vmul.f32 %v3225_v36, %v4559_v5 }
 0x945   : > { %v3416_v16 = vsub.f32 1.5, %v3415_v10  ;;  %v2968_v61 = vpop.f32.mrf.mxu3 }
 0x946   : > { %v4191_v18 = vpop.eup %4190  ;;  %v3752_v7 = vadd.f32 %v6434_v13, %v3719_v34  ;;  %v3337_v29 = vadd.f32 1e-05, %v3305_v41  ;;  %v2969_v8 = vadd.f32 %v2968_v61, %v6031_v19 }
 0x947   : > { %v3417_v23 = vmul.f32 %v4189_v40, %v3416_v16  ;;  %v3423_v53 = vmul.f32 %v4191_v18, %v3336_v59  ;;  %vm3429_vm1 = vweird.f32 %v4191_v18 }
 0x948   : > { %3784 = vst.msk [vmem:[%s6449_s12 + $0x20] sm:$0xff] %vm293_vm0, %v3752_v7  ;;  %4192 = vrsqrt.f32 %v3337_v29  ;;  %v6561_v44 = vadd.f32 %v2969_v8, %v6239_v63  ;;  %vm3430_vm3 = vmor %vm3428_vm2, %vm3429_vm1  ;;  %vm3438_vm5 = vweird.f32 %v3337_v29 }
 0x949   : > { %v3421_v27 = vsel %vm3420_vm15, %v4189_v40, %v3417_v23  ;;  %v3424_v30 = vmul.f32 %v4191_v18, %v3423_v53  ;;  %v3121_v40 = vmul.f32 %v6395_v28, %v4559_v5 }
 0x94a   : > { %v3687_v49 = vmul.f32 %v3421_v27, %v6348_v9  ;;  %v3094_v22 = vsel %vm293_vm0, %v6561_v44, 0.0 }
 0x94b   : > { %v3425_v14 = vmul.f32 0.5, %v3424_v30  ;;  %3095 = vadd.xlane.f32.xlu0 %v3094_v22  ;;  %3242 = vadd.xlane.f32.xlu2 %v3241_v0  ;;  %v6578_v7 = vsub.f32 %v6287_v20, %v3121_v40  ;;  %v3127_v22 = vmul.f32 %v6527_v31, %v4559_v5 }
 0x94c   : > { %v3720_v4 = vmul.f32 %v6424_v46, %v3687_v49 }
 0x94d   : > { %v3426_v12 = vsub.f32 1.5, %v3425_v14  ;;  %v2970_v45 = vpop.f32.mrf.mxu3  ;;  %v3185_v20 = vmul.f32 %v6578_v7, %v6578_v7 }
 0x94e   : > { %v4193_v63 = vpop.eup %4192  ;;  %v3753_v9 = vadd.f32 %v6434_v13, %v3720_v4  ;;  %v2971_v10 = vadd.f32 %v2970_v45, %v6031_v19 }
 0x94f   : > { %v3427_v36 = vmul.f32 %v4191_v18, %v3426_v12  ;;  %v3433_v34 = vmul.f32 %v4193_v63, %v3337_v29  ;;  %vm3439_vm4 = vweird.f32 %v4193_v63  ;;  %v3247_v49 = vsel %vm293_vm0, %v3185_v20, 0.0 }
 0x950   : > { %3785 = vst.msk [vmem:[%s6449_s12 + $0x28] sm:$0xff] %vm293_vm0, %v3753_v9  ;;  %v6575_v41 = vadd.f32 %v2971_v10, %v6242_v62  ;;  %v3124_v62 = vmul.f32 %v6440_v1, %v4559_v5  ;;  %vm3440_vm6 = vmor %vm3438_vm5, %vm3439_vm4 }
 0x951   : > { %v3431_v16 = vsel %vm3430_vm3, %v4191_v18, %v3427_v36  ;;  %v3434_v61 = vmul.f32 %v4193_v63, %v3433_v34 }
 0x952   : > { %v3688_v28 = vmul.f32 %v3431_v16, %v6363_v3  ;;  %v3097_v8 = vsel %vm293_vm0, %v6575_v41, 0.0  ;;  %v6592_v27 = vsub.f32 %v6329_v47, %v3124_v62  ;;  %v6605_v47 = vsub.f32 %v6374_v51, %v3127_v22 }
 0x953   : > { %v3435_v54 = vmul.f32 0.5, %v3434_v61  ;;  %3098 = vadd.xlane.f32.xlu1 %v3097_v8  ;;  %v3122_v61 = vmul.f32 %v6398_v48, %v4559_v5 }
 0x954   : > { %v3721_v59 = vmul.f32 %v6424_v46, %v3688_v28  ;;  %v3188_v29 = vmul.f32 %v6592_v27, %v6592_v27  ;;  %v3191_v14 = vmul.f32 %v6605_v47, %v6605_v47 }
 0x955   : > { %v3436_v23 = vsub.f32 1.5, %v3435_v54  ;;  %v6630_v20 = vsub.f32 %v6300_v38, %v3122_v61 }
 0x956   : > { %v3754_v18 = vadd.f32 %v6434_v13, %v3721_v59  ;;  %v3265_v4 = vsel %vm293_vm0, %v3191_v14, 0.0 }
 0x957   : > { %v3437_v53 = vmul.f32 %v4193_v63, %v3436_v23  ;;  %v3186_v14 = vmul.f32 %v6630_v20, %v6630_v20 }
 0x958   : > { %3786 = vst.msk [vmem:[%s6449_s12 + $0x30] sm:$0xff] %vm293_vm0, %v3754_v18 }
 0x959   : > { %v3441_v3 = vsel %vm3440_vm6, %v4193_v63, %v3437_v53 }
 0x95a   : > { %v3689_v30 = vmul.f32 %v3441_v3, %v6377_v26  ;;  %v3256_v26 = vsel %vm293_vm0, %v3188_v29, 0.0 }
 0x95b   : > { %3248 = vadd.xlane.f32.xlu1 %v3247_v49  ;;  %v3120_v49 = vmul.f32 %v6391_v25, %v4559_v5 }
 0x95c   : > { %v3722_v1 = vmul.f32 %v6424_v46, %v3689_v30 }
 0x95e   : > { %v3755_v0 = vadd.f32 %v6434_v13, %v3722_v1 }
 0x960   : > { %3787 = vst.msk [vmem:[%s6449_s12 + $0x38] sm:$0xff] %vm293_vm0, %v3755_v0  ;;  %v3125_v0 = vmul.f32 %v6473_v32, %v4559_v5 }
 0x963   : > { %3257 = vadd.xlane.f32.xlu1 %v3256_v26 }
 0x96b   : > { %3266 = vadd.xlane.f32.xlu1 %v3265_v4 }
 0x98e   : > { %v6611_v31 = vpop.xlane.xlu0 %3077 }
 0x996   : > { %v6613_v12 = vpop.xlane.xlu1 %3080  ;;  %v3228_v45 = vpop.xlane.xlu0 %3227 }
 0x997   : > { %v3306_v63 = vmul.f32 %v3228_v45, %v4559_v5 }
 0x999   : > { %v3338_v40 = vadd.f32 1e-05, %v3306_v63  ;;  %v6652_v63 = vsub.f32 %v6262_v6, %v3120_v49 }
 0x99b   : > { %4194 = vrsqrt.f32 %v3338_v40  ;;  %vm3448_vm8 = vweird.f32 %v3338_v40 }
 0x99e   : > { %v3231_v51 = vpop.xlane.xlu1 %3230  ;;  %v3084_v9 = vpop.xlane.xlu2 %3083 }
 0x99f   : > { %v3307_v10 = vmul.f32 %v3231_v51, %v4559_v5  ;;  %v3130_v36 = vmul.f32 %v3084_v9, %v4559_v5  ;;  %v6655_v9 = vsub.f32 %v6345_v52, %v3125_v0  ;;  %v3123_v52 = vmul.f32 %v6413_v43, %v4559_v5 }
 0x9a0   : > { %v2973_v34 = vpop.f32.mrf.mxu3 }
 0x9a1   : > { %v4195_v16 = vpop.eup %4194  ;;  %v3339_v28 = vadd.f32 1e-05, %v3307_v10  ;;  %v6621_v8 = vsub.f32 %v6464_v42, %v3130_v36  ;;  %v2974_v54 = vadd.f32 %v2973_v34, %v6031_v19  ;;  %v3250_v10 = vsel %vm293_vm0, %v3186_v14, 0.0 }
 0x9a2   : > { %v3443_v59 = vmul.f32 %v4195_v16, %v3338_v40  ;;  %vm3449_vm7 = vweird.f32 %v4195_v16 }
 0x9a3   : > { %4196 = vrsqrt.f32 %v3339_v28  ;;  %v6625_v23 = vadd.f32 %v2974_v54, %v6273_v50  ;;  %v3194_v62 = vmul.f32 %v6621_v8, %v6621_v8  ;;  %vm3450_vm9 = vmor %vm3448_vm8, %vm3449_vm7  ;;  %vm3458_vm11 = vweird.f32 %v3339_v28 }
 0x9a4   : > { %v3444_v18 = vmul.f32 %v4195_v16, %v3443_v59 }
 0x9a5   : > { %v3274_v48 = vsel %vm293_vm0, %v3194_v62, 0.0  ;;  %v3100_v42 = vsel %vm293_vm0, %v6625_v23, 0.0  ;;  %v3184_v62 = vmul.f32 %v6652_v63, %v6652_v63 }
 0x9a6   : > { %v3445_v53 = vmul.f32 0.5, %v3444_v18  ;;  %3275 = vadd.xlane.f32.xlu1 %v3274_v48  ;;  %v3234_v3 = vpop.xlane.xlu2 %3233  ;;  %3101 = vadd.xlane.f32.xlu2 %v3100_v42  ;;  %v6635_v30 = vpop.xlane.xlu0 %3086  ;;  %v3189_v18 = vmul.f32 %v6655_v9, %v6655_v9  ;;  %v3128_v48 = vmul.f32 %v6611_v31, %v4559_v5 }
 0x9a7   : > { %v3308_v50 = vmul.f32 %v3234_v3, %v4559_v5 }
 0x9a8   : > { %v3446_v1 = vsub.f32 1.5, %v3445_v53  ;;  %v2975_v38 = vpop.f32.mrf.mxu3  ;;  %v6681_v53 = vsub.f32 %v6316_v15, %v3123_v52  ;;  %v3259_v31 = vsel %vm293_vm0, %v3189_v18, 0.0 }
 0x9a9   : > { %v4197_v22 = vpop.eup %4196  ;;  %v6642_v29 = vadd.f32 1e-05, %v3308_v50  ;;  %v2976_v26 = vadd.f32 %v2975_v38, %v6031_v19 }
 0x9aa   : > { %v3447_v4 = vmul.f32 %v4195_v16, %v3446_v1  ;;  %v3453_v45 = vmul.f32 %v4197_v22, %v3339_v28  ;;  %vm3459_vm10 = vweird.f32 %v4197_v22  ;;  %v3244_v1 = vsel %vm293_vm0, %v3184_v62, 0.0 }
 0x9ab   : > { %4198 = vrsqrt.f32 %v6642_v29  ;;  %v6649_v25 = vadd.f32 %v2976_v26, %v6276_v58  ;;  %vm3460_vm12 = vmor %vm3458_vm11, %vm3459_vm10  ;;  %v6687_v28 = vsub.f32 %v6404_v37, %v3128_v48  ;;  %v3187_v37 = vmul.f32 %v6681_v53, %v6681_v53 }
 0x9ac   : > { %v3451_v32 = vsel %vm3450_vm9, %v4195_v16, %v3447_v4  ;;  %v3454_v51 = vmul.f32 %v4197_v22, %v3453_v45  ;;  %vm3468_vm14 = vweird.f32 %v6642_v29 }
 0x9ad   : > { %v3690_v19 = vmul.f32 %v3451_v32, %v6409_v11  ;;  %v3103_v40 = vsel %vm293_vm0, %v6649_v25, 0.0  ;;  %v3253_v52 = vsel %vm293_vm0, %v3187_v37, 0.0 }
 0x9ae   : > { %v3455_v36 = vmul.f32 0.5, %v3454_v51  ;;  %v6661_v34 = vpop.xlane.xlu1 %3089  ;;  %3104 = vadd.xlane.f32.xlu0 %v3103_v40  ;;  %3251 = vadd.xlane.f32.xlu2 %v3250_v10  ;;  %v3237_v6 = vpop.xlane.xlu0 %3236  ;;  %v3131_v51 = vmul.f32 %v6635_v30, %v4559_v5 }
 0x9af   : > { %v3723_v58 = vmul.f32 %v6424_v46, %v3690_v19  ;;  %v3309_v16 = vmul.f32 %v3237_v6, %v4559_v5 }
 0x9b0   : > { %v3456_v11 = vsub.f32 1.5, %v3455_v36  ;;  %v3192_v36 = vmul.f32 %v6687_v28, %v6687_v28 }
 0x9b1   : > { %v4199_v61 = vpop.eup %4198  ;;  %v3756_v54 = vadd.f32 %v6434_v13, %v3723_v58  ;;  %v6668_v59 = vadd.f32 1e-05, %v3309_v16  ;;  %v6718_v16 = vsub.f32 %v6491_v35, %v3131_v51 }
 0x9b2   : > { %v3457_v42 = vmul.f32 %v4197_v22, %v3456_v11  ;;  %v3463_v43 = vmul.f32 %v4199_v61, %v6642_v29  ;;  %vm3469_vm13 = vweird.f32 %v4199_v61  ;;  %v3268_v18 = vsel %vm293_vm0, %v3192_v36, 0.0 }
 0x9b3   : > { %3788 = vst.msk [vmem:[%s6449_s12 + $0x40] sm:$0xff] %vm293_vm0, %v3756_v54  ;;  %4200 = vrsqrt.f32 %v6668_v59  ;;  %vm3470_vm15 = vmor %vm3468_vm14, %vm3469_vm13  ;;  %vm3478_vm2 = vweird.f32 %v6668_v59 }
 0x9b4   : > { %v3461_v3 = vsel %vm3460_vm12, %v4197_v22, %v3457_v42  ;;  %v3464_v50 = vmul.f32 %v4199_v61, %v3463_v43  ;;  %v3129_v43 = vmul.f32 %v6613_v12, %v4559_v5 }
 0x9b5   : > { %v3691_v49 = vmul.f32 %v3461_v3, %v6431_v24  ;;  %v3126_v24 = vmul.f32 %v6500_v39, %v4559_v5 }
 0x9b6   : > { %v3465_v38 = vmul.f32 0.5, %v3464_v50  ;;  %v3240_v0 = vpop.xlane.xlu1 %3239  ;;  %3245 = vadd.xlane.f32.xlu0 %v3244_v1  ;;  %v3093_v26 = vpop.xlane.xlu2 %3092  ;;  %3260 = vadd.xlane.f32.xlu2 %v3259_v31  ;;  %v6738_v12 = vsub.f32 %v6428_v57, %v3129_v43 }
 0x9b7   : > { %v3724_v14 = vmul.f32 %v6424_v46, %v3691_v49  ;;  %v3310_v15 = vmul.f32 %v3240_v0, %v4559_v5  ;;  %v3133_v22 = vmul.f32 %v3093_v26, %v4559_v5  ;;  %v6714_v6 = vsub.f32 %v6358_v17, %v3126_v24 }
 0x9b8   : > { %v3466_v4 = vsub.f32 1.5, %v3465_v38  ;;  %v3195_v49 = vmul.f32 %v6718_v16, %v6718_v16 }
 0x9b9   : > { %v4201_v45 = vpop.eup %4200  ;;  %v3757_v32 = vadd.f32 %v6434_v13, %v3724_v14  ;;  %v6699_v19 = vadd.f32 1e-05, %v3310_v15  ;;  %v6702_v40 = vsub.f32 %v6542_v2, %v3133_v22  ;;  %v3190_v35 = vmul.f32 %v6714_v6, %v6714_v6 }
 0x9ba   : > { %v3467_v10 = vmul.f32 %v4199_v61, %v3466_v4  ;;  %v3473_v39 = vmul.f32 %v4201_v45, %v6668_v59  ;;  %vm3479_vm1 = vweird.f32 %v4201_v45  ;;  %v3277_v4 = vsel %vm293_vm0, %v3195_v49, 0.0 }
 0x9bb   : > { %3789 = vst.msk [vmem:[%s6449_s12 + $0x48] sm:$0xff] %vm293_vm0, %v3757_v32  ;;  %4202 = vrsqrt.f32 %v6699_v19  ;;  %v3197_v30 = vmul.f32 %v6702_v40, %v6702_v40  ;;  %vm3480_vm3 = vmor %vm3478_vm2, %vm3479_vm1  ;;  %v3262_v15 = vsel %vm293_vm0, %v3190_v35, 0.0  ;;  %vm3488_vm5 = vweird.f32 %v6699_v19 }
 0x9bc   : > { %v3471_v2 = vsel %vm3470_vm15, %v4199_v61, %v3467_v10  ;;  %v3474_v58 = vmul.f32 %v4201_v45, %v3473_v39 }
 0x9bd   : > { %v3692_v29 = vmul.f32 %v3471_v2, %v6467_v60  ;;  %v3283_v11 = vsel %vm293_vm0, %v3197_v30, 0.0 }
 0x9be   : > { %v3475_v54 = vmul.f32 0.5, %v3474_v58  ;;  %3254 = vadd.xlane.f32.xlu0 %v3253_v52  ;;  %3284 = vadd.xlane.f32.xlu1 %v3283_v11  ;;  %v3243_v62 = vpop.xlane.xlu2 %3242  ;;  %v3096_v60 = vpop.xlane.xlu0 %3095 }
 0x9bf   : > { %v3725_v17 = vmul.f32 %v6424_v46, %v3692_v29  ;;  %v3311_v61 = vmul.f32 %v3243_v62, %v4559_v5  ;;  %3269 = vadd.xlane.f32.xlu2 %v3268_v18  ;;  %v3134_v38 = vmul.f32 %v3096_v60, %v4559_v5 }
 0x9c0   : > { %v3476_v48 = vsub.f32 1.5, %v3475_v54 }
 0x9c1   : > { %v4203_v42 = vpop.eup %4202  ;;  %v3758_v3 = vadd.f32 %v6434_v13, %v3725_v17  ;;  %v3343_v50 = vadd.f32 1e-05, %v3311_v61  ;;  %v6743_v59 = vsub.f32 %v6561_v44, %v3134_v38  ;;  %v3193_v44 = vmul.f32 %v6738_v12, %v6738_v12 }
 0x9c2   : > { %v3477_v1 = vmul.f32 %v4201_v45, %v3476_v48  ;;  %v3483_v31 = vmul.f32 %v4203_v42, %v6699_v19  ;;  %vm3489_vm4 = vweird.f32 %v4203_v42 }
 0x9c3   : > { %3790 = vst.msk [vmem:[%s6449_s12 + $0x50] sm:$0xff] %vm293_vm0, %v3758_v3  ;;  %4204 = vrsqrt.f32 %v3343_v50  ;;  %v3198_v39 = vmul.f32 %v6743_v59, %v6743_v59  ;;  %vm3490_vm6 = vmor %vm3488_vm5, %vm3489_vm4  ;;  %v3271_v58 = vsel %vm293_vm0, %v3193_v44, 0.0  ;;  %vm3498_vm8 = vweird.f32 %v3343_v50 }
 0x9c4   : > { %v3481_v0 = vsel %vm3480_vm3, %v4201_v45, %v3477_v1  ;;  %v3484_v26 = vmul.f32 %v4203_v42, %v3483_v31 }
 0x9c5   : > { %v3693_v14 = vmul.f32 %v3481_v0, %v6494_v55  ;;  %v3132_v55 = vmul.f32 %v6661_v34, %v4559_v5  ;;  %v3286_v19 = vsel %vm293_vm0, %v3198_v39, 0.0 }
 0x9c6   : > { %v3485_v22 = vmul.f32 0.5, %v3484_v26  ;;  %v3099_v24 = vpop.xlane.xlu1 %3098  ;;  %3263 = vadd.xlane.f32.xlu0 %v3262_v15 }
 0x9c7   : > { %v3726_v37 = vmul.f32 %v6424_v46, %v3693_v14  ;;  %3278 = vadd.xlane.f32.xlu2 %v3277_v4  ;;  %v6758_v2 = vsub.f32 %v6518_v33, %v3132_v55  ;;  %v3135_v18 = vmul.f32 %v3099_v24, %v4559_v5 }
 0x9c8   : > { %v3486_v45 = vsub.f32 1.5, %v3485_v22 }
 0x9c9   : > { %v4205_v57 = vpop.eup %4204  ;;  %v3759_v32 = vadd.f32 %v6434_v13, %v3726_v37  ;;  %v3196_v17 = vmul.f32 %v6758_v2, %v6758_v2  ;;  %v6773_v35 = vsub.f32 %v6575_v41, %v3135_v18 }
 0x9ca   : > { %v3487_v51 = vmul.f32 %v4203_v42, %v3486_v45  ;;  %v3493_v10 = vmul.f32 %v4205_v57, %v3343_v50  ;;  %vm3499_vm7 = vweird.f32 %v4205_v57 }
 0x9cb   : > { %3791 = vst.msk [vmem:[%s6449_s12 + $0x58] sm:$0xff] %vm293_vm0, %v3759_v32  ;;  %vm3500_vm9 = vmor %vm3498_vm8, %vm3499_vm7  ;;  %v3199_v38 = vmul.f32 %v6773_v35, %v6773_v35 }
 0x9cc   : > { %v3491_v36 = vsel %vm3490_vm6, %v4203_v42, %v3487_v51  ;;  %v3494_v30 = vmul.f32 %v4205_v57, %v3493_v10  ;;  %v3280_v42 = vsel %vm293_vm0, %v3196_v17, 0.0 }
 0x9cd   : > { %v3694_v34 = vmul.f32 %v3491_v36, %v6521_v56  ;;  %v3289_v41 = vsel %vm293_vm0, %v3199_v38, 0.0 }
 0x9ce   : > { %v3495_v29 = vmul.f32 0.5, %v3494_v30  ;;  %v3249_v52 = vpop.xlane.xlu1 %3248  ;;  %3272 = vadd.xlane.f32.xlu0 %v3271_v58 }
 0x9cf   : > { %v3727_v11 = vmul.f32 %v6424_v46, %v3694_v34  ;;  %v3313_v54 = vmul.f32 %v3249_v52, %v4559_v5  ;;  %3287 = vadd.xlane.f32.xlu2 %v3286_v19 }
 0x9d0   : > { %v3496_v62 = vsub.f32 1.5, %v3495_v29 }
 0x9d1   : > { %v3760_v33 = vadd.f32 %v6434_v13, %v3727_v11  ;;  %v3345_v56 = vadd.f32 1e-05, %v3313_v54 }
 0x9d2   : > { %v3497_v61 = vmul.f32 %v4205_v57, %v3496_v62 }
 0x9d3   : > { %3792 = vst.msk [vmem:[%s6449_s12 + $0x60] sm:$0xff] %vm293_vm0, %v3760_v33  ;;  %4206 = vrsqrt.f32 %v3345_v56  ;;  %vm3518_vm11 = vweird.f32 %v3345_v56 }
 0x9d4   : > { %v3501_v60 = vsel %vm3500_vm9, %v4205_v57, %v3497_v61 }
 0x9d5   : > { %v3695_v48 = vmul.f32 %v3501_v60, %v6545_v21 }
 0x9d6   : > { %3281 = vadd.xlane.f32.xlu0 %v3280_v42  ;;  %v3258_v43 = vpop.xlane.xlu1 %3257 }
 0x9d7   : > { %v3728_v3 = vmul.f32 %v6424_v46, %v3695_v48  ;;  %v3316_v49 = vmul.f32 %v3258_v43, %v4559_v5 }
 0x9d9   : > { %v4207_v50 = vpop.eup %4206  ;;  %v3761_v1 = vadd.f32 %v6434_v13, %v3728_v3  ;;  %v3348_v31 = vadd.f32 1e-05, %v3316_v49 }
 0x9da   : > { %v3513_v0 = vmul.f32 %v4207_v50, %v3345_v56  ;;  %vm3519_vm10 = vweird.f32 %v4207_v50 }
 0x9db   : > { %3793 = vst.msk [vmem:[%s6449_s12 + $0x68] sm:$0xff] %vm293_vm0, %v3761_v1  ;;  %4208 = vrsqrt.f32 %v3348_v31  ;;  %vm3520_vm12 = vmor %vm3518_vm11, %vm3519_vm10  ;;  %vm3548_vm14 = vweird.f32 %v3348_v31 }
 0x9dc   : > { %v3514_v21 = vmul.f32 %v4207_v50, %v3513_v0 }
 0x9de   : > { %v3515_v26 = vmul.f32 0.5, %v3514_v21  ;;  %3290 = vadd.xlane.f32.xlu0 %v3289_v41  ;;  %v3267_v14 = vpop.xlane.xlu1 %3266 }
 0x9df   : > { %v3319_v15 = vmul.f32 %v3267_v14, %v4559_v5 }
 0x9e0   : > { %v3516_v22 = vsub.f32 1.5, %v3515_v26 }
 0x9e1   : > { %v4209_v24 = vpop.eup %4208  ;;  %v3351_v4 = vadd.f32 1e-05, %v3319_v15 }
 0x9e2   : > { %v3517_v37 = vmul.f32 %v4207_v50, %v3516_v22  ;;  %v3543_v45 = vmul.f32 %v4209_v24, %v3348_v31  ;;  %vm3549_vm13 = vweird.f32 %v4209_v24 }
 0x9e3   : > { %4210 = vrsqrt.f32 %v3351_v4  ;;  %vm3550_vm15 = vmor %vm3548_vm14, %vm3549_vm13  ;;  %vm3578_vm2 = vweird.f32 %v3351_v4 }
 0x9e4   : > { %v3521_v57 = vsel %vm3520_vm12, %v4207_v50, %v3517_v37  ;;  %v3544_v55 = vmul.f32 %v4209_v24, %v3543_v45 }
 0x9e5   : > { %v3697_v32 = vmul.f32 %v3521_v57, %v6578_v7 }
 0x9e6   : > { %v3545_v44 = vmul.f32 0.5, %v3544_v55 }
 0x9e7   : > { %v3730_v51 = vmul.f32 %v6424_v46, %v3697_v32 }
 0x9e8   : > { %v3546_v10 = vsub.f32 1.5, %v3545_v44 }
 0x9e9   : > { %v4211_v39 = vpop.eup %4210  ;;  %v3763_v36 = vadd.f32 %v6434_v13, %v3730_v51 }
 0x9ea   : > { %v3547_v30 = vmul.f32 %v4209_v24, %v3546_v10  ;;  %v3573_v34 = vmul.f32 %v4211_v39, %v3351_v4  ;;  %vm3579_vm1 = vweird.f32 %v4211_v39 }
 0x9eb   : > { %3795 = vst.msk [vmem:[%s6449_s12 + $0x78] sm:$0xff] %vm293_vm0, %v3763_v36  ;;  %vm3580_vm3 = vmor %vm3578_vm2, %vm3579_vm1 }
 0x9ec   : > { %v3551_v58 = vsel %vm3550_vm15, %v4209_v24, %v3547_v30  ;;  %v3574_v29 = vmul.f32 %v4211_v39, %v3573_v34 }
 0x9ed   : > { %v3700_v7 = vmul.f32 %v3551_v58, %v6592_v27 }
 0x9ee   : > { %v3575_v52 = vmul.f32 0.5, %v3574_v29 }
 0x9ef   : > { %v3733_v19 = vmul.f32 %v6424_v46, %v3700_v7 }
 0x9f0   : > { %v3576_v11 = vsub.f32 1.5, %v3575_v52 }
 0x9f1   : > { %v3766_v54 = vadd.f32 %v6434_v13, %v3733_v19 }
 0x9f2   : > { %v3577_v62 = vmul.f32 %v4211_v39, %v3576_v11 }
 0x9f3   : > { %3798 = vst.msk [vmem:[%s6449_s12 + $0x90] sm:$0xff] %vm293_vm0, %v3766_v54 }
 0x9f4   : > { %v3581_v33 = vsel %vm3580_vm3, %v4211_v39, %v3577_v62 }
 0x9f5   : > { %v3703_v18 = vmul.f32 %v3581_v33, %v6605_v47 }
 0x9f7   : > { %v3736_v56 = vmul.f32 %v6424_v46, %v3703_v18 }
 0x9f9   : > { %v3769_v17 = vadd.f32 %v6434_v13, %v3736_v56 }
 0x9fb   : > { %3801 = vst.msk [vmem:[%s6449_s12 + $0xa8] sm:$0xff] %vm293_vm0, %v3769_v17 }
 0xa19   : > { %v3276_v27 = vpop.xlane.xlu1 %3275  ;;  %v3102_v61 = vpop.xlane.xlu2 %3101 }
 0xa1a   : > { %v3322_v60 = vmul.f32 %v3276_v27, %v4559_v5  ;;  %v3136_v48 = vmul.f32 %v3102_v61, %v4559_v5 }
 0xa1c   : > { %v3354_v42 = vadd.f32 1e-05, %v3322_v60  ;;  %v6803_v43 = vsub.f32 %v6625_v23, %v3136_v48 }
 0xa1e   : > { %4212 = vrsqrt.f32 %v3354_v42  ;;  %v3200_v47 = vmul.f32 %v6803_v43, %v6803_v43  ;;  %vm3608_vm5 = vweird.f32 %v3354_v42 }
 0xa20   : > { %v3292_v3 = vsel %vm293_vm0, %v3200_v47, 0.0 }
 0xa21   : > { %3293 = vadd.xlane.f32.xlu1 %v3292_v3  ;;  %v3252_v49 = vpop.xlane.xlu2 %3251  ;;  %v3105_v50 = vpop.xlane.xlu0 %3104 }
 0xa22   : > { %v3314_v1 = vmul.f32 %v3252_v49, %v4559_v5  ;;  %v3137_v31 = vmul.f32 %v3105_v50, %v4559_v5 }
 0xa24   : > { %v4213_v38 = vpop.eup %4212  ;;  %v3346_v0 = vadd.f32 1e-05, %v3314_v1  ;;  %v6811_v21 = vsub.f32 %v6649_v25, %v3137_v31 }
 0xa25   : > { %v3603_v23 = vmul.f32 %v4213_v38, %v3354_v42  ;;  %vm3609_vm4 = vweird.f32 %v4213_v38 }
 0xa26   : > { %4214 = vrsqrt.f32 %v3346_v0  ;;  %v3201_v41 = vmul.f32 %v6811_v21, %v6811_v21  ;;  %vm3610_vm6 = vmor %vm3608_vm5, %vm3609_vm4  ;;  %vm3528_vm8 = vweird.f32 %v3346_v0 }
 0xa27   : > { %v3604_v26 = vmul.f32 %v4213_v38, %v3603_v23 }
 0xa28   : > { %v3295_v14 = vsel %vm293_vm0, %v3201_v41, 0.0 }
 0xa29   : > { %v3605_v15 = vmul.f32 0.5, %v3604_v26  ;;  %v3261_v22 = vpop.xlane.xlu2 %3260  ;;  %3296 = vadd.xlane.f32.xlu2 %v3295_v14  ;;  %v3246_v24 = vpop.xlane.xlu0 %3245 }
 0xa2a   : > { %v3317_v4 = vmul.f32 %v3261_v22, %v4559_v5  ;;  %v3312_v37 = vmul.f32 %v3246_v24, %v4559_v5 }
 0xa2b   : > { %v3606_v45 = vsub.f32 1.5, %v3605_v15 }
 0xa2c   : > { %v4215_v25 = vpop.eup %4214  ;;  %v3349_v57 = vadd.f32 1e-05, %v3317_v4  ;;  %v6818_v55 = vadd.f32 1e-05, %v3312_v37 }
 0xa2d   : > { %v3607_v32 = vmul.f32 %v4213_v38, %v3606_v45  ;;  %v3523_v44 = vmul.f32 %v4215_v25, %v3346_v0  ;;  %vm3529_vm7 = vweird.f32 %v4215_v25 }
 0xa2e   : > { %4216 = vrsqrt.f32 %v3349_v57  ;;  %vm3530_vm9 = vmor %vm3528_vm8, %vm3529_vm7  ;;  %vm3558_vm12 = vweird.f32 %v3349_v57  ;;  %vm3508_vm14 = vweird.f32 %v6818_v55 }
 0xa2f   : > { %v3611_v51 = vsel %vm3610_vm6, %v4213_v38, %v3607_v32  ;;  %v3524_v10 = vmul.f32 %v4215_v25, %v3523_v44  ;;  %4218 = vrsqrt.f32 %v6818_v55 }
 0xa30   : > { %v3706_v39 = vmul.f32 %v3611_v51, %v6621_v8 }
 0xa31   : > { %v3525_v36 = vmul.f32 0.5, %v3524_v10  ;;  %v3285_v30 = vpop.xlane.xlu1 %3284  ;;  %v3255_v34 = vpop.xlane.xlu0 %3254 }
 0xa32   : > { %v3739_v58 = vmul.f32 %v6424_v46, %v3706_v39  ;;  %v3325_v29 = vmul.f32 %v3285_v30, %v4559_v5  ;;  %v3270_v7 = vpop.xlane.xlu2 %3269  ;;  %v3315_v52 = vmul.f32 %v3255_v34, %v4559_v5 }
 0xa33   : > { %v3526_v19 = vsub.f32 1.5, %v3525_v36  ;;  %v3320_v11 = vmul.f32 %v3270_v7, %v4559_v5 }
 0xa34   : > { %v4217_v54 = vpop.eup %4216  ;;  %v3772_v62 = vadd.f32 %v6434_v13, %v3739_v58  ;;  %v6827_v33 = vadd.f32 1e-05, %v3325_v29  ;;  %v6829_v8 = vadd.f32 1e-05, %v3315_v52 }
 0xa35   : > { %v4219_v18 = vpop.eup %4218  ;;  %v3527_v56 = vmul.f32 %v4215_v25, %v3526_v19  ;;  %v3553_v17 = vmul.f32 %v4217_v54, %v3349_v57  ;;  %v6831_v27 = vadd.f32 1e-05, %v3320_v11  ;;  %vm3559_vm10 = vweird.f32 %v4217_v54 }
 0xa36   : > { %3804 = vst.msk [vmem:[%s6449_s12 + $0xc0] sm:$0xff] %vm293_vm0, %v3772_v62  ;;  %v3503_v61 = vmul.f32 %v4219_v18, %v6818_v55  ;;  %4220 = vrsqrt.f32 %v6827_v33  ;;  %vm3509_vm11 = vweird.f32 %v4219_v18  ;;  %vm3560_vm13 = vmor %vm3558_vm12, %vm3559_vm10  ;;  %vm3638_vm1 = vweird.f32 %v6827_v33 }
 0xa37   : > { %v3531_v60 = vsel %vm3530_vm9, %v4215_v25, %v3527_v56  ;;  %v3554_v48 = vmul.f32 %v4217_v54, %v3553_v17  ;;  %4222 = vrsqrt.f32 %v6831_v27  ;;  %vm3510_vm15 = vmor %vm3508_vm14, %vm3509_vm11  ;;  %vm3588_vm6 = vweird.f32 %v6831_v27 }
 0xa38   : > { %v3698_v42 = vmul.f32 %v3531_v60, %v6630_v20  ;;  %v3504_v47 = vmul.f32 %v4219_v18, %v3503_v61  ;;  %4224 = vrsqrt.f32 %v6829_v8  ;;  %vm3538_vm8 = vweird.f32 %v6829_v8 }
 0xa39   : > { %v3555_v3 = vmul.f32 0.5, %v3554_v48  ;;  %v3264_v49 = vpop.xlane.xlu0 %3263 }
 0xa3a   : > { %v3731_v50 = vmul.f32 %v6424_v46, %v3698_v42  ;;  %v3505_v1 = vmul.f32 0.5, %v3504_v47  ;;  %v3279_v31 = vpop.xlane.xlu2 %3278  ;;  %v3318_v38 = vmul.f32 %v3264_v49, %v4559_v5 }
 0xa3b   : > { %v3556_v0 = vsub.f32 1.5, %v3555_v3  ;;  %v3323_v23 = vmul.f32 %v3279_v31, %v4559_v5 }
 0xa3c   : > { %v6843_v41 = vpop.eup %4220  ;;  %v3764_v20 = vadd.f32 %v6434_v13, %v3731_v50  ;;  %v3506_v26 = vsub.f32 1.5, %v3505_v1  ;;  %v6846_v14 = vadd.f32 1e-05, %v3318_v38 }
 0xa3d   : > { %v6848_v15 = vpop.eup %4222  ;;  %v3557_v22 = vmul.f32 %v4217_v54, %v3556_v0  ;;  %v3633_v24 = vmul.f32 %v6843_v41, %v6827_v33  ;;  %v6852_v4 = vadd.f32 1e-05, %v3323_v23  ;;  %vm3639_vm2 = vweird.f32 %v6843_v41 }
 0xa3e   : > { %v6854_v37 = vpop.eup %4224  ;;  %3796 = vst.msk [vmem:[%s6449_s12 + $0x80] sm:$0xff] %vm293_vm0, %v3764_v20  ;;  %v3507_v45 = vmul.f32 %v4219_v18, %v3506_v26  ;;  %v3583_v25 = vmul.f32 %v6848_v15, %v6831_v27  ;;  %4226 = vrsqrt.f32 %v6846_v14  ;;  %vm3589_vm3 = vweird.f32 %v6848_v15  ;;  %vm3640_vm5 = vmor %vm3638_vm1, %vm3639_vm2 }
 0xa3f   : > { %v3561_v32 = vsel %vm3560_vm13, %v4217_v54, %v3557_v22  ;;  %v3634_v57 = vmul.f32 %v6843_v41, %v3633_v24  ;;  %v3533_v44 = vmul.f32 %v6854_v37, %v6829_v8  ;;  %4228 = vrsqrt.f32 %v6852_v4  ;;  %vm3590_vm7 = vmor %vm3588_vm6, %vm3589_vm3 }
 0xa40   : > { %v3701_v51 = vmul.f32 %v3561_v32, %v6655_v9  ;;  %v3511_v10 = vsel %vm3510_vm15, %v4219_v18, %v3507_v45  ;;  %v3584_v55 = vmul.f32 %v6848_v15, %v3583_v25  ;;  %vm3539_vm4 = vweird.f32 %v6854_v37 }
 0xa41   : > { %v3696_v39 = vmul.f32 %v3511_v10, %v6652_v63  ;;  %v3635_v36 = vmul.f32 0.5, %v3634_v57  ;;  %v3534_v30 = vmul.f32 %v6854_v37, %v3533_v44  ;;  %v3273_v34 = vpop.xlane.xlu0 %3272  ;;  %vm3540_vm9 = vmor %vm3538_vm8, %vm3539_vm4  ;;  %vm3568_vm12 = vweird.f32 %v6846_v14 }
 0xa42   : > { %v3734_v58 = vmul.f32 %v6424_v46, %v3701_v51  ;;  %v3585_v29 = vmul.f32 0.5, %v3584_v55  ;;  %v3288_v7 = vpop.xlane.xlu2 %3287  ;;  %v3321_v9 = vmul.f32 %v3273_v34, %v4559_v5  ;;  %vm3618_vm13 = vweird.f32 %v6852_v4 }
 0xa43   : > { %v3729_v52 = vmul.f32 %v6424_v46, %v3696_v39  ;;  %v3636_v19 = vsub.f32 1.5, %v3635_v36  ;;  %v3535_v11 = vmul.f32 0.5, %v3534_v30  ;;  %v3326_v63 = vmul.f32 %v3288_v7, %v4559_v5 }
 0xa44   : > { %v6878_v54 = vpop.eup %4226  ;;  %v3767_v62 = vadd.f32 %v6434_v13, %v3734_v58  ;;  %v3586_v18 = vsub.f32 1.5, %v3585_v29  ;;  %v6882_v56 = vadd.f32 1e-05, %v3321_v9 }
 0xa45   : > { %v3762_v17 = vadd.f32 %v6434_v13, %v3729_v52  ;;  %v3637_v61 = vmul.f32 %v6843_v41, %v3636_v19  ;;  %v3536_v60 = vsub.f32 1.5, %v3535_v11  ;;  %v3563_v48 = vmul.f32 %v6878_v54, %v6846_v14  ;;  %v4229_v42 = vpop.eup %4228 }
 0xa46   : > { %3799 = vst.msk [vmem:[%s6449_s12 + $0x98] sm:$0xff] %vm293_vm0, %v3767_v62  ;;  %v3587_v47 = vmul.f32 %v6848_v15, %v3586_v18  ;;  %v6896_v3 = vadd.f32 1e-05, %v3326_v63  ;;  %4230 = vrsqrt.f32 %v6882_v56  ;;  %v3613_v33 = vmul.f32 %v4229_v42, %v6852_v4 }
 0xa47   : > { %3794 = vst.msk [vmem:[%s6449_s12 + $0x70] sm:$0xff] %vm293_vm0, %v3762_v17  ;;  %v3641_v49 = vsel %vm3640_vm5, %v6843_v41, %v3637_v61  ;;  %v3537_v50 = vmul.f32 %v6854_v37, %v3536_v60  ;;  %v3564_v31 = vmul.f32 %v6878_v54, %v3563_v48  ;;  %vm3569_vm10 = vweird.f32 %v6878_v54 }
 0xa48   : > { %v3709_v1 = vmul.f32 %v3641_v49, %v6702_v40  ;;  %v3591_v27 = vsel %vm3590_vm7, %v6848_v15, %v3587_v47  ;;  %4232 = vrsqrt.f32 %v6896_v3  ;;  %v3614_v23 = vmul.f32 %v4229_v42, %v3613_v33  ;;  %vm3570_vm14 = vmor %vm3568_vm12, %vm3569_vm10 }
 0xa49   : > { %v3704_v38 = vmul.f32 %v3591_v27, %v6687_v28  ;;  %v3541_v0 = vsel %vm3540_vm9, %v6854_v37, %v3537_v50  ;;  %v3282_v41 = vpop.xlane.xlu0 %3281  ;;  %v3565_v20 = vmul.f32 0.5, %v3564_v31  ;;  %vm3619_vm11 = vweird.f32 %v4229_v42 }
 0xa4a   : > { %v3742_v8 = vmul.f32 %v6424_v46, %v3709_v1  ;;  %v3699_v40 = vmul.f32 %v3541_v0, %v6681_v53  ;;  %v3615_v15 = vmul.f32 0.5, %v3614_v23  ;;  %v3324_v22 = vmul.f32 %v3282_v41, %v4559_v5  ;;  %vm3620_vm15 = vmor %vm3618_vm13, %vm3619_vm11 }
 0xa4b   : > { %v3737_v26 = vmul.f32 %v6424_v46, %v3704_v38  ;;  %v3566_v37 = vsub.f32 1.5, %v3565_v20  ;;  %vm3598_vm2 = vweird.f32 %v6882_v56  ;;  %vm3648_vm5 = vweird.f32 %v6896_v3 }
 0xa4c   : > { %v4231_v24 = vpop.eup %4230  ;;  %v3775_v45 = vadd.f32 %v6434_v13, %v3742_v8  ;;  %v3732_v28 = vmul.f32 %v6424_v46, %v3699_v40  ;;  %v3616_v32 = vsub.f32 1.5, %v3615_v15  ;;  %v3356_v10 = vadd.f32 1e-05, %v3324_v22 }
 0xa4d   : > { %v3770_v25 = vadd.f32 %v6434_v13, %v3737_v26  ;;  %v3593_v53 = vmul.f32 %v4231_v24, %v6882_v56  ;;  %v3567_v51 = vmul.f32 %v6878_v54, %v3566_v37  ;;  %vm3599_vm1 = vweird.f32 %v4231_v24 }
 0xa4e   : > { %v4233_v57 = vpop.eup %4232  ;;  %3807 = vst.msk [vmem:[%s6449_s12 + $0xd8] sm:$0xff] %vm293_vm0, %v3775_v45  ;;  %v3765_v44 = vadd.f32 %v6434_v13, %v3732_v28  ;;  %v3617_v55 = vmul.f32 %v4229_v42, %v3616_v32  ;;  %4234 = vrsqrt.f32 %v3356_v10  ;;  %vm3600_vm4 = vmor %vm3598_vm2, %vm3599_vm1  ;;  %vm3628_vm8 = vweird.f32 %v3356_v10 }
 0xa4f   : > { %3802 = vst.msk [vmem:[%s6449_s12 + $0xb0] sm:$0xff] %vm293_vm0, %v3770_v25  ;;  %v3643_v39 = vmul.f32 %v4233_v57, %v6896_v3  ;;  %v3594_v36 = vmul.f32 %v4231_v24, %v3593_v53  ;;  %v3571_v30 = vsel %vm3570_vm14, %v6878_v54, %v3567_v51  ;;  %vm3649_vm3 = vweird.f32 %v4233_v57 }
 0xa50   : > { %3797 = vst.msk [vmem:[%s6449_s12 + $0x88] sm:$0xff] %vm293_vm0, %v3765_v44  ;;  %v3621_v34 = vsel %vm3620_vm15, %v4229_v42, %v3617_v55  ;;  %v3702_v14 = vmul.f32 %v3571_v30, %v6714_v6  ;;  %vm3650_vm6 = vmor %vm3648_vm5, %vm3649_vm3 }
 0xa51   : > { %v3644_v58 = vmul.f32 %v4233_v57, %v3643_v39  ;;  %v3595_v29 = vmul.f32 0.5, %v3594_v36  ;;  %v3291_v7 = vpop.xlane.xlu0 %3290  ;;  %v3707_v9 = vmul.f32 %v3621_v34, %v6718_v16 }
 0xa52   : > { %v3327_v4 = vmul.f32 %v3291_v7, %v4559_v5  ;;  %v3735_v52 = vmul.f32 %v6424_v46, %v3702_v14 }
 0xa53   : > { %v3645_v19 = vmul.f32 0.5, %v3644_v58  ;;  %v3596_v11 = vsub.f32 1.5, %v3595_v29  ;;  %v3740_v63 = vmul.f32 %v6424_v46, %v3707_v9 }
 0xa54   : > { %v3359_v54 = vadd.f32 1e-05, %v3327_v4  ;;  %v3768_v6 = vadd.f32 %v6434_v13, %v3735_v52  ;;  %v4235_v16 = vpop.eup %4234 }
 0xa55   : > { %v3646_v62 = vsub.f32 1.5, %v3645_v19  ;;  %v3597_v18 = vmul.f32 %v4231_v24, %v3596_v11  ;;  %v3773_v17 = vadd.f32 %v6434_v13, %v3740_v63  ;;  %v3623_v48 = vmul.f32 %v4235_v16, %v3356_v10 }
 0xa56   : > { %4236 = vrsqrt.f32 %v3359_v54  ;;  %3800 = vst.msk [vmem:[%s6449_s12 + $0xa0] sm:$0xff] %vm293_vm0, %v3768_v6  ;;  %vm3629_vm7 = vweird.f32 %v4235_v16  ;;  %vm3658_vm11 = vweird.f32 %v3359_v54 }
 0xa57   : > { %v3647_v61 = vmul.f32 %v4233_v57, %v3646_v62  ;;  %v3601_v60 = vsel %vm3600_vm4, %v4231_v24, %v3597_v18  ;;  %3805 = vst.msk [vmem:[%s6449_s12 + $0xc8] sm:$0xff] %vm293_vm0, %v3773_v17  ;;  %v3624_v47 = vmul.f32 %v4235_v16, %v3623_v48  ;;  %vm3630_vm9 = vmor %vm3628_vm8, %vm3629_vm7 }
 0xa58   : > { %v3705_v56 = vmul.f32 %v3601_v60, %v6738_v12 }
 0xa59   : > { %v3651_v42 = vsel %vm3650_vm6, %v4233_v57, %v3647_v61  ;;  %v3625_v33 = vmul.f32 0.5, %v3624_v47 }
 0xa5a   : > { %v3710_v49 = vmul.f32 %v3651_v42, %v6743_v59  ;;  %v3738_v50 = vmul.f32 %v6424_v46, %v3705_v56 }
 0xa5b   : > { %v3626_v31 = vsub.f32 1.5, %v3625_v33 }
 0xa5c   : > { %v4237_v1 = vpop.eup %4236  ;;  %v3743_v27 = vmul.f32 %v6424_v46, %v3710_v49  ;;  %v3771_v3 = vadd.f32 %v6434_v13, %v3738_v50 }
 0xa5d   : > { %v3653_v38 = vmul.f32 %v4237_v1, %v3359_v54  ;;  %v3627_v12 = vmul.f32 %v4235_v16, %v3626_v31  ;;  %vm3659_vm10 = vweird.f32 %v4237_v1 }
 0xa5e   : > { %v3776_v0 = vadd.f32 %v6434_v13, %v3743_v27  ;;  %3803 = vst.msk [vmem:[%s6449_s12 + $0xb8] sm:$0xff] %vm293_vm0, %v3771_v3  ;;  %vm3660_vm12 = vmor %vm3658_vm11, %vm3659_vm10 }
 0xa5f   : > { %v3654_v23 = vmul.f32 %v4237_v1, %v3653_v38  ;;  %v3631_v59 = vsel %vm3630_vm9, %v4235_v16, %v3627_v12 }
 0xa60   : > { %3808 = vst.msk [vmem:[%s6449_s12 + $0xe0] sm:$0xff] %vm293_vm0, %v3776_v0  ;;  %v3708_v8 = vmul.f32 %v3631_v59, %v6758_v2 }
 0xa61   : > { %v3655_v41 = vmul.f32 0.5, %v3654_v23 }
 0xa62   : > { %v3741_v20 = vmul.f32 %v6424_v46, %v3708_v8 }
 0xa63   : > { %v3656_v40 = vsub.f32 1.5, %v3655_v41 }
 0xa64   : > { %v3774_v15 = vadd.f32 %v6434_v13, %v3741_v20 }
 0xa65   : > { %v3657_v26 = vmul.f32 %v4237_v1, %v3656_v40 }
 0xa66   : > { %3806 = vst.msk [vmem:[%s6449_s12 + $0xd0] sm:$0xff] %vm293_vm0, %v3774_v15 }
 0xa67   : > { %v3661_v22 = vsel %vm3660_vm12, %v4237_v1, %v3657_v26 }
 0xa68   : > { %v3711_v24 = vmul.f32 %v3661_v22, %v6773_v35 }
 0xa6a   : > { %v3744_v45 = vmul.f32 %v6424_v46, %v3711_v24 }
 0xa6c   : > { %v3777_v28 = vadd.f32 %v6434_v13, %v3744_v45 }
 0xa6e   : > { %3809 = vst.msk [vmem:[%s6449_s12 + $0xe8] sm:$0xff] %vm293_vm0, %v3777_v28 }
 0xa94   : > { %v3294_v2 = vpop.xlane.xlu1 %3293 }
 0xa95   : > { %v3328_v37 = vmul.f32 %v3294_v2, %v4559_v5 }
 0xa97   : > { %v3360_v25 = vadd.f32 1e-05, %v3328_v37 }
 0xa99   : > { %4238 = vrsqrt.f32 %v3360_v25  ;;  %vm3668_vm14 = vweird.f32 %v3360_v25 }
 0xa9c   : > { %v3297_v32 = vpop.xlane.xlu2 %3296 }
 0xa9d   : > { %v3329_v53 = vmul.f32 %v3297_v32, %v4559_v5 }
 0xa9f   : > { %v4239_v57 = vpop.eup %4238  ;;  %v3361_v44 = vadd.f32 1e-05, %v3329_v53 }
 0xaa0   : > { %v3663_v51 = vmul.f32 %v4239_v57, %v3360_v25  ;;  %vm3669_vm13 = vweird.f32 %v4239_v57 }
 0xaa1   : > { %4240 = vrsqrt.f32 %v3361_v44  ;;  %vm3670_vm15 = vmor %vm3668_vm14, %vm3669_vm13  ;;  %vm3678_vm2 = vweird.f32 %v3361_v44 }
 0xaa2   : > { %v3664_v10 = vmul.f32 %v4239_v57, %v3663_v51 }
 0xaa4   : > { %v3665_v35 = vmul.f32 0.5, %v3664_v10 }
 0xaa6   : > { %v3666_v55 = vsub.f32 1.5, %v3665_v35 }
 0xaa7   : > { %v4241_v39 = vpop.eup %4240 }
 0xaa8   : > { %v3667_v36 = vmul.f32 %v4239_v57, %v3666_v55  ;;  %v3673_v30 = vmul.f32 %v4241_v39, %v3361_v44  ;;  %vm3679_vm1 = vweird.f32 %v4241_v39 }
 0xaa9   : > { %vm3680_vm3 = vmor %vm3678_vm2, %vm3679_vm1 }
 0xaaa   : > { %v3671_v34 = vsel %vm3670_vm15, %v4239_v57, %v3667_v36  ;;  %v3674_v14 = vmul.f32 %v4241_v39, %v3673_v30 }
 0xaab   : > { %v3712_v58 = vmul.f32 %v3671_v34, %v6803_v43 }
 0xaac   : > { %v3675_v5 = vmul.f32 0.5, %v3674_v14 }
 0xaad   : > { %v3745_v29 = vmul.f32 %v6424_v46, %v3712_v58 }
 0xaae   : > { %v3676_v7 = vsub.f32 1.5, %v3675_v5 }
 0xaaf   : > { %v3778_v9 = vadd.f32 %v6434_v13, %v3745_v29 }
 0xab0   : > { %v3677_v4 = vmul.f32 %v4241_v39, %v3676_v7 }
 0xab1   : > { %3810 = vst.msk [vmem:[%s6449_s12 + $0xf0] sm:$0xff] %vm293_vm0, %v3778_v9 }
 0xab2   : > { %v3681_v52 = vsel %vm3680_vm3, %v4241_v39, %v3677_v4 }
 0xab3   : > { %v3713_v19 = vmul.f32 %v3681_v52, %v6811_v21 }
 0xab5   : > { %v3746_v11 = vmul.f32 %v6424_v46, %v3713_v19 }
 0xab7   : > { %v3779_v63 = vadd.f32 %v6434_v13, %v3746_v11 }
 0xab9   : > { %3811 = vst.msk [vmem:[%s6449_s12 + $0xf8] sm:$0xff] %vm293_vm0, %v3779_v63 }
 0xaba PF: > { %s15_s18 = sadd.s32 1, %s4258_s18  }
 0xabb   : > { %p12_p4 = scmp.ge.s32.totalorder %s15_s18, 4  }
 0xabd   :  { %14 = sbr.rel (!%p12_p4) target bundleno = 1 (0x1), region = 76 }

</bundles_post_ra>
